<compile_context>
chip_gen: v7x
topology: tpu7x:2x2x1
jax: 0.10.0
libtpu: 0.0.40
codegen_flags: <defaults>
</compile_context>

<pallas_src>
import functools

import jax
import jax.numpy as jnp
from jax.experimental import pallas as pl
from jax.experimental.pallas import tpu as pltpu


def cdeep_fusion_kernel(
    main_ref, prompt_ref,
    wq_ref, bq_ref, wk_ref, bk_ref, wv_ref, bv_ref, wo_ref, bo_ref,
    ln_g_ref, ln_b_ref,
    wg1a_ref, wg1b_ref, bg1_ref, wg2_ref, bg2_ref,
    wc1_ref, bc1_ref, wc2_ref, bc2_ref,
    out_ref,
    *, num_heads):
    f32 = jnp.float32
    cdt = wq_ref.dtype                     # matmul operand dtype (bf16 or f32)
    approx = cdt != jnp.float32            # approx reciprocal only on fast path
    Bt, S, E = main_ref.shape
    H = num_heads
    D = E // H
    scale = 1.0 / (D ** 0.5)

    # Grid-invariant weights: load once, hoisted out of the per-sample loop.
    wq = wq_ref[...]; wk = wk_ref[...]; wv = wv_ref[...]
    bq = bq_ref[...]; bk = bk_ref[...]; bv = bv_ref[...]; bo = bo_ref[...]
    ln_g = ln_g_ref[...]; ln_b = ln_b_ref[...]
    wg1a = wg1a_ref[...]; wg1b = wg1b_ref[...]; bg1 = bg1_ref[...]
    wg2 = wg2_ref[...]; bg2 = bg2_ref[...]
    wc1 = wc1_ref[...]; bc1 = bc1_ref[...]
    wc2 = wc2_ref[...]; bc2 = bc2_ref[...]

    for bt in range(Bt):                   # static unroll; Bt kept small by wrapper
        main = main_ref[bt].astype(f32)            # (S, E)
        main_c = main.astype(cdt)
        prompt_c = prompt_ref[bt].astype(cdt)      # (Sk, E)

        # ---- QKV projections (MXU, bf16 operands, f32 accumulation) ----
        q = jnp.dot(main_c, wq, preferred_element_type=f32) + bq     # (S, E)
        k = jnp.dot(prompt_c, wk, preferred_element_type=f32) + bk   # (Sk, E)
        v = jnp.dot(prompt_c, wv, preferred_element_type=f32) + bv   # (Sk, E)

        q_c = (q * scale).astype(cdt)
        k_c = k.astype(cdt)
        v_c = v.astype(cdt)

        # ---- multi-head cross-attention with the output projection folded
        #      into the head loop:
        #        attn = bo + sum_h softmax(q_h k_h^T / sqrt(D)) v_h @ Wo_h
        #      so no (S, E) head-concatenate is ever materialized and each
        #      head's contribution is a lane-dense (S, E) MXU output. ----
        attn = jnp.zeros((S, E), f32) + bo
        for h in range(H):
            sl = slice(h * D, (h + 1) * D)
            s = jnp.einsum("qd,kd->qk", q_c[:, sl], k_c[:, sl],
                           preferred_element_type=f32)                 # (S, Sk)
            s = s - jnp.max(s, axis=-1, keepdims=True)
            p = jnp.exp(s)
            p = p * pl.reciprocal(jnp.sum(p, axis=-1, keepdims=True),
                                  approx=approx)
            # TODO(synk): attention dropout omitted (eval-mode semantics).
            ctx = jnp.dot(p.astype(cdt), v_c[:, sl],
                          preferred_element_type=f32)                  # (S, D)
            attn = attn + jnp.dot(ctx.astype(cdt), wo_ref[h],
                                  preferred_element_type=f32)          # (S, E)

        # ---- LayerNorm over embed dim (eps = 1e-5, PyTorch default; f32) ----
        mu = jnp.mean(attn, axis=-1, keepdims=True)
        var = jnp.mean((attn - mu) ** 2, axis=-1, keepdims=True)
        attn = (attn - mu) * jax.lax.rsqrt(var + 1e-5)
        attn = attn * ln_g + ln_b
        attn_c = attn.astype(cdt)

        # ---- global gate: sigmoid(MLP(cat[max_s(attn), mean_s(main)])) ----
        # cat([a, b]) @ W1 == a @ W1a + b @ W1b  (W1 pre-split in the wrapper)
        gmax = jnp.max(attn, axis=0, keepdims=True)      # (1, E)
        mmean = jnp.mean(main, axis=0, keepdims=True)    # (1, E)
        g1 = (jnp.dot(gmax.astype(cdt), wg1a, preferred_element_type=f32)
              + jnp.dot(mmean.astype(cdt), wg1b, preferred_element_type=f32)
              + bg1)
        g1 = jnp.maximum(g1, 0.0)
        gg = jax.nn.sigmoid(
            jnp.dot(g1.astype(cdt), wg2, preferred_element_type=f32) + bg2)  # (1,1)

        # ---- channel gate: sigmoid(MLP(attn)) ----
        c1 = jnp.maximum(
            jnp.dot(attn_c, wc1, preferred_element_type=f32) + bc1, 0.0)
        cg = jax.nn.sigmoid(
            jnp.dot(c1.astype(cdt), wc2, preferred_element_type=f32) + bc2)  # (S,E)

        fused = main + attn * cg * (1.0 - gg)
        out_ref[bt] = fused.astype(out_ref.dtype)


def init_params(key, embed_dim, hidden_dim):
    E, Hd = embed_dim, hidden_dim
    ks = jax.random.split(key, 17)

    def w(k, shape):
        return jax.random.normal(k, shape, jnp.float32) * 0.05

    return dict(
        # attention in/out projections, stored as (in, out)
        wq=w(ks[0], (E, E)), bq=w(ks[1], (1, E)),
        wk=w(ks[2], (E, E)), bk=w(ks[3], (1, E)),
        wv=w(ks[4], (E, E)), bv=w(ks[5], (1, E)),
        wo=w(ks[6], (E, E)), bo=w(ks[7], (1, E)),
        # LayerNorm
        ln_g=jnp.ones((1, E), jnp.float32), ln_b=jnp.zeros((1, E), jnp.float32),
        # gate_global: Linear(2E -> Hd) split into two (E -> Hd) halves
        wg1a=w(ks[8], (E, Hd)), wg1b=w(ks[9], (E, Hd)), bg1=w(ks[10], (1, Hd)),
        wg2=w(ks[11], (Hd, 1)), bg2=w(ks[12], (1, 1)),
        # gate_channel: Linear(E -> E/2) -> ReLU -> Linear(E/2 -> E)
        wc1=w(ks[13], (E, E // 2)), bc1=w(ks[14], (1, E // 2)),
        wc2=w(ks[15], (E // 2, E)), bc2=w(ks[16], (1, E)),
    )


WEIGHT_ORDER = ["wq", "bq", "wk", "bk", "wv", "bv", "wo", "bo",
                "ln_g", "ln_b",
                "wg1a", "wg1b", "bg1", "wg2", "bg2",
                "wc1", "bc1", "wc2", "bc2"]

# Weights that feed the MXU: cast to the compute dtype (bf16) in the wrapper.
MATMUL_WEIGHT_NAMES = frozenset(
    {"wq", "wk", "wv", "wo", "wg1a", "wg1b", "wg2", "wc1", "wc2"})


def _prepare_weights(params, num_heads, compute_dtype):
    E = params["wq"].shape[0]
    D = E // num_heads
    ws = []
    for name in WEIGHT_ORDER:
        w = params[name]
        if name == "wo":
            # (E, E) -> (H, D, E): per-head weight slab via leading-dim index.
            w = w.reshape(num_heads, D, E)
        if name in MATMUL_WEIGHT_NAMES:
            w = w.astype(compute_dtype)
        ws.append(w)
    return ws


def _pick_block_b(B, S, Sk, E, itemsize=4, target_bytes=2 << 20, max_bt=8):
    """Largest divisor of B such that per-step activations stay a few MiB."""
    per_sample = (2 * S + Sk) * E * itemsize
    bt = max(1, min(B, max_bt, target_bytes // max(per_sample, 1)))
    while B % bt:
        bt -= 1
    return bt


def _weight_spec(w, pipeline_mode):
    zeros = (0,) * w.ndim
    idx = lambda b, _z=zeros: _z              # grid-invariant block
    if pipeline_mode is None:
        return pl.BlockSpec(w.shape, idx)
    return pl.BlockSpec(w.shape, idx, pipeline_mode=pipeline_mode)


def cdeep_fusion(main_feat, prompt_feat, params, *, num_heads,
                 compute_dtype=jnp.bfloat16, block_b=None):
    B, S, E = main_feat.shape
    _, Sk, _ = prompt_feat.shape
    assert E % num_heads == 0
    if block_b is None:
        block_b = _pick_block_b(B, S, Sk, E)
    assert B % block_b == 0

    weights = _prepare_weights(params, num_heads, compute_dtype)
    kernel = functools.partial(cdeep_fusion_kernel, num_heads=num_heads)

    def call(weight_pipeline_mode):
        weight_specs = [_weight_spec(w, weight_pipeline_mode) for w in weights]
        return pl.pallas_call(
            kernel,
            out_shape=jax.ShapeDtypeStruct((B, S, E), main_feat.dtype),
            grid_spec=pltpu.PrefetchScalarGridSpec(
                num_scalar_prefetch=0,
                grid=(B // block_b,),
                in_specs=[pl.BlockSpec((block_b, S, E), lambda b: (b, 0, 0)),
                          pl.BlockSpec((block_b, Sk, E), lambda b: (b, 0, 0))]
                         + weight_specs,
                out_specs=pl.BlockSpec((block_b, S, E), lambda b: (b, 0, 0)),
            ),
            compiler_params=pltpu.CompilerParams(
                dimension_semantics=("parallel",),
                # Explicit VMEM budget (safe on v5e/v6e/v7x; v7x only has 64 MiB).
                vmem_limit_bytes=32 * 1024 * 1024),
        )(main_feat, prompt_feat, *weights)

    # Weights are constant across the batch grid -> ask for single buffering.
    # Fall back to default double-buffering if this JAX build rejects it.
    try:
        return call(pl.Buffered(1))
    except Exception:
        return call(None)


def ref_forward(main, prompt, p, num_heads):
    """Pure-JAX reference (mirrors the PyTorch module in eval mode)."""
    B, S, E = main.shape
    H = num_heads
    D = E // H
    q = main @ p["wq"] + p["bq"]
    k = prompt @ p["wk"] + p["bk"]
    v = prompt @ p["wv"] + p["bv"]
    qh = q.reshape(B, S, H, D).transpose(0, 2, 1, 3)
    kh = k.reshape(B, -1, H, D).transpose(0, 2, 1, 3)
    vh = v.reshape(B, -1, H, D).transpose(0, 2, 1, 3)
    s = jnp.einsum("bhqd,bhkd->bhqk", qh, kh) / jnp.sqrt(D).astype(jnp.float32)
    pa = jax.nn.softmax(s, axis=-1)
    o = jnp.einsum("bhqk,bhkd->bhqd", pa, vh).transpose(0, 2, 1, 3).reshape(B, S, E)
    attn = o @ p["wo"] + p["bo"]
    mu = attn.mean(-1, keepdims=True)
    var = ((attn - mu) ** 2).mean(-1, keepdims=True)
    attn = (attn - mu) / jnp.sqrt(var + 1e-5) * p["ln_g"] + p["ln_b"]
    gmax = attn.max(axis=1)
    mmean = main.mean(axis=1)
    g1 = jax.nn.relu(gmax @ p["wg1a"] + mmean @ p["wg1b"] + p["bg1"])
    gg = jax.nn.sigmoid(g1 @ p["wg2"] + p["bg2"])[:, None, :]
    c1 = jax.nn.relu(attn @ p["wc1"] + p["bc1"])
    cg = jax.nn.sigmoid(c1 @ p["wc2"] + p["bc2"])
    return main + attn * cg * (1.0 - gg)


if __name__ == "__main__":
    # Small shapes consistent with the module (embed divisible by num_heads=8).
    B, S, Sk = 2, 8, 8
    embed_dim, num_heads, hidden_dim = 32, 8, 16

    key = jax.random.PRNGKey(0)
    k_main, k_prompt, k_params = jax.random.split(key, 3)
    main_feat = jax.random.normal(k_main, (B, S, embed_dim), jnp.float32)
    prompt_feat = jax.random.normal(k_prompt, (B, Sk, embed_dim), jnp.float32)
    params = init_params(k_params, embed_dim, hidden_dim)

    ref = ref_forward(main_feat, prompt_feat, params, num_heads)

    # High-precision path (f32 matmul operands): tight check vs. reference.
    out_f32 = cdeep_fusion(main_feat, prompt_feat, params, num_heads=num_heads,
                           compute_dtype=jnp.float32)
    out_f32 = jax.block_until_ready(out_f32)
    assert out_f32.shape == (B, S, embed_dim)
    assert jnp.allclose(out_f32, ref, atol=1e-4, rtol=1e-4), \
        f"f32 path max abs err {jnp.max(jnp.abs(out_f32 - ref))}"

    # Optimized path (bf16 MXU operands, f32 accumulation): looser tolerance.
    out_bf16 = cdeep_fusion(main_feat, prompt_feat, params, num_heads=num_heads)
    out_bf16 = jax.block_until_ready(out_bf16)
    assert out_bf16.shape == (B, S, embed_dim)
    assert jnp.allclose(out_bf16, ref, atol=5e-2, rtol=5e-2), \
        f"bf16 path max abs err {jnp.max(jnp.abs(out_bf16 - ref))}"

    print("KERNEL_OK")
</pallas_src>

<mosaic_0001>
module attributes {stable_mosaic.version = 11 : i64} {
  func.func @cdeep_fusion_kernel(%arg0: i32, %arg1: memref<2x8x32xf32, #tpu.memory_space<vmem>>, %arg2: memref<2x8x32xf32, #tpu.memory_space<vmem>>, %arg3: memref<32x32xf32, #tpu.memory_space<vmem>>, %arg4: memref<1x32xf32, #tpu.memory_space<vmem>>, %arg5: memref<32x32xf32, #tpu.memory_space<vmem>>, %arg6: memref<1x32xf32, #tpu.memory_space<vmem>>, %arg7: memref<32x32xf32, #tpu.memory_space<vmem>>, %arg8: memref<1x32xf32, #tpu.memory_space<vmem>>, %arg9: memref<8x4x32xf32, #tpu.memory_space<vmem>>, %arg10: memref<1x32xf32, #tpu.memory_space<vmem>>, %arg11: memref<1x32xf32, #tpu.memory_space<vmem>>, %arg12: memref<1x32xf32, #tpu.memory_space<vmem>>, %arg13: memref<32x16xf32, #tpu.memory_space<vmem>>, %arg14: memref<32x16xf32, #tpu.memory_space<vmem>>, %arg15: memref<1x16xf32, #tpu.memory_space<vmem>>, %arg16: memref<16x1xf32, #tpu.memory_space<vmem>>, %arg17: memref<1x1xf32, #tpu.memory_space<vmem>>, %arg18: memref<32x16xf32, #tpu.memory_space<vmem>>, %arg19: memref<1x16xf32, #tpu.memory_space<vmem>>, %arg20: memref<16x32xf32, #tpu.memory_space<vmem>>, %arg21: memref<1x32xf32, #tpu.memory_space<vmem>>, %arg22: memref<2x8x32xf32, #tpu.memory_space<vmem>>) attributes {dimension_semantics = [#tpu.dimension_semantics<parallel>], iteration_bounds = array<i64: 1>, scalar_prefetch = 0 : i64, scratch_operands = 0 : i64, tpu.core_type = #tpu.core_type<tc>, window_params = [{transform_indices = @transform_0, window_bounds = array<i64: 2, 8, 32>}, {transform_indices = @transform_1, window_bounds = array<i64: 2, 8, 32>}, {pipeline_mode = #tpu.pipeline_mode<synchronous>, transform_indices = @transform_2, window_bounds = array<i64: 32, 32>}, {pipeline_mode = #tpu.pipeline_mode<synchronous>, transform_indices = @transform_3, window_bounds = array<i64: 1, 32>}, {pipeline_mode = #tpu.pipeline_mode<synchronous>, transform_indices = @transform_4, window_bounds = array<i64: 32, 32>}, {pipeline_mode = #tpu.pipeline_mode<synchronous>, transform_indices = @transform_5, window_bounds = array<i64: 1, 32>}, {pipeline_mode = #tpu.pipeline_mode<synchronous>, transform_indices = @transform_6, window_bounds = array<i64: 32, 32>}, {pipeline_mode = #tpu.pipeline_mode<synchronous>, transform_indices = @transform_7, window_bounds = array<i64: 1, 32>}, {pipeline_mode = #tpu.pipeline_mode<synchronous>, transform_indices = @transform_8, window_bounds = array<i64: 8, 4, 32>}, {pipeline_mode = #tpu.pipeline_mode<synchronous>, transform_indices = @transform_9, window_bounds = array<i64: 1, 32>}, {pipeline_mode = #tpu.pipeline_mode<synchronous>, transform_indices = @transform_10, window_bounds = array<i64: 1, 32>}, {pipeline_mode = #tpu.pipeline_mode<synchronous>, transform_indices = @transform_11, window_bounds = array<i64: 1, 32>}, {pipeline_mode = #tpu.pipeline_mode<synchronous>, transform_indices = @transform_12, window_bounds = array<i64: 32, 16>}, {pipeline_mode = #tpu.pipeline_mode<synchronous>, transform_indices = @transform_13, window_bounds = array<i64: 32, 16>}, {pipeline_mode = #tpu.pipeline_mode<synchronous>, transform_indices = @transform_14, window_bounds = array<i64: 1, 16>}, {pipeline_mode = #tpu.pipeline_mode<synchronous>, transform_indices = @transform_15, window_bounds = array<i64: 16, 1>}, {pipeline_mode = #tpu.pipeline_mode<synchronous>, transform_indices = @transform_16, window_bounds = array<i64: 1, 1>}, {pipeline_mode = #tpu.pipeline_mode<synchronous>, transform_indices = @transform_17, window_bounds = array<i64: 32, 16>}, {pipeline_mode = #tpu.pipeline_mode<synchronous>, transform_indices = @transform_18, window_bounds = array<i64: 1, 16>}, {pipeline_mode = #tpu.pipeline_mode<synchronous>, transform_indices = @transform_19, window_bounds = array<i64: 16, 32>}, {pipeline_mode = #tpu.pipeline_mode<synchronous>, transform_indices = @transform_20, window_bounds = array<i64: 1, 32>}, {transform_indices = @transform_21, window_bounds = array<i64: 2, 8, 32>}]} {
    %c0 = arith.constant 0 : index
    %c0_0 = arith.constant 0 : index
    %0 = vector.load %arg3[%c0, %c0_0] : memref<32x32xf32, #tpu.memory_space<vmem>>, vector<32x32xf32>
    %c0_1 = arith.constant 0 : index
    %c0_2 = arith.constant 0 : index
    %1 = vector.load %arg5[%c0_1, %c0_2] : memref<32x32xf32, #tpu.memory_space<vmem>>, vector<32x32xf32>
    %c0_3 = arith.constant 0 : index
    %c0_4 = arith.constant 0 : index
    %2 = vector.load %arg7[%c0_3, %c0_4] : memref<32x32xf32, #tpu.memory_space<vmem>>, vector<32x32xf32>
    %c0_5 = arith.constant 0 : index
    %c0_6 = arith.constant 0 : index
    %3 = vector.load %arg4[%c0_5, %c0_6] : memref<1x32xf32, #tpu.memory_space<vmem>>, vector<1x32xf32>
    %c0_7 = arith.constant 0 : index
    %c0_8 = arith.constant 0 : index
    %4 = vector.load %arg6[%c0_7, %c0_8] : memref<1x32xf32, #tpu.memory_space<vmem>>, vector<1x32xf32>
    %c0_9 = arith.constant 0 : index
    %c0_10 = arith.constant 0 : index
    %5 = vector.load %arg8[%c0_9, %c0_10] : memref<1x32xf32, #tpu.memory_space<vmem>>, vector<1x32xf32>
    %c0_11 = arith.constant 0 : index
    %c0_12 = arith.constant 0 : index
    %6 = vector.load %arg10[%c0_11, %c0_12] : memref<1x32xf32, #tpu.memory_space<vmem>>, vector<1x32xf32>
    %c0_13 = arith.constant 0 : index
    %c0_14 = arith.constant 0 : index
    %7 = vector.load %arg11[%c0_13, %c0_14] : memref<1x32xf32, #tpu.memory_space<vmem>>, vector<1x32xf32>
    %c0_15 = arith.constant 0 : index
    %c0_16 = arith.constant 0 : index
    %8 = vector.load %arg12[%c0_15, %c0_16] : memref<1x32xf32, #tpu.memory_space<vmem>>, vector<1x32xf32>
    %c0_17 = arith.constant 0 : index
    %c0_18 = arith.constant 0 : index
    %9 = vector.load %arg13[%c0_17, %c0_18] : memref<32x16xf32, #tpu.memory_space<vmem>>, vector<32x16xf32>
    %c0_19 = arith.constant 0 : index
    %c0_20 = arith.constant 0 : index
    %10 = vector.load %arg14[%c0_19, %c0_20] : memref<32x16xf32, #tpu.memory_space<vmem>>, vector<32x16xf32>
    %c0_21 = arith.constant 0 : index
    %c0_22 = arith.constant 0 : index
    %11 = vector.load %arg15[%c0_21, %c0_22] : memref<1x16xf32, #tpu.memory_space<vmem>>, vector<1x16xf32>
    %c0_23 = arith.constant 0 : index
    %c0_24 = arith.constant 0 : index
    %12 = vector.load %arg16[%c0_23, %c0_24] : memref<16x1xf32, #tpu.memory_space<vmem>>, vector<16x1xf32>
    %c0_25 = arith.constant 0 : index
    %c0_26 = arith.constant 0 : index
    %13 = vector.load %arg17[%c0_25, %c0_26] : memref<1x1xf32, #tpu.memory_space<vmem>>, vector<1x1xf32>
    %c0_27 = arith.constant 0 : index
    %c0_28 = arith.constant 0 : index
    %14 = vector.load %arg18[%c0_27, %c0_28] : memref<32x16xf32, #tpu.memory_space<vmem>>, vector<32x16xf32>
    %c0_29 = arith.constant 0 : index
    %c0_30 = arith.constant 0 : index
    %15 = vector.load %arg19[%c0_29, %c0_30] : memref<1x16xf32, #tpu.memory_space<vmem>>, vector<1x16xf32>
    %c0_31 = arith.constant 0 : index
    %c0_32 = arith.constant 0 : index
    %16 = vector.load %arg20[%c0_31, %c0_32] : memref<16x32xf32, #tpu.memory_space<vmem>>, vector<16x32xf32>
    %c0_33 = arith.constant 0 : index
    %c0_34 = arith.constant 0 : index
    %17 = vector.load %arg21[%c0_33, %c0_34] : memref<1x32xf32, #tpu.memory_space<vmem>>, vector<1x32xf32>
    %c0_35 = arith.constant 0 : index
    %c0_36 = arith.constant 0 : index
    %c0_37 = arith.constant 0 : index
    %18 = vector.load %arg1[%c0_35, %c0_36, %c0_37] : memref<2x8x32xf32, #tpu.memory_space<vmem>>, vector<1x8x32xf32>
    %19 = vector.shape_cast %18 : vector<1x8x32xf32> to vector<8x32xf32>
    %c0_38 = arith.constant 0 : index
    %c0_39 = arith.constant 0 : index
    %c0_40 = arith.constant 0 : index
    %20 = vector.load %arg2[%c0_38, %c0_39, %c0_40] : memref<2x8x32xf32, #tpu.memory_space<vmem>>, vector<1x8x32xf32>
    %21 = vector.shape_cast %20 : vector<1x8x32xf32> to vector<8x32xf32>
    %cst = arith.constant dense<0.000000e+00> : vector<8x32xf32>
    %22 = tpu.matmul %19, %0, %cst {dimension_numbers = #tpu.dot_dimension_numbers<[1], [0], [0], [1], [0, 0, 1, 1], [], []>} : vector<8x32xf32>, vector<32x32xf32>, vector<8x32xf32> -> vector<8x32xf32>
    %23 = vector.broadcast %3 : vector<1x32xf32> to vector<8x32xf32>
    %24 = arith.addf %22, %23 : vector<8x32xf32>
    %cst_41 = arith.constant dense<0.000000e+00> : vector<8x32xf32>
    %25 = tpu.matmul %21, %1, %cst_41 {dimension_numbers = #tpu.dot_dimension_numbers<[1], [0], [0], [1], [0, 0, 1, 1], [], []>} : vector<8x32xf32>, vector<32x32xf32>, vector<8x32xf32> -> vector<8x32xf32>
    %26 = vector.broadcast %4 : vector<1x32xf32> to vector<8x32xf32>
    %27 = arith.addf %25, %26 : vector<8x32xf32>
    %cst_42 = arith.constant dense<0.000000e+00> : vector<8x32xf32>
    %28 = tpu.matmul %21, %2, %cst_42 {dimension_numbers = #tpu.dot_dimension_numbers<[1], [0], [0], [1], [0, 0, 1, 1], [], []>} : vector<8x32xf32>, vector<32x32xf32>, vector<8x32xf32> -> vector<8x32xf32>
    %29 = vector.broadcast %5 : vector<1x32xf32> to vector<8x32xf32>
    %30 = arith.addf %28, %29 : vector<8x32xf32>
    %cst_43 = arith.constant 5.000000e-01 : f32
    %31 = vector.broadcast %cst_43 : f32 to vector<8x32xf32>
    %32 = arith.mulf %24, %31 : vector<8x32xf32>
    %cst_44 = arith.constant 0.000000e+00 : f32
    %33 = vector.broadcast %cst_44 : f32 to vector<8x32xf32>
    %34 = vector.broadcast %6 : vector<1x32xf32> to vector<8x32xf32>
    %35 = arith.addf %33, %34 : vector<8x32xf32>
    %36 = vector.extract_strided_slice %32 {offsets = [0, 0], sizes = [8, 4], strides = [1, 1]} : vector<8x32xf32> to vector<8x4xf32>
    %37 = vector.extract_strided_slice %27 {offsets = [0, 0], sizes = [8, 4], strides = [1, 1]} : vector<8x32xf32> to vector<8x4xf32>
    "tpu.trace_start"() <{level = 10 : i32, message = "qd,kd->qk"}> : () -> ()
    %cst_45 = arith.constant dense<0.000000e+00> : vector<8x8xf32>
    %38 = tpu.matmul %36, %37, %cst_45 {dimension_numbers = #tpu.dot_dimension_numbers<[1], [1], [0], [0], [0, 0, 1, 0], [], []>} : vector<8x4xf32>, vector<8x4xf32>, vector<8x8xf32> -> vector<8x8xf32>
    "tpu.trace_stop"() : () -> ()
    %cst_46 = arith.constant dense<0xFF800000> : vector<8xf32>
    %39 = vector.multi_reduction <maximumf>, %38, %cst_46 [1] : vector<8x8xf32> to vector<8xf32>
    %40 = vector.shape_cast %39 : vector<8xf32> to vector<8x1xf32>
    %41 = vector.broadcast %40 : vector<8x1xf32> to vector<8x8xf32>
    %42 = arith.subf %38, %41 : vector<8x8xf32>
    %43 = math.exp %42 : vector<8x8xf32>
    %cst_47 = arith.constant dense<0.000000e+00> : vector<8xf32>
    %44 = vector.multi_reduction <add>, %43, %cst_47 [1] : vector<8x8xf32> to vector<8xf32>
    %45 = vector.shape_cast %44 : vector<8xf32> to vector<8x1xf32>
    %46 = tpu.reciprocal %45 : vector<8x1xf32> -> vector<8x1xf32>
    %47 = vector.broadcast %46 : vector<8x1xf32> to vector<8x8xf32>
    %48 = arith.mulf %43, %47 : vector<8x8xf32>
    %49 = vector.extract_strided_slice %30 {offsets = [0, 0], sizes = [8, 4], strides = [1, 1]} : vector<8x32xf32> to vector<8x4xf32>
    %cst_48 = arith.constant dense<0.000000e+00> : vector<8x4xf32>
    %50 = tpu.matmul %48, %49, %cst_48 {dimension_numbers = #tpu.dot_dimension_numbers<[1], [0], [0], [1], [0, 0, 1, 1], [], []>} : vector<8x8xf32>, vector<8x4xf32>, vector<8x4xf32> -> vector<8x4xf32>
    %c0_49 = arith.constant 0 : index
    %c0_50 = arith.constant 0 : index
    %c0_51 = arith.constant 0 : index
    %51 = vector.load %arg9[%c0_49, %c0_50, %c0_51] : memref<8x4x32xf32, #tpu.memory_space<vmem>>, vector<1x4x32xf32>
    %52 = vector.shape_cast %51 : vector<1x4x32xf32> to vector<4x32xf32>
    %cst_52 = arith.constant dense<0.000000e+00> : vector<8x32xf32>
    %53 = tpu.matmul %50, %52, %cst_52 {dimension_numbers = #tpu.dot_dimension_numbers<[1], [0], [0], [1], [0, 0, 1, 1], [], []>} : vector<8x4xf32>, vector<4x32xf32>, vector<8x32xf32> -> vector<8x32xf32>
    %54 = arith.addf %35, %53 : vector<8x32xf32>
    %55 = vector.extract_strided_slice %32 {offsets = [0, 4], sizes = [8, 4], strides = [1, 1]} : vector<8x32xf32> to vector<8x4xf32>
    %56 = vector.extract_strided_slice %27 {offsets = [0, 4], sizes = [8, 4], strides = [1, 1]} : vector<8x32xf32> to vector<8x4xf32>
    "tpu.trace_start"() <{level = 10 : i32, message = "qd,kd->qk"}> : () -> ()
    %cst_53 = arith.constant dense<0.000000e+00> : vector<8x8xf32>
    %57 = tpu.matmul %55, %56, %cst_53 {dimension_numbers = #tpu.dot_dimension_numbers<[1], [1], [0], [0], [0, 0, 1, 0], [], []>} : vector<8x4xf32>, vector<8x4xf32>, vector<8x8xf32> -> vector<8x8xf32>
    "tpu.trace_stop"() : () -> ()
    %cst_54 = arith.constant dense<0xFF800000> : vector<8xf32>
    %58 = vector.multi_reduction <maximumf>, %57, %cst_54 [1] : vector<8x8xf32> to vector<8xf32>
    %59 = vector.shape_cast %58 : vector<8xf32> to vector<8x1xf32>
    %60 = vector.broadcast %59 : vector<8x1xf32> to vector<8x8xf32>
    %61 = arith.subf %57, %60 : vector<8x8xf32>
    %62 = math.exp %61 : vector<8x8xf32>
    %cst_55 = arith.constant dense<0.000000e+00> : vector<8xf32>
    %63 = vector.multi_reduction <add>, %62, %cst_55 [1] : vector<8x8xf32> to vector<8xf32>
    %64 = vector.shape_cast %63 : vector<8xf32> to vector<8x1xf32>
    %65 = tpu.reciprocal %64 : vector<8x1xf32> -> vector<8x1xf32>
    %66 = vector.broadcast %65 : vector<8x1xf32> to vector<8x8xf32>
    %67 = arith.mulf %62, %66 : vector<8x8xf32>
    %68 = vector.extract_strided_slice %30 {offsets = [0, 4], sizes = [8, 4], strides = [1, 1]} : vector<8x32xf32> to vector<8x4xf32>
    %cst_56 = arith.constant dense<0.000000e+00> : vector<8x4xf32>
    %69 = tpu.matmul %67, %68, %cst_56 {dimension_numbers = #tpu.dot_dimension_numbers<[1], [0], [0], [1], [0, 0, 1, 1], [], []>} : vector<8x8xf32>, vector<8x4xf32>, vector<8x4xf32> -> vector<8x4xf32>
    %c1 = arith.constant 1 : index
    %c0_57 = arith.constant 0 : index
    %c0_58 = arith.constant 0 : index
    %70 = vector.load %arg9[%c1, %c0_57, %c0_58] : memref<8x4x32xf32, #tpu.memory_space<vmem>>, vector<1x4x32xf32>
    %71 = vector.shape_cast %70 : vector<1x4x32xf32> to vector<4x32xf32>
    %cst_59 = arith.constant dense<0.000000e+00> : vector<8x32xf32>
    %72 = tpu.matmul %69, %71, %cst_59 {dimension_numbers = #tpu.dot_dimension_numbers<[1], [0], [0], [1], [0, 0, 1, 1], [], []>} : vector<8x4xf32>, vector<4x32xf32>, vector<8x32xf32> -> vector<8x32xf32>
    %73 = arith.addf %54, %72 : vector<8x32xf32>
    %74 = vector.extract_strided_slice %32 {offsets = [0, 8], sizes = [8, 4], strides = [1, 1]} : vector<8x32xf32> to vector<8x4xf32>
    %75 = vector.extract_strided_slice %27 {offsets = [0, 8], sizes = [8, 4], strides = [1, 1]} : vector<8x32xf32> to vector<8x4xf32>
    "tpu.trace_start"() <{level = 10 : i32, message = "qd,kd->qk"}> : () -> ()
    %cst_60 = arith.constant dense<0.000000e+00> : vector<8x8xf32>
    %76 = tpu.matmul %74, %75, %cst_60 {dimension_numbers = #tpu.dot_dimension_numbers<[1], [1], [0], [0], [0, 0, 1, 0], [], []>} : vector<8x4xf32>, vector<8x4xf32>, vector<8x8xf32> -> vector<8x8xf32>
    "tpu.trace_stop"() : () -> ()
    %cst_61 = arith.constant dense<0xFF800000> : vector<8xf32>
    %77 = vector.multi_reduction <maximumf>, %76, %cst_61 [1] : vector<8x8xf32> to vector<8xf32>
    %78 = vector.shape_cast %77 : vector<8xf32> to vector<8x1xf32>
    %79 = vector.broadcast %78 : vector<8x1xf32> to vector<8x8xf32>
    %80 = arith.subf %76, %79 : vector<8x8xf32>
    %81 = math.exp %80 : vector<8x8xf32>
    %cst_62 = arith.constant dense<0.000000e+00> : vector<8xf32>
    %82 = vector.multi_reduction <add>, %81, %cst_62 [1] : vector<8x8xf32> to vector<8xf32>
    %83 = vector.shape_cast %82 : vector<8xf32> to vector<8x1xf32>
    %84 = tpu.reciprocal %83 : vector<8x1xf32> -> vector<8x1xf32>
    %85 = vector.broadcast %84 : vector<8x1xf32> to vector<8x8xf32>
    %86 = arith.mulf %81, %85 : vector<8x8xf32>
    %87 = vector.extract_strided_slice %30 {offsets = [0, 8], sizes = [8, 4], strides = [1, 1]} : vector<8x32xf32> to vector<8x4xf32>
    %cst_63 = arith.constant dense<0.000000e+00> : vector<8x4xf32>
    %88 = tpu.matmul %86, %87, %cst_63 {dimension_numbers = #tpu.dot_dimension_numbers<[1], [0], [0], [1], [0, 0, 1, 1], [], []>} : vector<8x8xf32>, vector<8x4xf32>, vector<8x4xf32> -> vector<8x4xf32>
    %c2 = arith.constant 2 : index
    %c0_64 = arith.constant 0 : index
    %c0_65 = arith.constant 0 : index
    %89 = vector.load %arg9[%c2, %c0_64, %c0_65] : memref<8x4x32xf32, #tpu.memory_space<vmem>>, vector<1x4x32xf32>
    %90 = vector.shape_cast %89 : vector<1x4x32xf32> to vector<4x32xf32>
    %cst_66 = arith.constant dense<0.000000e+00> : vector<8x32xf32>
    %91 = tpu.matmul %88, %90, %cst_66 {dimension_numbers = #tpu.dot_dimension_numbers<[1], [0], [0], [1], [0, 0, 1, 1], [], []>} : vector<8x4xf32>, vector<4x32xf32>, vector<8x32xf32> -> vector<8x32xf32>
    %92 = arith.addf %73, %91 : vector<8x32xf32>
    %93 = vector.extract_strided_slice %32 {offsets = [0, 12], sizes = [8, 4], strides = [1, 1]} : vector<8x32xf32> to vector<8x4xf32>
    %94 = vector.extract_strided_slice %27 {offsets = [0, 12], sizes = [8, 4], strides = [1, 1]} : vector<8x32xf32> to vector<8x4xf32>
    "tpu.trace_start"() <{level = 10 : i32, message = "qd,kd->qk"}> : () -> ()
    %cst_67 = arith.constant dense<0.000000e+00> : vector<8x8xf32>
    %95 = tpu.matmul %93, %94, %cst_67 {dimension_numbers = #tpu.dot_dimension_numbers<[1], [1], [0], [0], [0, 0, 1, 0], [], []>} : vector<8x4xf32>, vector<8x4xf32>, vector<8x8xf32> -> vector<8x8xf32>
    "tpu.trace_stop"() : () -> ()
    %cst_68 = arith.constant dense<0xFF800000> : vector<8xf32>
    %96 = vector.multi_reduction <maximumf>, %95, %cst_68 [1] : vector<8x8xf32> to vector<8xf32>
    %97 = vector.shape_cast %96 : vector<8xf32> to vector<8x1xf32>
    %98 = vector.broadcast %97 : vector<8x1xf32> to vector<8x8xf32>
    %99 = arith.subf %95, %98 : vector<8x8xf32>
    %100 = math.exp %99 : vector<8x8xf32>
    %cst_69 = arith.constant dense<0.000000e+00> : vector<8xf32>
    %101 = vector.multi_reduction <add>, %100, %cst_69 [1] : vector<8x8xf32> to vector<8xf32>
    %102 = vector.shape_cast %101 : vector<8xf32> to vector<8x1xf32>
    %103 = tpu.reciprocal %102 : vector<8x1xf32> -> vector<8x1xf32>
    %104 = vector.broadcast %103 : vector<8x1xf32> to vector<8x8xf32>
    %105 = arith.mulf %100, %104 : vector<8x8xf32>
    %106 = vector.extract_strided_slice %30 {offsets = [0, 12], sizes = [8, 4], strides = [1, 1]} : vector<8x32xf32> to vector<8x4xf32>
    %cst_70 = arith.constant dense<0.000000e+00> : vector<8x4xf32>
    %107 = tpu.matmul %105, %106, %cst_70 {dimension_numbers = #tpu.dot_dimension_numbers<[1], [0], [0], [1], [0, 0, 1, 1], [], []>} : vector<8x8xf32>, vector<8x4xf32>, vector<8x4xf32> -> vector<8x4xf32>
    %c3 = arith.constant 3 : index
    %c0_71 = arith.constant 0 : index
    %c0_72 = arith.constant 0 : index
    %108 = vector.load %arg9[%c3, %c0_71, %c0_72] : memref<8x4x32xf32, #tpu.memory_space<vmem>>, vector<1x4x32xf32>
    %109 = vector.shape_cast %108 : vector<1x4x32xf32> to vector<4x32xf32>
    %cst_73 = arith.constant dense<0.000000e+00> : vector<8x32xf32>
    %110 = tpu.matmul %107, %109, %cst_73 {dimension_numbers = #tpu.dot_dimension_numbers<[1], [0], [0], [1], [0, 0, 1, 1], [], []>} : vector<8x4xf32>, vector<4x32xf32>, vector<8x32xf32> -> vector<8x32xf32>
    %111 = arith.addf %92, %110 : vector<8x32xf32>
    %112 = vector.extract_strided_slice %32 {offsets = [0, 16], sizes = [8, 4], strides = [1, 1]} : vector<8x32xf32> to vector<8x4xf32>
    %113 = vector.extract_strided_slice %27 {offsets = [0, 16], sizes = [8, 4], strides = [1, 1]} : vector<8x32xf32> to vector<8x4xf32>
    "tpu.trace_start"() <{level = 10 : i32, message = "qd,kd->qk"}> : () -> ()
    %cst_74 = arith.constant dense<0.000000e+00> : vector<8x8xf32>
    %114 = tpu.matmul %112, %113, %cst_74 {dimension_numbers = #tpu.dot_dimension_numbers<[1], [1], [0], [0], [0, 0, 1, 0], [], []>} : vector<8x4xf32>, vector<8x4xf32>, vector<8x8xf32> -> vector<8x8xf32>
    "tpu.trace_stop"() : () -> ()
    %cst_75 = arith.constant dense<0xFF800000> : vector<8xf32>
    %115 = vector.multi_reduction <maximumf>, %114, %cst_75 [1] : vector<8x8xf32> to vector<8xf32>
    %116 = vector.shape_cast %115 : vector<8xf32> to vector<8x1xf32>
    %117 = vector.broadcast %116 : vector<8x1xf32> to vector<8x8xf32>
    %118 = arith.subf %114, %117 : vector<8x8xf32>
    %119 = math.exp %118 : vector<8x8xf32>
    %cst_76 = arith.constant dense<0.000000e+00> : vector<8xf32>
    %120 = vector.multi_reduction <add>, %119, %cst_76 [1] : vector<8x8xf32> to vector<8xf32>
    %121 = vector.shape_cast %120 : vector<8xf32> to vector<8x1xf32>
    %122 = tpu.reciprocal %121 : vector<8x1xf32> -> vector<8x1xf32>
    %123 = vector.broadcast %122 : vector<8x1xf32> to vector<8x8xf32>
    %124 = arith.mulf %119, %123 : vector<8x8xf32>
    %125 = vector.extract_strided_slice %30 {offsets = [0, 16], sizes = [8, 4], strides = [1, 1]} : vector<8x32xf32> to vector<8x4xf32>
    %cst_77 = arith.constant dense<0.000000e+00> : vector<8x4xf32>
    %126 = tpu.matmul %124, %125, %cst_77 {dimension_numbers = #tpu.dot_dimension_numbers<[1], [0], [0], [1], [0, 0, 1, 1], [], []>} : vector<8x8xf32>, vector<8x4xf32>, vector<8x4xf32> -> vector<8x4xf32>
    %c4 = arith.constant 4 : index
    %c0_78 = arith.constant 0 : index
    %c0_79 = arith.constant 0 : index
    %127 = vector.load %arg9[%c4, %c0_78, %c0_79] : memref<8x4x32xf32, #tpu.memory_space<vmem>>, vector<1x4x32xf32>
    %128 = vector.shape_cast %127 : vector<1x4x32xf32> to vector<4x32xf32>
    %cst_80 = arith.constant dense<0.000000e+00> : vector<8x32xf32>
    %129 = tpu.matmul %126, %128, %cst_80 {dimension_numbers = #tpu.dot_dimension_numbers<[1], [0], [0], [1], [0, 0, 1, 1], [], []>} : vector<8x4xf32>, vector<4x32xf32>, vector<8x32xf32> -> vector<8x32xf32>
    %130 = arith.addf %111, %129 : vector<8x32xf32>
    %131 = vector.extract_strided_slice %32 {offsets = [0, 20], sizes = [8, 4], strides = [1, 1]} : vector<8x32xf32> to vector<8x4xf32>
    %132 = vector.extract_strided_slice %27 {offsets = [0, 20], sizes = [8, 4], strides = [1, 1]} : vector<8x32xf32> to vector<8x4xf32>
    "tpu.trace_start"() <{level = 10 : i32, message = "qd,kd->qk"}> : () -> ()
    %cst_81 = arith.constant dense<0.000000e+00> : vector<8x8xf32>
    %133 = tpu.matmul %131, %132, %cst_81 {dimension_numbers = #tpu.dot_dimension_numbers<[1], [1], [0], [0], [0, 0, 1, 0], [], []>} : vector<8x4xf32>, vector<8x4xf32>, vector<8x8xf32> -> vector<8x8xf32>
    "tpu.trace_stop"() : () -> ()
    %cst_82 = arith.constant dense<0xFF800000> : vector<8xf32>
    %134 = vector.multi_reduction <maximumf>, %133, %cst_82 [1] : vector<8x8xf32> to vector<8xf32>
    %135 = vector.shape_cast %134 : vector<8xf32> to vector<8x1xf32>
    %136 = vector.broadcast %135 : vector<8x1xf32> to vector<8x8xf32>
    %137 = arith.subf %133, %136 : vector<8x8xf32>
    %138 = math.exp %137 : vector<8x8xf32>
    %cst_83 = arith.constant dense<0.000000e+00> : vector<8xf32>
    %139 = vector.multi_reduction <add>, %138, %cst_83 [1] : vector<8x8xf32> to vector<8xf32>
    %140 = vector.shape_cast %139 : vector<8xf32> to vector<8x1xf32>
    %141 = tpu.reciprocal %140 : vector<8x1xf32> -> vector<8x1xf32>
    %142 = vector.broadcast %141 : vector<8x1xf32> to vector<8x8xf32>
    %143 = arith.mulf %138, %142 : vector<8x8xf32>
    %144 = vector.extract_strided_slice %30 {offsets = [0, 20], sizes = [8, 4], strides = [1, 1]} : vector<8x32xf32> to vector<8x4xf32>
    %cst_84 = arith.constant dense<0.000000e+00> : vector<8x4xf32>
    %145 = tpu.matmul %143, %144, %cst_84 {dimension_numbers = #tpu.dot_dimension_numbers<[1], [0], [0], [1], [0, 0, 1, 1], [], []>} : vector<8x8xf32>, vector<8x4xf32>, vector<8x4xf32> -> vector<8x4xf32>
    %c5 = arith.constant 5 : index
    %c0_85 = arith.constant 0 : index
    %c0_86 = arith.constant 0 : index
    %146 = vector.load %arg9[%c5, %c0_85, %c0_86] : memref<8x4x32xf32, #tpu.memory_space<vmem>>, vector<1x4x32xf32>
    %147 = vector.shape_cast %146 : vector<1x4x32xf32> to vector<4x32xf32>
    %cst_87 = arith.constant dense<0.000000e+00> : vector<8x32xf32>
    %148 = tpu.matmul %145, %147, %cst_87 {dimension_numbers = #tpu.dot_dimension_numbers<[1], [0], [0], [1], [0, 0, 1, 1], [], []>} : vector<8x4xf32>, vector<4x32xf32>, vector<8x32xf32> -> vector<8x32xf32>
    %149 = arith.addf %130, %148 : vector<8x32xf32>
    %150 = vector.extract_strided_slice %32 {offsets = [0, 24], sizes = [8, 4], strides = [1, 1]} : vector<8x32xf32> to vector<8x4xf32>
    %151 = vector.extract_strided_slice %27 {offsets = [0, 24], sizes = [8, 4], strides = [1, 1]} : vector<8x32xf32> to vector<8x4xf32>
    "tpu.trace_start"() <{level = 10 : i32, message = "qd,kd->qk"}> : () -> ()
    %cst_88 = arith.constant dense<0.000000e+00> : vector<8x8xf32>
    %152 = tpu.matmul %150, %151, %cst_88 {dimension_numbers = #tpu.dot_dimension_numbers<[1], [1], [0], [0], [0, 0, 1, 0], [], []>} : vector<8x4xf32>, vector<8x4xf32>, vector<8x8xf32> -> vector<8x8xf32>
    "tpu.trace_stop"() : () -> ()
    %cst_89 = arith.constant dense<0xFF800000> : vector<8xf32>
    %153 = vector.multi_reduction <maximumf>, %152, %cst_89 [1] : vector<8x8xf32> to vector<8xf32>
    %154 = vector.shape_cast %153 : vector<8xf32> to vector<8x1xf32>
    %155 = vector.broadcast %154 : vector<8x1xf32> to vector<8x8xf32>
    %156 = arith.subf %152, %155 : vector<8x8xf32>
    %157 = math.exp %156 : vector<8x8xf32>
    %cst_90 = arith.constant dense<0.000000e+00> : vector<8xf32>
    %158 = vector.multi_reduction <add>, %157, %cst_90 [1] : vector<8x8xf32> to vector<8xf32>
    %159 = vector.shape_cast %158 : vector<8xf32> to vector<8x1xf32>
    %160 = tpu.reciprocal %159 : vector<8x1xf32> -> vector<8x1xf32>
    %161 = vector.broadcast %160 : vector<8x1xf32> to vector<8x8xf32>
    %162 = arith.mulf %157, %161 : vector<8x8xf32>
    %163 = vector.extract_strided_slice %30 {offsets = [0, 24], sizes = [8, 4], strides = [1, 1]} : vector<8x32xf32> to vector<8x4xf32>
    %cst_91 = arith.constant dense<0.000000e+00> : vector<8x4xf32>
    %164 = tpu.matmul %162, %163, %cst_91 {dimension_numbers = #tpu.dot_dimension_numbers<[1], [0], [0], [1], [0, 0, 1, 1], [], []>} : vector<8x8xf32>, vector<8x4xf32>, vector<8x4xf32> -> vector<8x4xf32>
    %c6 = arith.constant 6 : index
    %c0_92 = arith.constant 0 : index
    %c0_93 = arith.constant 0 : index
    %165 = vector.load %arg9[%c6, %c0_92, %c0_93] : memref<8x4x32xf32, #tpu.memory_space<vmem>>, vector<1x4x32xf32>
    %166 = vector.shape_cast %165 : vector<1x4x32xf32> to vector<4x32xf32>
    %cst_94 = arith.constant dense<0.000000e+00> : vector<8x32xf32>
    %167 = tpu.matmul %164, %166, %cst_94 {dimension_numbers = #tpu.dot_dimension_numbers<[1], [0], [0], [1], [0, 0, 1, 1], [], []>} : vector<8x4xf32>, vector<4x32xf32>, vector<8x32xf32> -> vector<8x32xf32>
    %168 = arith.addf %149, %167 : vector<8x32xf32>
    %169 = vector.extract_strided_slice %32 {offsets = [0, 28], sizes = [8, 4], strides = [1, 1]} : vector<8x32xf32> to vector<8x4xf32>
    %170 = vector.extract_strided_slice %27 {offsets = [0, 28], sizes = [8, 4], strides = [1, 1]} : vector<8x32xf32> to vector<8x4xf32>
    "tpu.trace_start"() <{level = 10 : i32, message = "qd,kd->qk"}> : () -> ()
    %cst_95 = arith.constant dense<0.000000e+00> : vector<8x8xf32>
    %171 = tpu.matmul %169, %170, %cst_95 {dimension_numbers = #tpu.dot_dimension_numbers<[1], [1], [0], [0], [0, 0, 1, 0], [], []>} : vector<8x4xf32>, vector<8x4xf32>, vector<8x8xf32> -> vector<8x8xf32>
    "tpu.trace_stop"() : () -> ()
    %cst_96 = arith.constant dense<0xFF800000> : vector<8xf32>
    %172 = vector.multi_reduction <maximumf>, %171, %cst_96 [1] : vector<8x8xf32> to vector<8xf32>
    %173 = vector.shape_cast %172 : vector<8xf32> to vector<8x1xf32>
    %174 = vector.broadcast %173 : vector<8x1xf32> to vector<8x8xf32>
    %175 = arith.subf %171, %174 : vector<8x8xf32>
    %176 = math.exp %175 : vector<8x8xf32>
    %cst_97 = arith.constant dense<0.000000e+00> : vector<8xf32>
    %177 = vector.multi_reduction <add>, %176, %cst_97 [1] : vector<8x8xf32> to vector<8xf32>
    %178 = vector.shape_cast %177 : vector<8xf32> to vector<8x1xf32>
    %179 = tpu.reciprocal %178 : vector<8x1xf32> -> vector<8x1xf32>
    %180 = vector.broadcast %179 : vector<8x1xf32> to vector<8x8xf32>
    %181 = arith.mulf %176, %180 : vector<8x8xf32>
    %182 = vector.extract_strided_slice %30 {offsets = [0, 28], sizes = [8, 4], strides = [1, 1]} : vector<8x32xf32> to vector<8x4xf32>
    %cst_98 = arith.constant dense<0.000000e+00> : vector<8x4xf32>
    %183 = tpu.matmul %181, %182, %cst_98 {dimension_numbers = #tpu.dot_dimension_numbers<[1], [0], [0], [1], [0, 0, 1, 1], [], []>} : vector<8x8xf32>, vector<8x4xf32>, vector<8x4xf32> -> vector<8x4xf32>
    %c7 = arith.constant 7 : index
    %c0_99 = arith.constant 0 : index
    %c0_100 = arith.constant 0 : index
    %184 = vector.load %arg9[%c7, %c0_99, %c0_100] : memref<8x4x32xf32, #tpu.memory_space<vmem>>, vector<1x4x32xf32>
    %185 = vector.shape_cast %184 : vector<1x4x32xf32> to vector<4x32xf32>
    %cst_101 = arith.constant dense<0.000000e+00> : vector<8x32xf32>
    %186 = tpu.matmul %183, %185, %cst_101 {dimension_numbers = #tpu.dot_dimension_numbers<[1], [0], [0], [1], [0, 0, 1, 1], [], []>} : vector<8x4xf32>, vector<4x32xf32>, vector<8x32xf32> -> vector<8x32xf32>
    %187 = arith.addf %168, %186 : vector<8x32xf32>
    %cst_102 = arith.constant dense<0.000000e+00> : vector<8xf32>
    %188 = vector.multi_reduction <add>, %187, %cst_102 [1] : vector<8x32xf32> to vector<8xf32>
    %189 = vector.shape_cast %188 : vector<8xf32> to vector<8x1xf32>
    %cst_103 = arith.constant 3.200000e+01 : f32
    %190 = vector.broadcast %cst_103 : f32 to vector<8x1xf32>
    %191 = arith.divf %189, %190 : vector<8x1xf32>
    %192 = vector.broadcast %191 : vector<8x1xf32> to vector<8x32xf32>
    %193 = arith.subf %187, %192 : vector<8x32xf32>
    %194 = arith.mulf %193, %193 : vector<8x32xf32>
    %cst_104 = arith.constant dense<0.000000e+00> : vector<8xf32>
    %195 = vector.multi_reduction <add>, %194, %cst_104 [1] : vector<8x32xf32> to vector<8xf32>
    %196 = vector.shape_cast %195 : vector<8xf32> to vector<8x1xf32>
    %cst_105 = arith.constant 3.200000e+01 : f32
    %197 = vector.broadcast %cst_105 : f32 to vector<8x1xf32>
    %198 = arith.divf %196, %197 : vector<8x1xf32>
    %199 = vector.broadcast %191 : vector<8x1xf32> to vector<8x32xf32>
    %200 = arith.subf %187, %199 : vector<8x32xf32>
    %cst_106 = arith.constant 9.99999974E-6 : f32
    %201 = vector.broadcast %cst_106 : f32 to vector<8x1xf32>
    %202 = arith.addf %198, %201 : vector<8x1xf32>
    %203 = math.rsqrt %202 : vector<8x1xf32>
    %204 = vector.broadcast %203 : vector<8x1xf32> to vector<8x32xf32>
    %205 = arith.mulf %200, %204 : vector<8x32xf32>
    %206 = vector.broadcast %7 : vector<1x32xf32> to vector<8x32xf32>
    %207 = arith.mulf %205, %206 : vector<8x32xf32>
    %208 = vector.broadcast %8 : vector<1x32xf32> to vector<8x32xf32>
    %209 = arith.addf %207, %208 : vector<8x32xf32>
    %cst_107 = arith.constant dense<0xFF800000> : vector<32xf32>
    %210 = vector.multi_reduction <maximumf>, %209, %cst_107 [0] : vector<8x32xf32> to vector<32xf32>
    %211 = vector.shape_cast %210 : vector<32xf32> to vector<1x32xf32>
    %cst_108 = arith.constant dense<0.000000e+00> : vector<32xf32>
    %212 = vector.multi_reduction <add>, %19, %cst_108 [0] : vector<8x32xf32> to vector<32xf32>
    %213 = vector.shape_cast %212 : vector<32xf32> to vector<1x32xf32>
    %cst_109 = arith.constant 8.000000e+00 : f32
    %214 = vector.broadcast %cst_109 : f32 to vector<1x32xf32>
    %215 = arith.divf %213, %214 : vector<1x32xf32>
    %cst_110 = arith.constant dense<0.000000e+00> : vector<1x16xf32>
    %216 = tpu.matmul %211, %9, %cst_110 {dimension_numbers = #tpu.dot_dimension_numbers<[1], [0], [0], [1], [0, 0, 1, 1], [], []>} : vector<1x32xf32>, vector<32x16xf32>, vector<1x16xf32> -> vector<1x16xf32>
    %cst_111 = arith.constant dense<0.000000e+00> : vector<1x16xf32>
    %217 = tpu.matmul %215, %10, %cst_111 {dimension_numbers = #tpu.dot_dimension_numbers<[1], [0], [0], [1], [0, 0, 1, 1], [], []>} : vector<1x32xf32>, vector<32x16xf32>, vector<1x16xf32> -> vector<1x16xf32>
    %218 = arith.addf %216, %217 : vector<1x16xf32>
    %219 = arith.addf %218, %11 : vector<1x16xf32>
    %cst_112 = arith.constant 0.000000e+00 : f32
    %220 = vector.broadcast %cst_112 : f32 to vector<1x16xf32>
    %221 = arith.maximumf %219, %220 : vector<1x16xf32>
    %cst_113 = arith.constant dense<0.000000e+00> : vector<1x1xf32>
    %222 = tpu.matmul %221, %12, %cst_113 {dimension_numbers = #tpu.dot_dimension_numbers<[1], [0], [0], [1], [0, 0, 1, 1], [], []>} : vector<1x16xf32>, vector<16x1xf32>, vector<1x1xf32> -> vector<1x1xf32>
    %223 = arith.addf %222, %13 : vector<1x1xf32>
    %224 = arith.negf %223 : vector<1x1xf32>
    %225 = math.exp %224 : vector<1x1xf32>
    %cst_114 = arith.constant 1.000000e+00 : f32
    %226 = vector.broadcast %cst_114 : f32 to vector<1x1xf32>
    %227 = arith.addf %226, %225 : vector<1x1xf32>
    %228 = arith.divf %226, %227 : vector<1x1xf32>
    %cst_115 = arith.constant dense<0.000000e+00> : vector<8x16xf32>
    %229 = tpu.matmul %209, %14, %cst_115 {dimension_numbers = #tpu.dot_dimension_numbers<[1], [0], [0], [1], [0, 0, 1, 1], [], []>} : vector<8x32xf32>, vector<32x16xf32>, vector<8x16xf32> -> vector<8x16xf32>
    %230 = vector.broadcast %15 : vector<1x16xf32> to vector<8x16xf32>
    %231 = arith.addf %229, %230 : vector<8x16xf32>
    %cst_116 = arith.constant 0.000000e+00 : f32
    %232 = vector.broadcast %cst_116 : f32 to vector<8x16xf32>
    %233 = arith.maximumf %231, %232 : vector<8x16xf32>
    %cst_117 = arith.constant dense<0.000000e+00> : vector<8x32xf32>
    %234 = tpu.matmul %233, %16, %cst_117 {dimension_numbers = #tpu.dot_dimension_numbers<[1], [0], [0], [1], [0, 0, 1, 1], [], []>} : vector<8x16xf32>, vector<16x32xf32>, vector<8x32xf32> -> vector<8x32xf32>
    %235 = vector.broadcast %17 : vector<1x32xf32> to vector<8x32xf32>
    %236 = arith.addf %234, %235 : vector<8x32xf32>
    %237 = arith.negf %236 : vector<8x32xf32>
    %238 = math.exp %237 : vector<8x32xf32>
    %cst_118 = arith.constant 1.000000e+00 : f32
    %239 = vector.broadcast %cst_118 : f32 to vector<8x32xf32>
    %240 = arith.addf %239, %238 : vector<8x32xf32>
    %241 = arith.divf %239, %240 : vector<8x32xf32>
    %242 = arith.mulf %209, %241 : vector<8x32xf32>
    %cst_119 = arith.constant 1.000000e+00 : f32
    %243 = vector.broadcast %cst_119 : f32 to vector<1x1xf32>
    %244 = arith.subf %243, %228 : vector<1x1xf32>
    %245 = vector.broadcast %244 : vector<1x1xf32> to vector<8x32xf32>
    %246 = arith.mulf %242, %245 : vector<8x32xf32>
    %247 = arith.addf %19, %246 : vector<8x32xf32>
    %c0_120 = arith.constant 0 : index
    %c0_121 = arith.constant 0 : index
    %c0_122 = arith.constant 0 : index
    %248 = vector.load %arg22[%c0_120, %c0_121, %c0_122] : memref<2x8x32xf32, #tpu.memory_space<vmem>>, vector<1x8x32xf32>
    %249 = vector.shape_cast %248 : vector<1x8x32xf32> to vector<8x32xf32>
    %250 = vector.shape_cast %247 : vector<8x32xf32> to vector<1x8x32xf32>
    tpu.vector_store %arg22[%c0_120, %c0_121, %c0_122], %250 {strides = array<i32>} : memref<2x8x32xf32, #tpu.memory_space<vmem>>, vector<1x8x32xf32>,
    %c1_123 = arith.constant 1 : index
    %c0_124 = arith.constant 0 : index
    %c0_125 = arith.constant 0 : index
    %251 = vector.load %arg1[%c1_123, %c0_124, %c0_125] : memref<2x8x32xf32, #tpu.memory_space<vmem>>, vector<1x8x32xf32>
    %252 = vector.shape_cast %251 : vector<1x8x32xf32> to vector<8x32xf32>
    %c1_126 = arith.constant 1 : index
    %c0_127 = arith.constant 0 : index
    %c0_128 = arith.constant 0 : index
    %253 = vector.load %arg2[%c1_126, %c0_127, %c0_128] : memref<2x8x32xf32, #tpu.memory_space<vmem>>, vector<1x8x32xf32>
    %254 = vector.shape_cast %253 : vector<1x8x32xf32> to vector<8x32xf32>
    %cst_129 = arith.constant dense<0.000000e+00> : vector<8x32xf32>
    %255 = tpu.matmul %252, %0, %cst_129 {dimension_numbers = #tpu.dot_dimension_numbers<[1], [0], [0], [1], [0, 0, 1, 1], [], []>} : vector<8x32xf32>, vector<32x32xf32>, vector<8x32xf32> -> vector<8x32xf32>
    %256 = vector.broadcast %3 : vector<1x32xf32> to vector<8x32xf32>
    %257 = arith.addf %255, %256 : vector<8x32xf32>
    %cst_130 = arith.constant dense<0.000000e+00> : vector<8x32xf32>
    %258 = tpu.matmul %254, %1, %cst_130 {dimension_numbers = #tpu.dot_dimension_numbers<[1], [0], [0], [1], [0, 0, 1, 1], [], []>} : vector<8x32xf32>, vector<32x32xf32>, vector<8x32xf32> -> vector<8x32xf32>
    %259 = vector.broadcast %4 : vector<1x32xf32> to vector<8x32xf32>
    %260 = arith.addf %258, %259 : vector<8x32xf32>
    %cst_131 = arith.constant dense<0.000000e+00> : vector<8x32xf32>
    %261 = tpu.matmul %254, %2, %cst_131 {dimension_numbers = #tpu.dot_dimension_numbers<[1], [0], [0], [1], [0, 0, 1, 1], [], []>} : vector<8x32xf32>, vector<32x32xf32>, vector<8x32xf32> -> vector<8x32xf32>
    %262 = vector.broadcast %5 : vector<1x32xf32> to vector<8x32xf32>
    %263 = arith.addf %261, %262 : vector<8x32xf32>
    %cst_132 = arith.constant 5.000000e-01 : f32
    %264 = vector.broadcast %cst_132 : f32 to vector<8x32xf32>
    %265 = arith.mulf %257, %264 : vector<8x32xf32>
    %cst_133 = arith.constant 0.000000e+00 : f32
    %266 = vector.broadcast %cst_133 : f32 to vector<8x32xf32>
    %267 = vector.broadcast %6 : vector<1x32xf32> to vector<8x32xf32>
    %268 = arith.addf %266, %267 : vector<8x32xf32>
    %269 = vector.extract_strided_slice %265 {offsets = [0, 0], sizes = [8, 4], strides = [1, 1]} : vector<8x32xf32> to vector<8x4xf32>
    %270 = vector.extract_strided_slice %260 {offsets = [0, 0], sizes = [8, 4], strides = [1, 1]} : vector<8x32xf32> to vector<8x4xf32>
    "tpu.trace_start"() <{level = 10 : i32, message = "qd,kd->qk"}> : () -> ()
    %cst_134 = arith.constant dense<0.000000e+00> : vector<8x8xf32>
    %271 = tpu.matmul %269, %270, %cst_134 {dimension_numbers = #tpu.dot_dimension_numbers<[1], [1], [0], [0], [0, 0, 1, 0], [], []>} : vector<8x4xf32>, vector<8x4xf32>, vector<8x8xf32> -> vector<8x8xf32>
    "tpu.trace_stop"() : () -> ()
    %cst_135 = arith.constant dense<0xFF800000> : vector<8xf32>
    %272 = vector.multi_reduction <maximumf>, %271, %cst_135 [1] : vector<8x8xf32> to vector<8xf32>
    %273 = vector.shape_cast %272 : vector<8xf32> to vector<8x1xf32>
    %274 = vector.broadcast %273 : vector<8x1xf32> to vector<8x8xf32>
    %275 = arith.subf %271, %274 : vector<8x8xf32>
    %276 = math.exp %275 : vector<8x8xf32>
    %cst_136 = arith.constant dense<0.000000e+00> : vector<8xf32>
    %277 = vector.multi_reduction <add>, %276, %cst_136 [1] : vector<8x8xf32> to vector<8xf32>
    %278 = vector.shape_cast %277 : vector<8xf32> to vector<8x1xf32>
    %279 = tpu.reciprocal %278 : vector<8x1xf32> -> vector<8x1xf32>
    %280 = vector.broadcast %279 : vector<8x1xf32> to vector<8x8xf32>
    %281 = arith.mulf %276, %280 : vector<8x8xf32>
    %282 = vector.extract_strided_slice %263 {offsets = [0, 0], sizes = [8, 4], strides = [1, 1]} : vector<8x32xf32> to vector<8x4xf32>
    %cst_137 = arith.constant dense<0.000000e+00> : vector<8x4xf32>
    %283 = tpu.matmul %281, %282, %cst_137 {dimension_numbers = #tpu.dot_dimension_numbers<[1], [0], [0], [1], [0, 0, 1, 1], [], []>} : vector<8x8xf32>, vector<8x4xf32>, vector<8x4xf32> -> vector<8x4xf32>
    %c0_138 = arith.constant 0 : index
    %c0_139 = arith.constant 0 : index
    %c0_140 = arith.constant 0 : index
    %284 = vector.load %arg9[%c0_138, %c0_139, %c0_140] : memref<8x4x32xf32, #tpu.memory_space<vmem>>, vector<1x4x32xf32>
    %285 = vector.shape_cast %284 : vector<1x4x32xf32> to vector<4x32xf32>
    %cst_141 = arith.constant dense<0.000000e+00> : vector<8x32xf32>
    %286 = tpu.matmul %283, %285, %cst_141 {dimension_numbers = #tpu.dot_dimension_numbers<[1], [0], [0], [1], [0, 0, 1, 1], [], []>} : vector<8x4xf32>, vector<4x32xf32>, vector<8x32xf32> -> vector<8x32xf32>
    %287 = arith.addf %268, %286 : vector<8x32xf32>
    %288 = vector.extract_strided_slice %265 {offsets = [0, 4], sizes = [8, 4], strides = [1, 1]} : vector<8x32xf32> to vector<8x4xf32>
    %289 = vector.extract_strided_slice %260 {offsets = [0, 4], sizes = [8, 4], strides = [1, 1]} : vector<8x32xf32> to vector<8x4xf32>
    "tpu.trace_start"() <{level = 10 : i32, message = "qd,kd->qk"}> : () -> ()
    %cst_142 = arith.constant dense<0.000000e+00> : vector<8x8xf32>
    %290 = tpu.matmul %288, %289, %cst_142 {dimension_numbers = #tpu.dot_dimension_numbers<[1], [1], [0], [0], [0, 0, 1, 0], [], []>} : vector<8x4xf32>, vector<8x4xf32>, vector<8x8xf32> -> vector<8x8xf32>
    "tpu.trace_stop"() : () -> ()
    %cst_143 = arith.constant dense<0xFF800000> : vector<8xf32>
    %291 = vector.multi_reduction <maximumf>, %290, %cst_143 [1] : vector<8x8xf32> to vector<8xf32>
    %292 = vector.shape_cast %291 : vector<8xf32> to vector<8x1xf32>
    %293 = vector.broadcast %292 : vector<8x1xf32> to vector<8x8xf32>
    %294 = arith.subf %290, %293 : vector<8x8xf32>
    %295 = math.exp %294 : vector<8x8xf32>
    %cst_144 = arith.constant dense<0.000000e+00> : vector<8xf32>
    %296 = vector.multi_reduction <add>, %295, %cst_144 [1] : vector<8x8xf32> to vector<8xf32>
    %297 = vector.shape_cast %296 : vector<8xf32> to vector<8x1xf32>
    %298 = tpu.reciprocal %297 : vector<8x1xf32> -> vector<8x1xf32>
    %299 = vector.broadcast %298 : vector<8x1xf32> to vector<8x8xf32>
    %300 = arith.mulf %295, %299 : vector<8x8xf32>
    %301 = vector.extract_strided_slice %263 {offsets = [0, 4], sizes = [8, 4], strides = [1, 1]} : vector<8x32xf32> to vector<8x4xf32>
    %cst_145 = arith.constant dense<0.000000e+00> : vector<8x4xf32>
    %302 = tpu.matmul %300, %301, %cst_145 {dimension_numbers = #tpu.dot_dimension_numbers<[1], [0], [0], [1], [0, 0, 1, 1], [], []>} : vector<8x8xf32>, vector<8x4xf32>, vector<8x4xf32> -> vector<8x4xf32>
    %c1_146 = arith.constant 1 : index
    %c0_147 = arith.constant 0 : index
    %c0_148 = arith.constant 0 : index
    %303 = vector.load %arg9[%c1_146, %c0_147, %c0_148] : memref<8x4x32xf32, #tpu.memory_space<vmem>>, vector<1x4x32xf32>
    %304 = vector.shape_cast %303 : vector<1x4x32xf32> to vector<4x32xf32>
    %cst_149 = arith.constant dense<0.000000e+00> : vector<8x32xf32>
    %305 = tpu.matmul %302, %304, %cst_149 {dimension_numbers = #tpu.dot_dimension_numbers<[1], [0], [0], [1], [0, 0, 1, 1], [], []>} : vector<8x4xf32>, vector<4x32xf32>, vector<8x32xf32> -> vector<8x32xf32>
    %306 = arith.addf %287, %305 : vector<8x32xf32>
    %307 = vector.extract_strided_slice %265 {offsets = [0, 8], sizes = [8, 4], strides = [1, 1]} : vector<8x32xf32> to vector<8x4xf32>
    %308 = vector.extract_strided_slice %260 {offsets = [0, 8], sizes = [8, 4], strides = [1, 1]} : vector<8x32xf32> to vector<8x4xf32>
    "tpu.trace_start"() <{level = 10 : i32, message = "qd,kd->qk"}> : () -> ()
    %cst_150 = arith.constant dense<0.000000e+00> : vector<8x8xf32>
    %309 = tpu.matmul %307, %308, %cst_150 {dimension_numbers = #tpu.dot_dimension_numbers<[1], [1], [0], [0], [0, 0, 1, 0], [], []>} : vector<8x4xf32>, vector<8x4xf32>, vector<8x8xf32> -> vector<8x8xf32>
    "tpu.trace_stop"() : () -> ()
    %cst_151 = arith.constant dense<0xFF800000> : vector<8xf32>
    %310 = vector.multi_reduction <maximumf>, %309, %cst_151 [1] : vector<8x8xf32> to vector<8xf32>
    %311 = vector.shape_cast %310 : vector<8xf32> to vector<8x1xf32>
    %312 = vector.broadcast %311 : vector<8x1xf32> to vector<8x8xf32>
    %313 = arith.subf %309, %312 : vector<8x8xf32>
    %314 = math.exp %313 : vector<8x8xf32>
    %cst_152 = arith.constant dense<0.000000e+00> : vector<8xf32>
    %315 = vector.multi_reduction <add>, %314, %cst_152 [1] : vector<8x8xf32> to vector<8xf32>
    %316 = vector.shape_cast %315 : vector<8xf32> to vector<8x1xf32>
    %317 = tpu.reciprocal %316 : vector<8x1xf32> -> vector<8x1xf32>
    %318 = vector.broadcast %317 : vector<8x1xf32> to vector<8x8xf32>
    %319 = arith.mulf %314, %318 : vector<8x8xf32>
    %320 = vector.extract_strided_slice %263 {offsets = [0, 8], sizes = [8, 4], strides = [1, 1]} : vector<8x32xf32> to vector<8x4xf32>
    %cst_153 = arith.constant dense<0.000000e+00> : vector<8x4xf32>
    %321 = tpu.matmul %319, %320, %cst_153 {dimension_numbers = #tpu.dot_dimension_numbers<[1], [0], [0], [1], [0, 0, 1, 1], [], []>} : vector<8x8xf32>, vector<8x4xf32>, vector<8x4xf32> -> vector<8x4xf32>
    %c2_154 = arith.constant 2 : index
    %c0_155 = arith.constant 0 : index
    %c0_156 = arith.constant 0 : index
    %322 = vector.load %arg9[%c2_154, %c0_155, %c0_156] : memref<8x4x32xf32, #tpu.memory_space<vmem>>, vector<1x4x32xf32>
    %323 = vector.shape_cast %322 : vector<1x4x32xf32> to vector<4x32xf32>
    %cst_157 = arith.constant dense<0.000000e+00> : vector<8x32xf32>
    %324 = tpu.matmul %321, %323, %cst_157 {dimension_numbers = #tpu.dot_dimension_numbers<[1], [0], [0], [1], [0, 0, 1, 1], [], []>} : vector<8x4xf32>, vector<4x32xf32>, vector<8x32xf32> -> vector<8x32xf32>
    %325 = arith.addf %306, %324 : vector<8x32xf32>
    %326 = vector.extract_strided_slice %265 {offsets = [0, 12], sizes = [8, 4], strides = [1, 1]} : vector<8x32xf32> to vector<8x4xf32>
    %327 = vector.extract_strided_slice %260 {offsets = [0, 12], sizes = [8, 4], strides = [1, 1]} : vector<8x32xf32> to vector<8x4xf32>
    "tpu.trace_start"() <{level = 10 : i32, message = "qd,kd->qk"}> : () -> ()
    %cst_158 = arith.constant dense<0.000000e+00> : vector<8x8xf32>
    %328 = tpu.matmul %326, %327, %cst_158 {dimension_numbers = #tpu.dot_dimension_numbers<[1], [1], [0], [0], [0, 0, 1, 0], [], []>} : vector<8x4xf32>, vector<8x4xf32>, vector<8x8xf32> -> vector<8x8xf32>
    "tpu.trace_stop"() : () -> ()
    %cst_159 = arith.constant dense<0xFF800000> : vector<8xf32>
    %329 = vector.multi_reduction <maximumf>, %328, %cst_159 [1] : vector<8x8xf32> to vector<8xf32>
    %330 = vector.shape_cast %329 : vector<8xf32> to vector<8x1xf32>
    %331 = vector.broadcast %330 : vector<8x1xf32> to vector<8x8xf32>
    %332 = arith.subf %328, %331 : vector<8x8xf32>
    %333 = math.exp %332 : vector<8x8xf32>
    %cst_160 = arith.constant dense<0.000000e+00> : vector<8xf32>
    %334 = vector.multi_reduction <add>, %333, %cst_160 [1] : vector<8x8xf32> to vector<8xf32>
    %335 = vector.shape_cast %334 : vector<8xf32> to vector<8x1xf32>
    %336 = tpu.reciprocal %335 : vector<8x1xf32> -> vector<8x1xf32>
    %337 = vector.broadcast %336 : vector<8x1xf32> to vector<8x8xf32>
    %338 = arith.mulf %333, %337 : vector<8x8xf32>
    %339 = vector.extract_strided_slice %263 {offsets = [0, 12], sizes = [8, 4], strides = [1, 1]} : vector<8x32xf32> to vector<8x4xf32>
    %cst_161 = arith.constant dense<0.000000e+00> : vector<8x4xf32>
    %340 = tpu.matmul %338, %339, %cst_161 {dimension_numbers = #tpu.dot_dimension_numbers<[1], [0], [0], [1], [0, 0, 1, 1], [], []>} : vector<8x8xf32>, vector<8x4xf32>, vector<8x4xf32> -> vector<8x4xf32>
    %c3_162 = arith.constant 3 : index
    %c0_163 = arith.constant 0 : index
    %c0_164 = arith.constant 0 : index
    %341 = vector.load %arg9[%c3_162, %c0_163, %c0_164] : memref<8x4x32xf32, #tpu.memory_space<vmem>>, vector<1x4x32xf32>
    %342 = vector.shape_cast %341 : vector<1x4x32xf32> to vector<4x32xf32>
    %cst_165 = arith.constant dense<0.000000e+00> : vector<8x32xf32>
    %343 = tpu.matmul %340, %342, %cst_165 {dimension_numbers = #tpu.dot_dimension_numbers<[1], [0], [0], [1], [0, 0, 1, 1], [], []>} : vector<8x4xf32>, vector<4x32xf32>, vector<8x32xf32> -> vector<8x32xf32>
    %344 = arith.addf %325, %343 : vector<8x32xf32>
    %345 = vector.extract_strided_slice %265 {offsets = [0, 16], sizes = [8, 4], strides = [1, 1]} : vector<8x32xf32> to vector<8x4xf32>
    %346 = vector.extract_strided_slice %260 {offsets = [0, 16], sizes = [8, 4], strides = [1, 1]} : vector<8x32xf32> to vector<8x4xf32>
    "tpu.trace_start"() <{level = 10 : i32, message = "qd,kd->qk"}> : () -> ()
    %cst_166 = arith.constant dense<0.000000e+00> : vector<8x8xf32>
    %347 = tpu.matmul %345, %346, %cst_166 {dimension_numbers = #tpu.dot_dimension_numbers<[1], [1], [0], [0], [0, 0, 1, 0], [], []>} : vector<8x4xf32>, vector<8x4xf32>, vector<8x8xf32> -> vector<8x8xf32>
    "tpu.trace_stop"() : () -> ()
    %cst_167 = arith.constant dense<0xFF800000> : vector<8xf32>
    %348 = vector.multi_reduction <maximumf>, %347, %cst_167 [1] : vector<8x8xf32> to vector<8xf32>
    %349 = vector.shape_cast %348 : vector<8xf32> to vector<8x1xf32>
    %350 = vector.broadcast %349 : vector<8x1xf32> to vector<8x8xf32>
    %351 = arith.subf %347, %350 : vector<8x8xf32>
    %352 = math.exp %351 : vector<8x8xf32>
    %cst_168 = arith.constant dense<0.000000e+00> : vector<8xf32>
    %353 = vector.multi_reduction <add>, %352, %cst_168 [1] : vector<8x8xf32> to vector<8xf32>
    %354 = vector.shape_cast %353 : vector<8xf32> to vector<8x1xf32>
    %355 = tpu.reciprocal %354 : vector<8x1xf32> -> vector<8x1xf32>
    %356 = vector.broadcast %355 : vector<8x1xf32> to vector<8x8xf32>
    %357 = arith.mulf %352, %356 : vector<8x8xf32>
    %358 = vector.extract_strided_slice %263 {offsets = [0, 16], sizes = [8, 4], strides = [1, 1]} : vector<8x32xf32> to vector<8x4xf32>
    %cst_169 = arith.constant dense<0.000000e+00> : vector<8x4xf32>
    %359 = tpu.matmul %357, %358, %cst_169 {dimension_numbers = #tpu.dot_dimension_numbers<[1], [0], [0], [1], [0, 0, 1, 1], [], []>} : vector<8x8xf32>, vector<8x4xf32>, vector<8x4xf32> -> vector<8x4xf32>
    %c4_170 = arith.constant 4 : index
    %c0_171 = arith.constant 0 : index
    %c0_172 = arith.constant 0 : index
    %360 = vector.load %arg9[%c4_170, %c0_171, %c0_172] : memref<8x4x32xf32, #tpu.memory_space<vmem>>, vector<1x4x32xf32>
    %361 = vector.shape_cast %360 : vector<1x4x32xf32> to vector<4x32xf32>
    %cst_173 = arith.constant dense<0.000000e+00> : vector<8x32xf32>
    %362 = tpu.matmul %359, %361, %cst_173 {dimension_numbers = #tpu.dot_dimension_numbers<[1], [0], [0], [1], [0, 0, 1, 1], [], []>} : vector<8x4xf32>, vector<4x32xf32>, vector<8x32xf32> -> vector<8x32xf32>
    %363 = arith.addf %344, %362 : vector<8x32xf32>
    %364 = vector.extract_strided_slice %265 {offsets = [0, 20], sizes = [8, 4], strides = [1, 1]} : vector<8x32xf32> to vector<8x4xf32>
    %365 = vector.extract_strided_slice %260 {offsets = [0, 20], sizes = [8, 4], strides = [1, 1]} : vector<8x32xf32> to vector<8x4xf32>
    "tpu.trace_start"() <{level = 10 : i32, message = "qd,kd->qk"}> : () -> ()
    %cst_174 = arith.constant dense<0.000000e+00> : vector<8x8xf32>
    %366 = tpu.matmul %364, %365, %cst_174 {dimension_numbers = #tpu.dot_dimension_numbers<[1], [1], [0], [0], [0, 0, 1, 0], [], []>} : vector<8x4xf32>, vector<8x4xf32>, vector<8x8xf32> -> vector<8x8xf32>
    "tpu.trace_stop"() : () -> ()
    %cst_175 = arith.constant dense<0xFF800000> : vector<8xf32>
    %367 = vector.multi_reduction <maximumf>, %366, %cst_175 [1] : vector<8x8xf32> to vector<8xf32>
    %368 = vector.shape_cast %367 : vector<8xf32> to vector<8x1xf32>
    %369 = vector.broadcast %368 : vector<8x1xf32> to vector<8x8xf32>
    %370 = arith.subf %366, %369 : vector<8x8xf32>
    %371 = math.exp %370 : vector<8x8xf32>
    %cst_176 = arith.constant dense<0.000000e+00> : vector<8xf32>
    %372 = vector.multi_reduction <add>, %371, %cst_176 [1] : vector<8x8xf32> to vector<8xf32>
    %373 = vector.shape_cast %372 : vector<8xf32> to vector<8x1xf32>
    %374 = tpu.reciprocal %373 : vector<8x1xf32> -> vector<8x1xf32>
    %375 = vector.broadcast %374 : vector<8x1xf32> to vector<8x8xf32>
    %376 = arith.mulf %371, %375 : vector<8x8xf32>
    %377 = vector.extract_strided_slice %263 {offsets = [0, 20], sizes = [8, 4], strides = [1, 1]} : vector<8x32xf32> to vector<8x4xf32>
    %cst_177 = arith.constant dense<0.000000e+00> : vector<8x4xf32>
    %378 = tpu.matmul %376, %377, %cst_177 {dimension_numbers = #tpu.dot_dimension_numbers<[1], [0], [0], [1], [0, 0, 1, 1], [], []>} : vector<8x8xf32>, vector<8x4xf32>, vector<8x4xf32> -> vector<8x4xf32>
    %c5_178 = arith.constant 5 : index
    %c0_179 = arith.constant 0 : index
    %c0_180 = arith.constant 0 : index
    %379 = vector.load %arg9[%c5_178, %c0_179, %c0_180] : memref<8x4x32xf32, #tpu.memory_space<vmem>>, vector<1x4x32xf32>
    %380 = vector.shape_cast %379 : vector<1x4x32xf32> to vector<4x32xf32>
    %cst_181 = arith.constant dense<0.000000e+00> : vector<8x32xf32>
    %381 = tpu.matmul %378, %380, %cst_181 {dimension_numbers = #tpu.dot_dimension_numbers<[1], [0], [0], [1], [0, 0, 1, 1], [], []>} : vector<8x4xf32>, vector<4x32xf32>, vector<8x32xf32> -> vector<8x32xf32>
    %382 = arith.addf %363, %381 : vector<8x32xf32>
    %383 = vector.extract_strided_slice %265 {offsets = [0, 24], sizes = [8, 4], strides = [1, 1]} : vector<8x32xf32> to vector<8x4xf32>
    %384 = vector.extract_strided_slice %260 {offsets = [0, 24], sizes = [8, 4], strides = [1, 1]} : vector<8x32xf32> to vector<8x4xf32>
    "tpu.trace_start"() <{level = 10 : i32, message = "qd,kd->qk"}> : () -> ()
    %cst_182 = arith.constant dense<0.000000e+00> : vector<8x8xf32>
    %385 = tpu.matmul %383, %384, %cst_182 {dimension_numbers = #tpu.dot_dimension_numbers<[1], [1], [0], [0], [0, 0, 1, 0], [], []>} : vector<8x4xf32>, vector<8x4xf32>, vector<8x8xf32> -> vector<8x8xf32>
    "tpu.trace_stop"() : () -> ()
    %cst_183 = arith.constant dense<0xFF800000> : vector<8xf32>
    %386 = vector.multi_reduction <maximumf>, %385, %cst_183 [1] : vector<8x8xf32> to vector<8xf32>
    %387 = vector.shape_cast %386 : vector<8xf32> to vector<8x1xf32>
    %388 = vector.broadcast %387 : vector<8x1xf32> to vector<8x8xf32>
    %389 = arith.subf %385, %388 : vector<8x8xf32>
    %390 = math.exp %389 : vector<8x8xf32>
    %cst_184 = arith.constant dense<0.000000e+00> : vector<8xf32>
    %391 = vector.multi_reduction <add>, %390, %cst_184 [1] : vector<8x8xf32> to vector<8xf32>
    %392 = vector.shape_cast %391 : vector<8xf32> to vector<8x1xf32>
    %393 = tpu.reciprocal %392 : vector<8x1xf32> -> vector<8x1xf32>
    %394 = vector.broadcast %393 : vector<8x1xf32> to vector<8x8xf32>
    %395 = arith.mulf %390, %394 : vector<8x8xf32>
    %396 = vector.extract_strided_slice %263 {offsets = [0, 24], sizes = [8, 4], strides = [1, 1]} : vector<8x32xf32> to vector<8x4xf32>
    %cst_185 = arith.constant dense<0.000000e+00> : vector<8x4xf32>
    %397 = tpu.matmul %395, %396, %cst_185 {dimension_numbers = #tpu.dot_dimension_numbers<[1], [0], [0], [1], [0, 0, 1, 1], [], []>} : vector<8x8xf32>, vector<8x4xf32>, vector<8x4xf32> -> vector<8x4xf32>
    %c6_186 = arith.constant 6 : index
    %c0_187 = arith.constant 0 : index
    %c0_188 = arith.constant 0 : index
    %398 = vector.load %arg9[%c6_186, %c0_187, %c0_188] : memref<8x4x32xf32, #tpu.memory_space<vmem>>, vector<1x4x32xf32>
    %399 = vector.shape_cast %398 : vector<1x4x32xf32> to vector<4x32xf32>
    %cst_189 = arith.constant dense<0.000000e+00> : vector<8x32xf32>
    %400 = tpu.matmul %397, %399, %cst_189 {dimension_numbers = #tpu.dot_dimension_numbers<[1], [0], [0], [1], [0, 0, 1, 1], [], []>} : vector<8x4xf32>, vector<4x32xf32>, vector<8x32xf32> -> vector<8x32xf32>
    %401 = arith.addf %382, %400 : vector<8x32xf32>
    %402 = vector.extract_strided_slice %265 {offsets = [0, 28], sizes = [8, 4], strides = [1, 1]} : vector<8x32xf32> to vector<8x4xf32>
    %403 = vector.extract_strided_slice %260 {offsets = [0, 28], sizes = [8, 4], strides = [1, 1]} : vector<8x32xf32> to vector<8x4xf32>
    "tpu.trace_start"() <{level = 10 : i32, message = "qd,kd->qk"}> : () -> ()
    %cst_190 = arith.constant dense<0.000000e+00> : vector<8x8xf32>
    %404 = tpu.matmul %402, %403, %cst_190 {dimension_numbers = #tpu.dot_dimension_numbers<[1], [1], [0], [0], [0, 0, 1, 0], [], []>} : vector<8x4xf32>, vector<8x4xf32>, vector<8x8xf32> -> vector<8x8xf32>
    "tpu.trace_stop"() : () -> ()
    %cst_191 = arith.constant dense<0xFF800000> : vector<8xf32>
    %405 = vector.multi_reduction <maximumf>, %404, %cst_191 [1] : vector<8x8xf32> to vector<8xf32>
    %406 = vector.shape_cast %405 : vector<8xf32> to vector<8x1xf32>
    %407 = vector.broadcast %406 : vector<8x1xf32> to vector<8x8xf32>
    %408 = arith.subf %404, %407 : vector<8x8xf32>
    %409 = math.exp %408 : vector<8x8xf32>
    %cst_192 = arith.constant dense<0.000000e+00> : vector<8xf32>
    %410 = vector.multi_reduction <add>, %409, %cst_192 [1] : vector<8x8xf32> to vector<8xf32>
    %411 = vector.shape_cast %410 : vector<8xf32> to vector<8x1xf32>
    %412 = tpu.reciprocal %411 : vector<8x1xf32> -> vector<8x1xf32>
    %413 = vector.broadcast %412 : vector<8x1xf32> to vector<8x8xf32>
    %414 = arith.mulf %409, %413 : vector<8x8xf32>
    %415 = vector.extract_strided_slice %263 {offsets = [0, 28], sizes = [8, 4], strides = [1, 1]} : vector<8x32xf32> to vector<8x4xf32>
    %cst_193 = arith.constant dense<0.000000e+00> : vector<8x4xf32>
    %416 = tpu.matmul %414, %415, %cst_193 {dimension_numbers = #tpu.dot_dimension_numbers<[1], [0], [0], [1], [0, 0, 1, 1], [], []>} : vector<8x8xf32>, vector<8x4xf32>, vector<8x4xf32> -> vector<8x4xf32>
    %c7_194 = arith.constant 7 : index
    %c0_195 = arith.constant 0 : index
    %c0_196 = arith.constant 0 : index
    %417 = vector.load %arg9[%c7_194, %c0_195, %c0_196] : memref<8x4x32xf32, #tpu.memory_space<vmem>>, vector<1x4x32xf32>
    %418 = vector.shape_cast %417 : vector<1x4x32xf32> to vector<4x32xf32>
    %cst_197 = arith.constant dense<0.000000e+00> : vector<8x32xf32>
    %419 = tpu.matmul %416, %418, %cst_197 {dimension_numbers = #tpu.dot_dimension_numbers<[1], [0], [0], [1], [0, 0, 1, 1], [], []>} : vector<8x4xf32>, vector<4x32xf32>, vector<8x32xf32> -> vector<8x32xf32>
    %420 = arith.addf %401, %419 : vector<8x32xf32>
    %cst_198 = arith.constant dense<0.000000e+00> : vector<8xf32>
    %421 = vector.multi_reduction <add>, %420, %cst_198 [1] : vector<8x32xf32> to vector<8xf32>
    %422 = vector.shape_cast %421 : vector<8xf32> to vector<8x1xf32>
    %cst_199 = arith.constant 3.200000e+01 : f32
    %423 = vector.broadcast %cst_199 : f32 to vector<8x1xf32>
    %424 = arith.divf %422, %423 : vector<8x1xf32>
    %425 = vector.broadcast %424 : vector<8x1xf32> to vector<8x32xf32>
    %426 = arith.subf %420, %425 : vector<8x32xf32>
    %427 = arith.mulf %426, %426 : vector<8x32xf32>
    %cst_200 = arith.constant dense<0.000000e+00> : vector<8xf32>
    %428 = vector.multi_reduction <add>, %427, %cst_200 [1] : vector<8x32xf32> to vector<8xf32>
    %429 = vector.shape_cast %428 : vector<8xf32> to vector<8x1xf32>
    %cst_201 = arith.constant 3.200000e+01 : f32
    %430 = vector.broadcast %cst_201 : f32 to vector<8x1xf32>
    %431 = arith.divf %429, %430 : vector<8x1xf32>
    %432 = vector.broadcast %424 : vector<8x1xf32> to vector<8x32xf32>
    %433 = arith.subf %420, %432 : vector<8x32xf32>
    %cst_202 = arith.constant 9.99999974E-6 : f32
    %434 = vector.broadcast %cst_202 : f32 to vector<8x1xf32>
    %435 = arith.addf %431, %434 : vector<8x1xf32>
    %436 = math.rsqrt %435 : vector<8x1xf32>
    %437 = vector.broadcast %436 : vector<8x1xf32> to vector<8x32xf32>
    %438 = arith.mulf %433, %437 : vector<8x32xf32>
    %439 = vector.broadcast %7 : vector<1x32xf32> to vector<8x32xf32>
    %440 = arith.mulf %438, %439 : vector<8x32xf32>
    %441 = vector.broadcast %8 : vector<1x32xf32> to vector<8x32xf32>
    %442 = arith.addf %440, %441 : vector<8x32xf32>
    %cst_203 = arith.constant dense<0xFF800000> : vector<32xf32>
    %443 = vector.multi_reduction <maximumf>, %442, %cst_203 [0] : vector<8x32xf32> to vector<32xf32>
    %444 = vector.shape_cast %443 : vector<32xf32> to vector<1x32xf32>
    %cst_204 = arith.constant dense<0.000000e+00> : vector<32xf32>
    %445 = vector.multi_reduction <add>, %252, %cst_204 [0] : vector<8x32xf32> to vector<32xf32>
    %446 = vector.shape_cast %445 : vector<32xf32> to vector<1x32xf32>
    %cst_205 = arith.constant 8.000000e+00 : f32
    %447 = vector.broadcast %cst_205 : f32 to vector<1x32xf32>
    %448 = arith.divf %446, %447 : vector<1x32xf32>
    %cst_206 = arith.constant dense<0.000000e+00> : vector<1x16xf32>
    %449 = tpu.matmul %444, %9, %cst_206 {dimension_numbers = #tpu.dot_dimension_numbers<[1], [0], [0], [1], [0, 0, 1, 1], [], []>} : vector<1x32xf32>, vector<32x16xf32>, vector<1x16xf32> -> vector<1x16xf32>
    %cst_207 = arith.constant dense<0.000000e+00> : vector<1x16xf32>
    %450 = tpu.matmul %448, %10, %cst_207 {dimension_numbers = #tpu.dot_dimension_numbers<[1], [0], [0], [1], [0, 0, 1, 1], [], []>} : vector<1x32xf32>, vector<32x16xf32>, vector<1x16xf32> -> vector<1x16xf32>
    %451 = arith.addf %449, %450 : vector<1x16xf32>
    %452 = arith.addf %451, %11 : vector<1x16xf32>
    %cst_208 = arith.constant 0.000000e+00 : f32
    %453 = vector.broadcast %cst_208 : f32 to vector<1x16xf32>
    %454 = arith.maximumf %452, %453 : vector<1x16xf32>
    %cst_209 = arith.constant dense<0.000000e+00> : vector<1x1xf32>
    %455 = tpu.matmul %454, %12, %cst_209 {dimension_numbers = #tpu.dot_dimension_numbers<[1], [0], [0], [1], [0, 0, 1, 1], [], []>} : vector<1x16xf32>, vector<16x1xf32>, vector<1x1xf32> -> vector<1x1xf32>
    %456 = arith.addf %455, %13 : vector<1x1xf32>
    %457 = arith.negf %456 : vector<1x1xf32>
    %458 = math.exp %457 : vector<1x1xf32>
    %cst_210 = arith.constant 1.000000e+00 : f32
    %459 = vector.broadcast %cst_210 : f32 to vector<1x1xf32>
    %460 = arith.addf %459, %458 : vector<1x1xf32>
    %461 = arith.divf %459, %460 : vector<1x1xf32>
    %cst_211 = arith.constant dense<0.000000e+00> : vector<8x16xf32>
    %462 = tpu.matmul %442, %14, %cst_211 {dimension_numbers = #tpu.dot_dimension_numbers<[1], [0], [0], [1], [0, 0, 1, 1], [], []>} : vector<8x32xf32>, vector<32x16xf32>, vector<8x16xf32> -> vector<8x16xf32>
    %463 = vector.broadcast %15 : vector<1x16xf32> to vector<8x16xf32>
    %464 = arith.addf %462, %463 : vector<8x16xf32>
    %cst_212 = arith.constant 0.000000e+00 : f32
    %465 = vector.broadcast %cst_212 : f32 to vector<8x16xf32>
    %466 = arith.maximumf %464, %465 : vector<8x16xf32>
    %cst_213 = arith.constant dense<0.000000e+00> : vector<8x32xf32>
    %467 = tpu.matmul %466, %16, %cst_213 {dimension_numbers = #tpu.dot_dimension_numbers<[1], [0], [0], [1], [0, 0, 1, 1], [], []>} : vector<8x16xf32>, vector<16x32xf32>, vector<8x32xf32> -> vector<8x32xf32>
    %468 = vector.broadcast %17 : vector<1x32xf32> to vector<8x32xf32>
    %469 = arith.addf %467, %468 : vector<8x32xf32>
    %470 = arith.negf %469 : vector<8x32xf32>
    %471 = math.exp %470 : vector<8x32xf32>
    %cst_214 = arith.constant 1.000000e+00 : f32
    %472 = vector.broadcast %cst_214 : f32 to vector<8x32xf32>
    %473 = arith.addf %472, %471 : vector<8x32xf32>
    %474 = arith.divf %472, %473 : vector<8x32xf32>
    %475 = arith.mulf %442, %474 : vector<8x32xf32>
    %cst_215 = arith.constant 1.000000e+00 : f32
    %476 = vector.broadcast %cst_215 : f32 to vector<1x1xf32>
    %477 = arith.subf %476, %461 : vector<1x1xf32>
    %478 = vector.broadcast %477 : vector<1x1xf32> to vector<8x32xf32>
    %479 = arith.mulf %475, %478 : vector<8x32xf32>
    %480 = arith.addf %252, %479 : vector<8x32xf32>
    %c1_216 = arith.constant 1 : index
    %c0_217 = arith.constant 0 : index
    %c0_218 = arith.constant 0 : index
    %481 = vector.load %arg22[%c1_216, %c0_217, %c0_218] : memref<2x8x32xf32, #tpu.memory_space<vmem>>, vector<1x8x32xf32>
    %482 = vector.shape_cast %481 : vector<1x8x32xf32> to vector<8x32xf32>
    %483 = vector.shape_cast %480 : vector<8x32xf32> to vector<1x8x32xf32>
    tpu.vector_store %arg22[%c1_216, %c0_217, %c0_218], %483 {strides = array<i32>} : memref<2x8x32xf32, #tpu.memory_space<vmem>>, vector<1x8x32xf32>,
    return
  }
  func.func @transform_0(%arg0: i32) -> (i32, i32, i32) {
    %c0_i32 = arith.constant 0 : i32
    %c0_i32_0 = arith.constant 0 : i32
    %c0_i32_1 = arith.constant 0 : i32
    return %arg0, %c0_i32, %c0_i32_0 : i32, i32, i32
  }
  func.func @transform_1(%arg0: i32) -> (i32, i32, i32) {
    %c0_i32 = arith.constant 0 : i32
    %c0_i32_0 = arith.constant 0 : i32
    %c0_i32_1 = arith.constant 0 : i32
    return %arg0, %c0_i32, %c0_i32_0 : i32, i32, i32
  }
  func.func @transform_2(%arg0: i32) -> (i32, i32) {
    %c0_i32 = arith.constant 0 : i32
    %c0_i32_0 = arith.constant 0 : i32
    %c0_i32_1 = arith.constant 0 : i32
    return %c0_i32, %c0_i32_0 : i32, i32
  }
  func.func @transform_3(%arg0: i32) -> (i32, i32) {
    %c0_i32 = arith.constant 0 : i32
    %c0_i32_0 = arith.constant 0 : i32
    %c0_i32_1 = arith.constant 0 : i32
    return %c0_i32, %c0_i32_0 : i32, i32
  }
  func.func @transform_4(%arg0: i32) -> (i32, i32) {
    %c0_i32 = arith.constant 0 : i32
    %c0_i32_0 = arith.constant 0 : i32
    %c0_i32_1 = arith.constant 0 : i32
    return %c0_i32, %c0_i32_0 : i32, i32
  }
  func.func @transform_5(%arg0: i32) -> (i32, i32) {
    %c0_i32 = arith.constant 0 : i32
    %c0_i32_0 = arith.constant 0 : i32
    %c0_i32_1 = arith.constant 0 : i32
    return %c0_i32, %c0_i32_0 : i32, i32
  }
  func.func @transform_6(%arg0: i32) -> (i32, i32) {
    %c0_i32 = arith.constant 0 : i32
    %c0_i32_0 = arith.constant 0 : i32
    %c0_i32_1 = arith.constant 0 : i32
    return %c0_i32, %c0_i32_0 : i32, i32
  }
  func.func @transform_7(%arg0: i32) -> (i32, i32) {
    %c0_i32 = arith.constant 0 : i32
    %c0_i32_0 = arith.constant 0 : i32
    %c0_i32_1 = arith.constant 0 : i32
    return %c0_i32, %c0_i32_0 : i32, i32
  }
  func.func @transform_8(%arg0: i32) -> (i32, i32, i32) {
    %c0_i32 = arith.constant 0 : i32
    %c0_i32_0 = arith.constant 0 : i32
    %c0_i32_1 = arith.constant 0 : i32
    %c0_i32_2 = arith.constant 0 : i32
    return %c0_i32, %c0_i32_0, %c0_i32_1 : i32, i32, i32
  }
  func.func @transform_9(%arg0: i32) -> (i32, i32) {
    %c0_i32 = arith.constant 0 : i32
    %c0_i32_0 = arith.constant 0 : i32
    %c0_i32_1 = arith.constant 0 : i32
    return %c0_i32, %c0_i32_0 : i32, i32
  }
  func.func @transform_10(%arg0: i32) -> (i32, i32) {
    %c0_i32 = arith.constant 0 : i32
    %c0_i32_0 = arith.constant 0 : i32
    %c0_i32_1 = arith.constant 0 : i32
    return %c0_i32, %c0_i32_0 : i32, i32
  }
  func.func @transform_11(%arg0: i32) -> (i32, i32) {
    %c0_i32 = arith.constant 0 : i32
    %c0_i32_0 = arith.constant 0 : i32
    %c0_i32_1 = arith.constant 0 : i32
    return %c0_i32, %c0_i32_0 : i32, i32
  }
  func.func @transform_12(%arg0: i32) -> (i32, i32) {
    %c0_i32 = arith.constant 0 : i32
    %c0_i32_0 = arith.constant 0 : i32
    %c0_i32_1 = arith.constant 0 : i32
    return %c0_i32, %c0_i32_0 : i32, i32
  }
  func.func @transform_13(%arg0: i32) -> (i32, i32) {
    %c0_i32 = arith.constant 0 : i32
    %c0_i32_0 = arith.constant 0 : i32
    %c0_i32_1 = arith.constant 0 : i32
    return %c0_i32, %c0_i32_0 : i32, i32
  }
  func.func @transform_14(%arg0: i32) -> (i32, i32) {
    %c0_i32 = arith.constant 0 : i32
    %c0_i32_0 = arith.constant 0 : i32
    %c0_i32_1 = arith.constant 0 : i32
    return %c0_i32, %c0_i32_0 : i32, i32
  }
  func.func @transform_15(%arg0: i32) -> (i32, i32) {
    %c0_i32 = arith.constant 0 : i32
    %c0_i32_0 = arith.constant 0 : i32
    %c0_i32_1 = arith.constant 0 : i32
    return %c0_i32, %c0_i32_0 : i32, i32
  }
  func.func @transform_16(%arg0: i32) -> (i32, i32) {
    %c0_i32 = arith.constant 0 : i32
    %c0_i32_0 = arith.constant 0 : i32
    %c0_i32_1 = arith.constant 0 : i32
    return %c0_i32, %c0_i32_0 : i32, i32
  }
  func.func @transform_17(%arg0: i32) -> (i32, i32) {
    %c0_i32 = arith.constant 0 : i32
    %c0_i32_0 = arith.constant 0 : i32
    %c0_i32_1 = arith.constant 0 : i32
    return %c0_i32, %c0_i32_0 : i32, i32
  }
  func.func @transform_18(%arg0: i32) -> (i32, i32) {
    %c0_i32 = arith.constant 0 : i32
    %c0_i32_0 = arith.constant 0 : i32
    %c0_i32_1 = arith.constant 0 : i32
    return %c0_i32, %c0_i32_0 : i32, i32
  }
  func.func @transform_19(%arg0: i32) -> (i32, i32) {
    %c0_i32 = arith.constant 0 : i32
    %c0_i32_0 = arith.constant 0 : i32
    %c0_i32_1 = arith.constant 0 : i32
    return %c0_i32, %c0_i32_0 : i32, i32
  }
  func.func @transform_20(%arg0: i32) -> (i32, i32) {
    %c0_i32 = arith.constant 0 : i32
    %c0_i32_0 = arith.constant 0 : i32
    %c0_i32_1 = arith.constant 0 : i32
    return %c0_i32, %c0_i32_0 : i32, i32
  }
  func.func @transform_21(%arg0: i32) -> (i32, i32, i32) {
    %c0_i32 = arith.constant 0 : i32
    %c0_i32_0 = arith.constant 0 : i32
    %c0_i32_1 = arith.constant 0 : i32
    return %arg0, %c0_i32, %c0_i32_0 : i32, i32, i32
  }
}

module attributes {stable_mosaic.version = 11 : i64} {
  func.func @cdeep_fusion_kernel(%arg0: i32, %arg1: memref<2x8x32xf32, #tpu.memory_space<vmem>>, %arg2: memref<2x8x32xf32, #tpu.memory_space<vmem>>, %arg3: memref<32x32xf32, #tpu.memory_space<vmem>>, %arg4: memref<1x32xf32, #tpu.memory_space<vmem>>, %arg5: memref<32x32xf32, #tpu.memory_space<vmem>>, %arg6: memref<1x32xf32, #tpu.memory_space<vmem>>, %arg7: memref<32x32xf32, #tpu.memory_space<vmem>>, %arg8: memref<1x32xf32, #tpu.memory_space<vmem>>, %arg9: memref<8x4x32xf32, #tpu.memory_space<vmem>>, %arg10: memref<1x32xf32, #tpu.memory_space<vmem>>, %arg11: memref<1x32xf32, #tpu.memory_space<vmem>>, %arg12: memref<1x32xf32, #tpu.memory_space<vmem>>, %arg13: memref<32x16xf32, #tpu.memory_space<vmem>>, %arg14: memref<32x16xf32, #tpu.memory_space<vmem>>, %arg15: memref<1x16xf32, #tpu.memory_space<vmem>>, %arg16: memref<16x1xf32, #tpu.memory_space<vmem>>, %arg17: memref<1x1xf32, #tpu.memory_space<vmem>>, %arg18: memref<32x16xf32, #tpu.memory_space<vmem>>, %arg19: memref<1x16xf32, #tpu.memory_space<vmem>>, %arg20: memref<16x32xf32, #tpu.memory_space<vmem>>, %arg21: memref<1x32xf32, #tpu.memory_space<vmem>>, %arg22: memref<2x8x32xf32, #tpu.memory_space<vmem>>) attributes {dimension_semantics = [#tpu.dimension_semantics<parallel>], iteration_bounds = array<i64: 1>, scalar_prefetch = 0 : i64, scratch_operands = 0 : i64, tpu.core_type = #tpu.core_type<tc>, window_params = [{transform_indices = @transform_0, window_bounds = array<i64: 2, 8, 32>}, {transform_indices = @transform_1, window_bounds = array<i64: 2, 8, 32>}, {pipeline_mode = #tpu.pipeline_mode<synchronous>, transform_indices = @transform_2, window_bounds = array<i64: 32, 32>}, {pipeline_mode = #tpu.pipeline_mode<synchronous>, transform_indices = @transform_3, window_bounds = array<i64: 1, 32>}, {pipeline_mode = #tpu.pipeline_mode<synchronous>, transform_indices = @transform_4, window_bounds = array<i64: 32, 32>}, {pipeline_mode = #tpu.pipeline_mode<synchronous>, transform_indices = @transform_5, window_bounds = array<i64: 1, 32>}, {pipeline_mode = #tpu.pipeline_mode<synchronous>, transform_indices = @transform_6, window_bounds = array<i64: 32, 32>}, {pipeline_mode = #tpu.pipeline_mode<synchronous>, transform_indices = @transform_7, window_bounds = array<i64: 1, 32>}, {pipeline_mode = #tpu.pipeline_mode<synchronous>, transform_indices = @transform_8, window_bounds = array<i64: 8, 4, 32>}, {pipeline_mode = #tpu.pipeline_mode<synchronous>, transform_indices = @transform_9, window_bounds = array<i64: 1, 32>}, {pipeline_mode = #tpu.pipeline_mode<synchronous>, transform_indices = @transform_10, window_bounds = array<i64: 1, 32>}, {pipeline_mode = #tpu.pipeline_mode<synchronous>, transform_indices = @transform_11, window_bounds = array<i64: 1, 32>}, {pipeline_mode = #tpu.pipeline_mode<synchronous>, transform_indices = @transform_12, window_bounds = array<i64: 32, 16>}, {pipeline_mode = #tpu.pipeline_mode<synchronous>, transform_indices = @transform_13, window_bounds = array<i64: 32, 16>}, {pipeline_mode = #tpu.pipeline_mode<synchronous>, transform_indices = @transform_14, window_bounds = array<i64: 1, 16>}, {pipeline_mode = #tpu.pipeline_mode<synchronous>, transform_indices = @transform_15, window_bounds = array<i64: 16, 1>}, {pipeline_mode = #tpu.pipeline_mode<synchronous>, transform_indices = @transform_16, window_bounds = array<i64: 1, 1>}, {pipeline_mode = #tpu.pipeline_mode<synchronous>, transform_indices = @transform_17, window_bounds = array<i64: 32, 16>}, {pipeline_mode = #tpu.pipeline_mode<synchronous>, transform_indices = @transform_18, window_bounds = array<i64: 1, 16>}, {pipeline_mode = #tpu.pipeline_mode<synchronous>, transform_indices = @transform_19, window_bounds = array<i64: 16, 32>}, {pipeline_mode = #tpu.pipeline_mode<synchronous>, transform_indices = @transform_20, window_bounds = array<i64: 1, 32>}, {transform_indices = @transform_21, window_bounds = array<i64: 2, 8, 32>}]} {
    %c0 = arith.constant 0 : index
    %c0_0 = arith.constant 0 : index
    %0 = vector.load %arg3[%c0, %c0_0] : memref<32x32xf32, #tpu.memory_space<vmem>>, vector<32x32xf32>
    %c0_1 = arith.constant 0 : index
    %c0_2 = arith.constant 0 : index
    %1 = vector.load %arg5[%c0_1, %c0_2] : memref<32x32xf32, #tpu.memory_space<vmem>>, vector<32x32xf32>
    %c0_3 = arith.constant 0 : index
    %c0_4 = arith.constant 0 : index
    %2 = vector.load %arg7[%c0_3, %c0_4] : memref<32x32xf32, #tpu.memory_space<vmem>>, vector<32x32xf32>
    %c0_5 = arith.constant 0 : index
    %c0_6 = arith.constant 0 : index
    %3 = vector.load %arg4[%c0_5, %c0_6] : memref<1x32xf32, #tpu.memory_space<vmem>>, vector<1x32xf32>
    %c0_7 = arith.constant 0 : index
    %c0_8 = arith.constant 0 : index
    %4 = vector.load %arg6[%c0_7, %c0_8] : memref<1x32xf32, #tpu.memory_space<vmem>>, vector<1x32xf32>
    %c0_9 = arith.constant 0 : index
    %c0_10 = arith.constant 0 : index
    %5 = vector.load %arg8[%c0_9, %c0_10] : memref<1x32xf32, #tpu.memory_space<vmem>>, vector<1x32xf32>
    %c0_11 = arith.constant 0 : index
    %c0_12 = arith.constant 0 : index
    %6 = vector.load %arg10[%c0_11, %c0_12] : memref<1x32xf32, #tpu.memory_space<vmem>>, vector<1x32xf32>
    %c0_13 = arith.constant 0 : index
    %c0_14 = arith.constant 0 : index
    %7 = vector.load %arg11[%c0_13, %c0_14] : memref<1x32xf32, #tpu.memory_space<vmem>>, vector<1x32xf32>
    %c0_15 = arith.constant 0 : index
    %c0_16 = arith.constant 0 : index
    %8 = vector.load %arg12[%c0_15, %c0_16] : memref<1x32xf32, #tpu.memory_space<vmem>>, vector<1x32xf32>
    %c0_17 = arith.constant 0 : index
    %c0_18 = arith.constant 0 : index
    %9 = vector.load %arg13[%c0_17, %c0_18] : memref<32x16xf32, #tpu.memory_space<vmem>>, vector<32x16xf32>
    %c0_19 = arith.constant 0 : index
    %c0_20 = arith.constant 0 : index
    %10 = vector.load %arg14[%c0_19, %c0_20] : memref<32x16xf32, #tpu.memory_space<vmem>>, vector<32x16xf32>
    %c0_21 = arith.constant 0 : index
    %c0_22 = arith.constant 0 : index
    %11 = vector.load %arg15[%c0_21, %c0_22] : memref<1x16xf32, #tpu.memory_space<vmem>>, vector<1x16xf32>
    %c0_23 = arith.constant 0 : index
    %c0_24 = arith.constant 0 : index
    %12 = vector.load %arg16[%c0_23, %c0_24] : memref<16x1xf32, #tpu.memory_space<vmem>>, vector<16x1xf32>
    %c0_25 = arith.constant 0 : index
    %c0_26 = arith.constant 0 : index
    %13 = vector.load %arg17[%c0_25, %c0_26] : memref<1x1xf32, #tpu.memory_space<vmem>>, vector<1x1xf32>
    %c0_27 = arith.constant 0 : index
    %c0_28 = arith.constant 0 : index
    %14 = vector.load %arg18[%c0_27, %c0_28] : memref<32x16xf32, #tpu.memory_space<vmem>>, vector<32x16xf32>
    %c0_29 = arith.constant 0 : index
    %c0_30 = arith.constant 0 : index
    %15 = vector.load %arg19[%c0_29, %c0_30] : memref<1x16xf32, #tpu.memory_space<vmem>>, vector<1x16xf32>
    %c0_31 = arith.constant 0 : index
    %c0_32 = arith.constant 0 : index
    %16 = vector.load %arg20[%c0_31, %c0_32] : memref<16x32xf32, #tpu.memory_space<vmem>>, vector<16x32xf32>
    %c0_33 = arith.constant 0 : index
    %c0_34 = arith.constant 0 : index
    %17 = vector.load %arg21[%c0_33, %c0_34] : memref<1x32xf32, #tpu.memory_space<vmem>>, vector<1x32xf32>
    %c0_35 = arith.constant 0 : index
    %c0_36 = arith.constant 0 : index
    %c0_37 = arith.constant 0 : index
    %18 = vector.load %arg1[%c0_35, %c0_36, %c0_37] : memref<2x8x32xf32, #tpu.memory_space<vmem>>, vector<1x8x32xf32>
    %19 = vector.shape_cast %18 : vector<1x8x32xf32> to vector<8x32xf32>
    %c0_38 = arith.constant 0 : index
    %c0_39 = arith.constant 0 : index
    %c0_40 = arith.constant 0 : index
    %20 = vector.load %arg2[%c0_38, %c0_39, %c0_40] : memref<2x8x32xf32, #tpu.memory_space<vmem>>, vector<1x8x32xf32>
    %21 = vector.shape_cast %20 : vector<1x8x32xf32> to vector<8x32xf32>
    %cst = arith.constant dense<0.000000e+00> : vector<8x32xf32>
    %22 = tpu.matmul %19, %0, %cst {dimension_numbers = #tpu.dot_dimension_numbers<[1], [0], [0], [1], [0, 0, 1, 1], [], []>} : vector<8x32xf32>, vector<32x32xf32>, vector<8x32xf32> -> vector<8x32xf32>
    %23 = vector.broadcast %3 : vector<1x32xf32> to vector<8x32xf32>
    %24 = arith.addf %22, %23 : vector<8x32xf32>
    %cst_41 = arith.constant dense<0.000000e+00> : vector<8x32xf32>
    %25 = tpu.matmul %21, %1, %cst_41 {dimension_numbers = #tpu.dot_dimension_numbers<[1], [0], [0], [1], [0, 0, 1, 1], [], []>} : vector<8x32xf32>, vector<32x32xf32>, vector<8x32xf32> -> vector<8x32xf32>
    %26 = vector.broadcast %4 : vector<1x32xf32> to vector<8x32xf32>
    %27 = arith.addf %25, %26 : vector<8x32xf32>
    %cst_42 = arith.constant dense<0.000000e+00> : vector<8x32xf32>
    %28 = tpu.matmul %21, %2, %cst_42 {dimension_numbers = #tpu.dot_dimension_numbers<[1], [0], [0], [1], [0, 0, 1, 1], [], []>} : vector<8x32xf32>, vector<32x32xf32>, vector<8x32xf32> -> vector<8x32xf32>
    %29 = vector.broadcast %5 : vector<1x32xf32> to vector<8x32xf32>
    %30 = arith.addf %28, %29 : vector<8x32xf32>
    %cst_43 = arith.constant 5.000000e-01 : f32
    %31 = vector.broadcast %cst_43 : f32 to vector<8x32xf32>
    %32 = arith.mulf %24, %31 : vector<8x32xf32>
    %cst_44 = arith.constant 0.000000e+00 : f32
    %33 = vector.broadcast %cst_44 : f32 to vector<8x32xf32>
    %34 = vector.broadcast %6 : vector<1x32xf32> to vector<8x32xf32>
    %35 = arith.addf %33, %34 : vector<8x32xf32>
    %36 = vector.extract_strided_slice %32 {offsets = [0, 0], sizes = [8, 4], strides = [1, 1]} : vector<8x32xf32> to vector<8x4xf32>
    %37 = vector.extract_strided_slice %27 {offsets = [0, 0], sizes = [8, 4], strides = [1, 1]} : vector<8x32xf32> to vector<8x4xf32>
    "tpu.trace_start"() <{level = 10 : i32, message = "qd,kd->qk"}> : () -> ()
    %cst_45 = arith.constant dense<0.000000e+00> : vector<8x8xf32>
    %38 = tpu.matmul %36, %37, %cst_45 {dimension_numbers = #tpu.dot_dimension_numbers<[1], [1], [0], [0], [0, 0, 1, 0], [], []>} : vector<8x4xf32>, vector<8x4xf32>, vector<8x8xf32> -> vector<8x8xf32>
    "tpu.trace_stop"() : () -> ()
    %cst_46 = arith.constant dense<0xFF800000> : vector<8xf32>
    %39 = vector.multi_reduction <maximumf>, %38, %cst_46 [1] : vector<8x8xf32> to vector<8xf32>
    %40 = vector.shape_cast %39 : vector<8xf32> to vector<8x1xf32>
    %41 = vector.broadcast %40 : vector<8x1xf32> to vector<8x8xf32>
    %42 = arith.subf %38, %41 : vector<8x8xf32>
    %43 = math.exp %42 : vector<8x8xf32>
    %cst_47 = arith.constant dense<0.000000e+00> : vector<8xf32>
    %44 = vector.multi_reduction <add>, %43, %cst_47 [1] : vector<8x8xf32> to vector<8xf32>
    %45 = vector.shape_cast %44 : vector<8xf32> to vector<8x1xf32>
    %46 = tpu.reciprocal %45 : vector<8x1xf32> -> vector<8x1xf32>
    %47 = vector.broadcast %46 : vector<8x1xf32> to vector<8x8xf32>
    %48 = arith.mulf %43, %47 : vector<8x8xf32>
    %49 = vector.extract_strided_slice %30 {offsets = [0, 0], sizes = [8, 4], strides = [1, 1]} : vector<8x32xf32> to vector<8x4xf32>
    %cst_48 = arith.constant dense<0.000000e+00> : vector<8x4xf32>
    %50 = tpu.matmul %48, %49, %cst_48 {dimension_numbers = #tpu.dot_dimension_numbers<[1], [0], [0], [1], [0, 0, 1, 1], [], []>} : vector<8x8xf32>, vector<8x4xf32>, vector<8x4xf32> -> vector<8x4xf32>
    %c0_49 = arith.constant 0 : index
    %c0_50 = arith.constant 0 : index
    %c0_51 = arith.constant 0 : index
    %51 = vector.load %arg9[%c0_49, %c0_50, %c0_51] : memref<8x4x32xf32, #tpu.memory_space<vmem>>, vector<1x4x32xf32>
    %52 = vector.shape_cast %51 : vector<1x4x32xf32> to vector<4x32xf32>
    %cst_52 = arith.constant dense<0.000000e+00> : vector<8x32xf32>
    %53 = tpu.matmul %50, %52, %cst_52 {dimension_numbers = #tpu.dot_dimension_numbers<[1], [0], [0], [1], [0, 0, 1, 1], [], []>} : vector<8x4xf32>, vector<4x32xf32>, vector<8x32xf32> -> vector<8x32xf32>
    %54 = arith.addf %35, %53 : vector<8x32xf32>
    %55 = vector.extract_strided_slice %32 {offsets = [0, 4], sizes = [8, 4], strides = [1, 1]} : vector<8x32xf32> to vector<8x4xf32>
    %56 = vector.extract_strided_slice %27 {offsets = [0, 4], sizes = [8, 4], strides = [1, 1]} : vector<8x32xf32> to vector<8x4xf32>
    "tpu.trace_start"() <{level = 10 : i32, message = "qd,kd->qk"}> : () -> ()
    %cst_53 = arith.constant dense<0.000000e+00> : vector<8x8xf32>
    %57 = tpu.matmul %55, %56, %cst_53 {dimension_numbers = #tpu.dot_dimension_numbers<[1], [1], [0], [0], [0, 0, 1, 0], [], []>} : vector<8x4xf32>, vector<8x4xf32>, vector<8x8xf32> -> vector<8x8xf32>
    "tpu.trace_stop"() : () -> ()
    %cst_54 = arith.constant dense<0xFF800000> : vector<8xf32>
    %58 = vector.multi_reduction <maximumf>, %57, %cst_54 [1] : vector<8x8xf32> to vector<8xf32>
    %59 = vector.shape_cast %58 : vector<8xf32> to vector<8x1xf32>
    %60 = vector.broadcast %59 : vector<8x1xf32> to vector<8x8xf32>
    %61 = arith.subf %57, %60 : vector<8x8xf32>
    %62 = math.exp %61 : vector<8x8xf32>
    %cst_55 = arith.constant dense<0.000000e+00> : vector<8xf32>
    %63 = vector.multi_reduction <add>, %62, %cst_55 [1] : vector<8x8xf32> to vector<8xf32>
    %64 = vector.shape_cast %63 : vector<8xf32> to vector<8x1xf32>
    %65 = tpu.reciprocal %64 : vector<8x1xf32> -> vector<8x1xf32>
    %66 = vector.broadcast %65 : vector<8x1xf32> to vector<8x8xf32>
    %67 = arith.mulf %62, %66 : vector<8x8xf32>
    %68 = vector.extract_strided_slice %30 {offsets = [0, 4], sizes = [8, 4], strides = [1, 1]} : vector<8x32xf32> to vector<8x4xf32>
    %cst_56 = arith.constant dense<0.000000e+00> : vector<8x4xf32>
    %69 = tpu.matmul %67, %68, %cst_56 {dimension_numbers = #tpu.dot_dimension_numbers<[1], [0], [0], [1], [0, 0, 1, 1], [], []>} : vector<8x8xf32>, vector<8x4xf32>, vector<8x4xf32> -> vector<8x4xf32>
    %c1 = arith.constant 1 : index
    %c0_57 = arith.constant 0 : index
    %c0_58 = arith.constant 0 : index
    %70 = vector.load %arg9[%c1, %c0_57, %c0_58] : memref<8x4x32xf32, #tpu.memory_space<vmem>>, vector<1x4x32xf32>
    %71 = vector.shape_cast %70 : vector<1x4x32xf32> to vector<4x32xf32>
    %cst_59 = arith.constant dense<0.000000e+00> : vector<8x32xf32>
    %72 = tpu.matmul %69, %71, %cst_59 {dimension_numbers = #tpu.dot_dimension_numbers<[1], [0], [0], [1], [0, 0, 1, 1], [], []>} : vector<8x4xf32>, vector<4x32xf32>, vector<8x32xf32> -> vector<8x32xf32>
    %73 = arith.addf %54, %72 : vector<8x32xf32>
    %74 = vector.extract_strided_slice %32 {offsets = [0, 8], sizes = [8, 4], strides = [1, 1]} : vector<8x32xf32> to vector<8x4xf32>
    %75 = vector.extract_strided_slice %27 {offsets = [0, 8], sizes = [8, 4], strides = [1, 1]} : vector<8x32xf32> to vector<8x4xf32>
    "tpu.trace_start"() <{level = 10 : i32, message = "qd,kd->qk"}> : () -> ()
    %cst_60 = arith.constant dense<0.000000e+00> : vector<8x8xf32>
    %76 = tpu.matmul %74, %75, %cst_60 {dimension_numbers = #tpu.dot_dimension_numbers<[1], [1], [0], [0], [0, 0, 1, 0], [], []>} : vector<8x4xf32>, vector<8x4xf32>, vector<8x8xf32> -> vector<8x8xf32>
    "tpu.trace_stop"() : () -> ()
    %cst_61 = arith.constant dense<0xFF800000> : vector<8xf32>
    %77 = vector.multi_reduction <maximumf>, %76, %cst_61 [1] : vector<8x8xf32> to vector<8xf32>
    %78 = vector.shape_cast %77 : vector<8xf32> to vector<8x1xf32>
    %79 = vector.broadcast %78 : vector<8x1xf32> to vector<8x8xf32>
    %80 = arith.subf %76, %79 : vector<8x8xf32>
    %81 = math.exp %80 : vector<8x8xf32>
    %cst_62 = arith.constant dense<0.000000e+00> : vector<8xf32>
    %82 = vector.multi_reduction <add>, %81, %cst_62 [1] : vector<8x8xf32> to vector<8xf32>
    %83 = vector.shape_cast %82 : vector<8xf32> to vector<8x1xf32>
    %84 = tpu.reciprocal %83 : vector<8x1xf32> -> vector<8x1xf32>
    %85 = vector.broadcast %84 : vector<8x1xf32> to vector<8x8xf32>
    %86 = arith.mulf %81, %85 : vector<8x8xf32>
    %87 = vector.extract_strided_slice %30 {offsets = [0, 8], sizes = [8, 4], strides = [1, 1]} : vector<8x32xf32> to vector<8x4xf32>
    %cst_63 = arith.constant dense<0.000000e+00> : vector<8x4xf32>
    %88 = tpu.matmul %86, %87, %cst_63 {dimension_numbers = #tpu.dot_dimension_numbers<[1], [0], [0], [1], [0, 0, 1, 1], [], []>} : vector<8x8xf32>, vector<8x4xf32>, vector<8x4xf32> -> vector<8x4xf32>
    %c2 = arith.constant 2 : index
    %c0_64 = arith.constant 0 : index
    %c0_65 = arith.constant 0 : index
    %89 = vector.load %arg9[%c2, %c0_64, %c0_65] : memref<8x4x32xf32, #tpu.memory_space<vmem>>, vector<1x4x32xf32>
    %90 = vector.shape_cast %89 : vector<1x4x32xf32> to vector<4x32xf32>
    %cst_66 = arith.constant dense<0.000000e+00> : vector<8x32xf32>
    %91 = tpu.matmul %88, %90, %cst_66 {dimension_numbers = #tpu.dot_dimension_numbers<[1], [0], [0], [1], [0, 0, 1, 1], [], []>} : vector<8x4xf32>, vector<4x32xf32>, vector<8x32xf32> -> vector<8x32xf32>
    %92 = arith.addf %73, %91 : vector<8x32xf32>
    %93 = vector.extract_strided_slice %32 {offsets = [0, 12], sizes = [8, 4], strides = [1, 1]} : vector<8x32xf32> to vector<8x4xf32>
    %94 = vector.extract_strided_slice %27 {offsets = [0, 12], sizes = [8, 4], strides = [1, 1]} : vector<8x32xf32> to vector<8x4xf32>
    "tpu.trace_start"() <{level = 10 : i32, message = "qd,kd->qk"}> : () -> ()
    %cst_67 = arith.constant dense<0.000000e+00> : vector<8x8xf32>
    %95 = tpu.matmul %93, %94, %cst_67 {dimension_numbers = #tpu.dot_dimension_numbers<[1], [1], [0], [0], [0, 0, 1, 0], [], []>} : vector<8x4xf32>, vector<8x4xf32>, vector<8x8xf32> -> vector<8x8xf32>
    "tpu.trace_stop"() : () -> ()
    %cst_68 = arith.constant dense<0xFF800000> : vector<8xf32>
    %96 = vector.multi_reduction <maximumf>, %95, %cst_68 [1] : vector<8x8xf32> to vector<8xf32>
    %97 = vector.shape_cast %96 : vector<8xf32> to vector<8x1xf32>
    %98 = vector.broadcast %97 : vector<8x1xf32> to vector<8x8xf32>
    %99 = arith.subf %95, %98 : vector<8x8xf32>
    %100 = math.exp %99 : vector<8x8xf32>
    %cst_69 = arith.constant dense<0.000000e+00> : vector<8xf32>
    %101 = vector.multi_reduction <add>, %100, %cst_69 [1] : vector<8x8xf32> to vector<8xf32>
    %102 = vector.shape_cast %101 : vector<8xf32> to vector<8x1xf32>
    %103 = tpu.reciprocal %102 : vector<8x1xf32> -> vector<8x1xf32>
    %104 = vector.broadcast %103 : vector<8x1xf32> to vector<8x8xf32>
    %105 = arith.mulf %100, %104 : vector<8x8xf32>
    %106 = vector.extract_strided_slice %30 {offsets = [0, 12], sizes = [8, 4], strides = [1, 1]} : vector<8x32xf32> to vector<8x4xf32>
    %cst_70 = arith.constant dense<0.000000e+00> : vector<8x4xf32>
    %107 = tpu.matmul %105, %106, %cst_70 {dimension_numbers = #tpu.dot_dimension_numbers<[1], [0], [0], [1], [0, 0, 1, 1], [], []>} : vector<8x8xf32>, vector<8x4xf32>, vector<8x4xf32> -> vector<8x4xf32>
    %c3 = arith.constant 3 : index
    %c0_71 = arith.constant 0 : index
    %c0_72 = arith.constant 0 : index
    %108 = vector.load %arg9[%c3, %c0_71, %c0_72] : memref<8x4x32xf32, #tpu.memory_space<vmem>>, vector<1x4x32xf32>
    %109 = vector.shape_cast %108 : vector<1x4x32xf32> to vector<4x32xf32>
    %cst_73 = arith.constant dense<0.000000e+00> : vector<8x32xf32>
    %110 = tpu.matmul %107, %109, %cst_73 {dimension_numbers = #tpu.dot_dimension_numbers<[1], [0], [0], [1], [0, 0, 1, 1], [], []>} : vector<8x4xf32>, vector<4x32xf32>, vector<8x32xf32> -> vector<8x32xf32>
    %111 = arith.addf %92, %110 : vector<8x32xf32>
    %112 = vector.extract_strided_slice %32 {offsets = [0, 16], sizes = [8, 4], strides = [1, 1]} : vector<8x32xf32> to vector<8x4xf32>
    %113 = vector.extract_strided_slice %27 {offsets = [0, 16], sizes = [8, 4], strides = [1, 1]} : vector<8x32xf32> to vector<8x4xf32>
    "tpu.trace_start"() <{level = 10 : i32, message = "qd,kd->qk"}> : () -> ()
    %cst_74 = arith.constant dense<0.000000e+00> : vector<8x8xf32>
    %114 = tpu.matmul %112, %113, %cst_74 {dimension_numbers = #tpu.dot_dimension_numbers<[1], [1], [0], [0], [0, 0, 1, 0], [], []>} : vector<8x4xf32>, vector<8x4xf32>, vector<8x8xf32> -> vector<8x8xf32>
    "tpu.trace_stop"() : () -> ()
    %cst_75 = arith.constant dense<0xFF800000> : vector<8xf32>
    %115 = vector.multi_reduction <maximumf>, %114, %cst_75 [1] : vector<8x8xf32> to vector<8xf32>
    %116 = vector.shape_cast %115 : vector<8xf32> to vector<8x1xf32>
    %117 = vector.broadcast %116 : vector<8x1xf32> to vector<8x8xf32>
    %118 = arith.subf %114, %117 : vector<8x8xf32>
    %119 = math.exp %118 : vector<8x8xf32>
    %cst_76 = arith.constant dense<0.000000e+00> : vector<8xf32>
    %120 = vector.multi_reduction <add>, %119, %cst_76 [1] : vector<8x8xf32> to vector<8xf32>
    %121 = vector.shape_cast %120 : vector<8xf32> to vector<8x1xf32>
    %122 = tpu.reciprocal %121 : vector<8x1xf32> -> vector<8x1xf32>
    %123 = vector.broadcast %122 : vector<8x1xf32> to vector<8x8xf32>
    %124 = arith.mulf %119, %123 : vector<8x8xf32>
    %125 = vector.extract_strided_slice %30 {offsets = [0, 16], sizes = [8, 4], strides = [1, 1]} : vector<8x32xf32> to vector<8x4xf32>
    %cst_77 = arith.constant dense<0.000000e+00> : vector<8x4xf32>
    %126 = tpu.matmul %124, %125, %cst_77 {dimension_numbers = #tpu.dot_dimension_numbers<[1], [0], [0], [1], [0, 0, 1, 1], [], []>} : vector<8x8xf32>, vector<8x4xf32>, vector<8x4xf32> -> vector<8x4xf32>
    %c4 = arith.constant 4 : index
    %c0_78 = arith.constant 0 : index
    %c0_79 = arith.constant 0 : index
    %127 = vector.load %arg9[%c4, %c0_78, %c0_79] : memref<8x4x32xf32, #tpu.memory_space<vmem>>, vector<1x4x32xf32>
    %128 = vector.shape_cast %127 : vector<1x4x32xf32> to vector<4x32xf32>
    %cst_80 = arith.constant dense<0.000000e+00> : vector<8x32xf32>
    %129 = tpu.matmul %126, %128, %cst_80 {dimension_numbers = #tpu.dot_dimension_numbers<[1], [0], [0], [1], [0, 0, 1, 1], [], []>} : vector<8x4xf32>, vector<4x32xf32>, vector<8x32xf32> -> vector<8x32xf32>
    %130 = arith.addf %111, %129 : vector<8x32xf32>
    %131 = vector.extract_strided_slice %32 {offsets = [0, 20], sizes = [8, 4], strides = [1, 1]} : vector<8x32xf32> to vector<8x4xf32>
    %132 = vector.extract_strided_slice %27 {offsets = [0, 20], sizes = [8, 4], strides = [1, 1]} : vector<8x32xf32> to vector<8x4xf32>
    "tpu.trace_start"() <{level = 10 : i32, message = "qd,kd->qk"}> : () -> ()
    %cst_81 = arith.constant dense<0.000000e+00> : vector<8x8xf32>
    %133 = tpu.matmul %131, %132, %cst_81 {dimension_numbers = #tpu.dot_dimension_numbers<[1], [1], [0], [0], [0, 0, 1, 0], [], []>} : vector<8x4xf32>, vector<8x4xf32>, vector<8x8xf32> -> vector<8x8xf32>
    "tpu.trace_stop"() : () -> ()
    %cst_82 = arith.constant dense<0xFF800000> : vector<8xf32>
    %134 = vector.multi_reduction <maximumf>, %133, %cst_82 [1] : vector<8x8xf32> to vector<8xf32>
    %135 = vector.shape_cast %134 : vector<8xf32> to vector<8x1xf32>
    %136 = vector.broadcast %135 : vector<8x1xf32> to vector<8x8xf32>
    %137 = arith.subf %133, %136 : vector<8x8xf32>
    %138 = math.exp %137 : vector<8x8xf32>
    %cst_83 = arith.constant dense<0.000000e+00> : vector<8xf32>
    %139 = vector.multi_reduction <add>, %138, %cst_83 [1] : vector<8x8xf32> to vector<8xf32>
    %140 = vector.shape_cast %139 : vector<8xf32> to vector<8x1xf32>
    %141 = tpu.reciprocal %140 : vector<8x1xf32> -> vector<8x1xf32>
    %142 = vector.broadcast %141 : vector<8x1xf32> to vector<8x8xf32>
    %143 = arith.mulf %138, %142 : vector<8x8xf32>
    %144 = vector.extract_strided_slice %30 {offsets = [0, 20], sizes = [8, 4], strides = [1, 1]} : vector<8x32xf32> to vector<8x4xf32>
    %cst_84 = arith.constant dense<0.000000e+00> : vector<8x4xf32>
    %145 = tpu.matmul %143, %144, %cst_84 {dimension_numbers = #tpu.dot_dimension_numbers<[1], [0], [0], [1], [0, 0, 1, 1], [], []>} : vector<8x8xf32>, vector<8x4xf32>, vector<8x4xf32> -> vector<8x4xf32>
    %c5 = arith.constant 5 : index
    %c0_85 = arith.constant 0 : index
    %c0_86 = arith.constant 0 : index
    %146 = vector.load %arg9[%c5, %c0_85, %c0_86] : memref<8x4x32xf32, #tpu.memory_space<vmem>>, vector<1x4x32xf32>
    %147 = vector.shape_cast %146 : vector<1x4x32xf32> to vector<4x32xf32>
    %cst_87 = arith.constant dense<0.000000e+00> : vector<8x32xf32>
    %148 = tpu.matmul %145, %147, %cst_87 {dimension_numbers = #tpu.dot_dimension_numbers<[1], [0], [0], [1], [0, 0, 1, 1], [], []>} : vector<8x4xf32>, vector<4x32xf32>, vector<8x32xf32> -> vector<8x32xf32>
    %149 = arith.addf %130, %148 : vector<8x32xf32>
    %150 = vector.extract_strided_slice %32 {offsets = [0, 24], sizes = [8, 4], strides = [1, 1]} : vector<8x32xf32> to vector<8x4xf32>
    %151 = vector.extract_strided_slice %27 {offsets = [0, 24], sizes = [8, 4], strides = [1, 1]} : vector<8x32xf32> to vector<8x4xf32>
    "tpu.trace_start"() <{level = 10 : i32, message = "qd,kd->qk"}> : () -> ()
    %cst_88 = arith.constant dense<0.000000e+00> : vector<8x8xf32>
    %152 = tpu.matmul %150, %151, %cst_88 {dimension_numbers = #tpu.dot_dimension_numbers<[1], [1], [0], [0], [0, 0, 1, 0], [], []>} : vector<8x4xf32>, vector<8x4xf32>, vector<8x8xf32> -> vector<8x8xf32>
    "tpu.trace_stop"() : () -> ()
    %cst_89 = arith.constant dense<0xFF800000> : vector<8xf32>
    %153 = vector.multi_reduction <maximumf>, %152, %cst_89 [1] : vector<8x8xf32> to vector<8xf32>
    %154 = vector.shape_cast %153 : vector<8xf32> to vector<8x1xf32>
    %155 = vector.broadcast %154 : vector<8x1xf32> to vector<8x8xf32>
    %156 = arith.subf %152, %155 : vector<8x8xf32>
    %157 = math.exp %156 : vector<8x8xf32>
    %cst_90 = arith.constant dense<0.000000e+00> : vector<8xf32>
    %158 = vector.multi_reduction <add>, %157, %cst_90 [1] : vector<8x8xf32> to vector<8xf32>
    %159 = vector.shape_cast %158 : vector<8xf32> to vector<8x1xf32>
    %160 = tpu.reciprocal %159 : vector<8x1xf32> -> vector<8x1xf32>
    %161 = vector.broadcast %160 : vector<8x1xf32> to vector<8x8xf32>
    %162 = arith.mulf %157, %161 : vector<8x8xf32>
    %163 = vector.extract_strided_slice %30 {offsets = [0, 24], sizes = [8, 4], strides = [1, 1]} : vector<8x32xf32> to vector<8x4xf32>
    %cst_91 = arith.constant dense<0.000000e+00> : vector<8x4xf32>
    %164 = tpu.matmul %162, %163, %cst_91 {dimension_numbers = #tpu.dot_dimension_numbers<[1], [0], [0], [1], [0, 0, 1, 1], [], []>} : vector<8x8xf32>, vector<8x4xf32>, vector<8x4xf32> -> vector<8x4xf32>
    %c6 = arith.constant 6 : index
    %c0_92 = arith.constant 0 : index
    %c0_93 = arith.constant 0 : index
    %165 = vector.load %arg9[%c6, %c0_92, %c0_93] : memref<8x4x32xf32, #tpu.memory_space<vmem>>, vector<1x4x32xf32>
    %166 = vector.shape_cast %165 : vector<1x4x32xf32> to vector<4x32xf32>
    %cst_94 = arith.constant dense<0.000000e+00> : vector<8x32xf32>
    %167 = tpu.matmul %164, %166, %cst_94 {dimension_numbers = #tpu.dot_dimension_numbers<[1], [0], [0], [1], [0, 0, 1, 1], [], []>} : vector<8x4xf32>, vector<4x32xf32>, vector<8x32xf32> -> vector<8x32xf32>
    %168 = arith.addf %149, %167 : vector<8x32xf32>
    %169 = vector.extract_strided_slice %32 {offsets = [0, 28], sizes = [8, 4], strides = [1, 1]} : vector<8x32xf32> to vector<8x4xf32>
    %170 = vector.extract_strided_slice %27 {offsets = [0, 28], sizes = [8, 4], strides = [1, 1]} : vector<8x32xf32> to vector<8x4xf32>
    "tpu.trace_start"() <{level = 10 : i32, message = "qd,kd->qk"}> : () -> ()
    %cst_95 = arith.constant dense<0.000000e+00> : vector<8x8xf32>
    %171 = tpu.matmul %169, %170, %cst_95 {dimension_numbers = #tpu.dot_dimension_numbers<[1], [1], [0], [0], [0, 0, 1, 0], [], []>} : vector<8x4xf32>, vector<8x4xf32>, vector<8x8xf32> -> vector<8x8xf32>
    "tpu.trace_stop"() : () -> ()
    %cst_96 = arith.constant dense<0xFF800000> : vector<8xf32>
    %172 = vector.multi_reduction <maximumf>, %171, %cst_96 [1] : vector<8x8xf32> to vector<8xf32>
    %173 = vector.shape_cast %172 : vector<8xf32> to vector<8x1xf32>
    %174 = vector.broadcast %173 : vector<8x1xf32> to vector<8x8xf32>
    %175 = arith.subf %171, %174 : vector<8x8xf32>
    %176 = math.exp %175 : vector<8x8xf32>
    %cst_97 = arith.constant dense<0.000000e+00> : vector<8xf32>
    %177 = vector.multi_reduction <add>, %176, %cst_97 [1] : vector<8x8xf32> to vector<8xf32>
    %178 = vector.shape_cast %177 : vector<8xf32> to vector<8x1xf32>
    %179 = tpu.reciprocal %178 : vector<8x1xf32> -> vector<8x1xf32>
    %180 = vector.broadcast %179 : vector<8x1xf32> to vector<8x8xf32>
    %181 = arith.mulf %176, %180 : vector<8x8xf32>
    %182 = vector.extract_strided_slice %30 {offsets = [0, 28], sizes = [8, 4], strides = [1, 1]} : vector<8x32xf32> to vector<8x4xf32>
    %cst_98 = arith.constant dense<0.000000e+00> : vector<8x4xf32>
    %183 = tpu.matmul %181, %182, %cst_98 {dimension_numbers = #tpu.dot_dimension_numbers<[1], [0], [0], [1], [0, 0, 1, 1], [], []>} : vector<8x8xf32>, vector<8x4xf32>, vector<8x4xf32> -> vector<8x4xf32>
    %c7 = arith.constant 7 : index
    %c0_99 = arith.constant 0 : index
    %c0_100 = arith.constant 0 : index
    %184 = vector.load %arg9[%c7, %c0_99, %c0_100] : memref<8x4x32xf32, #tpu.memory_space<vmem>>, vector<1x4x32xf32>
    %185 = vector.shape_cast %184 : vector<1x4x32xf32> to vector<4x32xf32>
    %cst_101 = arith.constant dense<0.000000e+00> : vector<8x32xf32>
    %186 = tpu.matmul %183, %185, %cst_101 {dimension_numbers = #tpu.dot_dimension_numbers<[1], [0], [0], [1], [0, 0, 1, 1], [], []>} : vector<8x4xf32>, vector<4x32xf32>, vector<8x32xf32> -> vector<8x32xf32>
    %187 = arith.addf %168, %186 : vector<8x32xf32>
    %cst_102 = arith.constant dense<0.000000e+00> : vector<8xf32>
    %188 = vector.multi_reduction <add>, %187, %cst_102 [1] : vector<8x32xf32> to vector<8xf32>
    %189 = vector.shape_cast %188 : vector<8xf32> to vector<8x1xf32>
    %cst_103 = arith.constant 3.200000e+01 : f32
    %190 = vector.broadcast %cst_103 : f32 to vector<8x1xf32>
    %191 = arith.divf %189, %190 : vector<8x1xf32>
    %192 = vector.broadcast %191 : vector<8x1xf32> to vector<8x32xf32>
    %193 = arith.subf %187, %192 : vector<8x32xf32>
    %194 = arith.mulf %193, %193 : vector<8x32xf32>
    %cst_104 = arith.constant dense<0.000000e+00> : vector<8xf32>
    %195 = vector.multi_reduction <add>, %194, %cst_104 [1] : vector<8x32xf32> to vector<8xf32>
    %196 = vector.shape_cast %195 : vector<8xf32> to vector<8x1xf32>
    %cst_105 = arith.constant 3.200000e+01 : f32
    %197 = vector.broadcast %cst_105 : f32 to vector<8x1xf32>
    %198 = arith.divf %196, %197 : vector<8x1xf32>
    %199 = vector.broadcast %191 : vector<8x1xf32> to vector<8x32xf32>
    %200 = arith.subf %187, %199 : vector<8x32xf32>
    %cst_106 = arith.constant 9.99999974E-6 : f32
    %201 = vector.broadcast %cst_106 : f32 to vector<8x1xf32>
    %202 = arith.addf %198, %201 : vector<8x1xf32>
    %203 = math.rsqrt %202 : vector<8x1xf32>
    %204 = vector.broadcast %203 : vector<8x1xf32> to vector<8x32xf32>
    %205 = arith.mulf %200, %204 : vector<8x32xf32>
    %206 = vector.broadcast %7 : vector<1x32xf32> to vector<8x32xf32>
    %207 = arith.mulf %205, %206 : vector<8x32xf32>
    %208 = vector.broadcast %8 : vector<1x32xf32> to vector<8x32xf32>
    %209 = arith.addf %207, %208 : vector<8x32xf32>
    %cst_107 = arith.constant dense<0xFF800000> : vector<32xf32>
    %210 = vector.multi_reduction <maximumf>, %209, %cst_107 [0] : vector<8x32xf32> to vector<32xf32>
    %211 = vector.shape_cast %210 : vector<32xf32> to vector<1x32xf32>
    %cst_108 = arith.constant dense<0.000000e+00> : vector<32xf32>
    %212 = vector.multi_reduction <add>, %19, %cst_108 [0] : vector<8x32xf32> to vector<32xf32>
    %213 = vector.shape_cast %212 : vector<32xf32> to vector<1x32xf32>
    %cst_109 = arith.constant 8.000000e+00 : f32
    %214 = vector.broadcast %cst_109 : f32 to vector<1x32xf32>
    %215 = arith.divf %213, %214 : vector<1x32xf32>
    %cst_110 = arith.constant dense<0.000000e+00> : vector<1x16xf32>
    %216 = tpu.matmul %211, %9, %cst_110 {dimension_numbers = #tpu.dot_dimension_numbers<[1], [0], [0], [1], [0, 0, 1, 1], [], []>} : vector<1x32xf32>, vector<32x16xf32>, vector<1x16xf32> -> vector<1x16xf32>
    %cst_111 = arith.constant dense<0.000000e+00> : vector<1x16xf32>
    %217 = tpu.matmul %215, %10, %cst_111 {dimension_numbers = #tpu.dot_dimension_numbers<[1], [0], [0], [1], [0, 0, 1, 1], [], []>} : vector<1x32xf32>, vector<32x16xf32>, vector<1x16xf32> -> vector<1x16xf32>
    %218 = arith.addf %216, %217 : vector<1x16xf32>
    %219 = arith.addf %218, %11 : vector<1x16xf32>
    %cst_112 = arith.constant 0.000000e+00 : f32
    %220 = vector.broadcast %cst_112 : f32 to vector<1x16xf32>
    %221 = arith.maximumf %219, %220 : vector<1x16xf32>
    %cst_113 = arith.constant dense<0.000000e+00> : vector<1x1xf32>
    %222 = tpu.matmul %221, %12, %cst_113 {dimension_numbers = #tpu.dot_dimension_numbers<[1], [0], [0], [1], [0, 0, 1, 1], [], []>} : vector<1x16xf32>, vector<16x1xf32>, vector<1x1xf32> -> vector<1x1xf32>
    %223 = arith.addf %222, %13 : vector<1x1xf32>
    %224 = arith.negf %223 : vector<1x1xf32>
    %225 = math.exp %224 : vector<1x1xf32>
    %cst_114 = arith.constant 1.000000e+00 : f32
    %226 = vector.broadcast %cst_114 : f32 to vector<1x1xf32>
    %227 = arith.addf %226, %225 : vector<1x1xf32>
    %228 = arith.divf %226, %227 : vector<1x1xf32>
    %cst_115 = arith.constant dense<0.000000e+00> : vector<8x16xf32>
    %229 = tpu.matmul %209, %14, %cst_115 {dimension_numbers = #tpu.dot_dimension_numbers<[1], [0], [0], [1], [0, 0, 1, 1], [], []>} : vector<8x32xf32>, vector<32x16xf32>, vector<8x16xf32> -> vector<8x16xf32>
    %230 = vector.broadcast %15 : vector<1x16xf32> to vector<8x16xf32>
    %231 = arith.addf %229, %230 : vector<8x16xf32>
    %cst_116 = arith.constant 0.000000e+00 : f32
    %232 = vector.broadcast %cst_116 : f32 to vector<8x16xf32>
    %233 = arith.maximumf %231, %232 : vector<8x16xf32>
    %cst_117 = arith.constant dense<0.000000e+00> : vector<8x32xf32>
    %234 = tpu.matmul %233, %16, %cst_117 {dimension_numbers = #tpu.dot_dimension_numbers<[1], [0], [0], [1], [0, 0, 1, 1], [], []>} : vector<8x16xf32>, vector<16x32xf32>, vector<8x32xf32> -> vector<8x32xf32>
    %235 = vector.broadcast %17 : vector<1x32xf32> to vector<8x32xf32>
    %236 = arith.addf %234, %235 : vector<8x32xf32>
    %237 = arith.negf %236 : vector<8x32xf32>
    %238 = math.exp %237 : vector<8x32xf32>
    %cst_118 = arith.constant 1.000000e+00 : f32
    %239 = vector.broadcast %cst_118 : f32 to vector<8x32xf32>
    %240 = arith.addf %239, %238 : vector<8x32xf32>
    %241 = arith.divf %239, %240 : vector<8x32xf32>
    %242 = arith.mulf %209, %241 : vector<8x32xf32>
    %cst_119 = arith.constant 1.000000e+00 : f32
    %243 = vector.broadcast %cst_119 : f32 to vector<1x1xf32>
    %244 = arith.subf %243, %228 : vector<1x1xf32>
    %245 = vector.broadcast %244 : vector<1x1xf32> to vector<8x32xf32>
    %246 = arith.mulf %242, %245 : vector<8x32xf32>
    %247 = arith.addf %19, %246 : vector<8x32xf32>
    %c0_120 = arith.constant 0 : index
    %c0_121 = arith.constant 0 : index
    %c0_122 = arith.constant 0 : index
    %248 = vector.load %arg22[%c0_120, %c0_121, %c0_122] : memref<2x8x32xf32, #tpu.memory_space<vmem>>, vector<1x8x32xf32>
    %249 = vector.shape_cast %248 : vector<1x8x32xf32> to vector<8x32xf32>
    %250 = vector.shape_cast %247 : vector<8x32xf32> to vector<1x8x32xf32>
    tpu.vector_store %arg22[%c0_120, %c0_121, %c0_122], %250 {strides = array<i32>} : memref<2x8x32xf32, #tpu.memory_space<vmem>>, vector<1x8x32xf32>,
    %c1_123 = arith.constant 1 : index
    %c0_124 = arith.constant 0 : index
    %c0_125 = arith.constant 0 : index
    %251 = vector.load %arg1[%c1_123, %c0_124, %c0_125] : memref<2x8x32xf32, #tpu.memory_space<vmem>>, vector<1x8x32xf32>
    %252 = vector.shape_cast %251 : vector<1x8x32xf32> to vector<8x32xf32>
    %c1_126 = arith.constant 1 : index
    %c0_127 = arith.constant 0 : index
    %c0_128 = arith.constant 0 : index
    %253 = vector.load %arg2[%c1_126, %c0_127, %c0_128] : memref<2x8x32xf32, #tpu.memory_space<vmem>>, vector<1x8x32xf32>
    %254 = vector.shape_cast %253 : vector<1x8x32xf32> to vector<8x32xf32>
    %cst_129 = arith.constant dense<0.000000e+00> : vector<8x32xf32>
    %255 = tpu.matmul %252, %0, %cst_129 {dimension_numbers = #tpu.dot_dimension_numbers<[1], [0], [0], [1], [0, 0, 1, 1], [], []>} : vector<8x32xf32>, vector<32x32xf32>, vector<8x32xf32> -> vector<8x32xf32>
    %256 = vector.broadcast %3 : vector<1x32xf32> to vector<8x32xf32>
    %257 = arith.addf %255, %256 : vector<8x32xf32>
    %cst_130 = arith.constant dense<0.000000e+00> : vector<8x32xf32>
    %258 = tpu.matmul %254, %1, %cst_130 {dimension_numbers = #tpu.dot_dimension_numbers<[1], [0], [0], [1], [0, 0, 1, 1], [], []>} : vector<8x32xf32>, vector<32x32xf32>, vector<8x32xf32> -> vector<8x32xf32>
    %259 = vector.broadcast %4 : vector<1x32xf32> to vector<8x32xf32>
    %260 = arith.addf %258, %259 : vector<8x32xf32>
    %cst_131 = arith.constant dense<0.000000e+00> : vector<8x32xf32>
    %261 = tpu.matmul %254, %2, %cst_131 {dimension_numbers = #tpu.dot_dimension_numbers<[1], [0], [0], [1], [0, 0, 1, 1], [], []>} : vector<8x32xf32>, vector<32x32xf32>, vector<8x32xf32> -> vector<8x32xf32>
    %262 = vector.broadcast %5 : vector<1x32xf32> to vector<8x32xf32>
    %263 = arith.addf %261, %262 : vector<8x32xf32>
    %cst_132 = arith.constant 5.000000e-01 : f32
    %264 = vector.broadcast %cst_132 : f32 to vector<8x32xf32>
    %265 = arith.mulf %257, %264 : vector<8x32xf32>
    %cst_133 = arith.constant 0.000000e+00 : f32
    %266 = vector.broadcast %cst_133 : f32 to vector<8x32xf32>
    %267 = vector.broadcast %6 : vector<1x32xf32> to vector<8x32xf32>
    %268 = arith.addf %266, %267 : vector<8x32xf32>
    %269 = vector.extract_strided_slice %265 {offsets = [0, 0], sizes = [8, 4], strides = [1, 1]} : vector<8x32xf32> to vector<8x4xf32>
    %270 = vector.extract_strided_slice %260 {offsets = [0, 0], sizes = [8, 4], strides = [1, 1]} : vector<8x32xf32> to vector<8x4xf32>
    "tpu.trace_start"() <{level = 10 : i32, message = "qd,kd->qk"}> : () -> ()
    %cst_134 = arith.constant dense<0.000000e+00> : vector<8x8xf32>
    %271 = tpu.matmul %269, %270, %cst_134 {dimension_numbers = #tpu.dot_dimension_numbers<[1], [1], [0], [0], [0, 0, 1, 0], [], []>} : vector<8x4xf32>, vector<8x4xf32>, vector<8x8xf32> -> vector<8x8xf32>
    "tpu.trace_stop"() : () -> ()
    %cst_135 = arith.constant dense<0xFF800000> : vector<8xf32>
    %272 = vector.multi_reduction <maximumf>, %271, %cst_135 [1] : vector<8x8xf32> to vector<8xf32>
    %273 = vector.shape_cast %272 : vector<8xf32> to vector<8x1xf32>
    %274 = vector.broadcast %273 : vector<8x1xf32> to vector<8x8xf32>
    %275 = arith.subf %271, %274 : vector<8x8xf32>
    %276 = math.exp %275 : vector<8x8xf32>
    %cst_136 = arith.constant dense<0.000000e+00> : vector<8xf32>
    %277 = vector.multi_reduction <add>, %276, %cst_136 [1] : vector<8x8xf32> to vector<8xf32>
    %278 = vector.shape_cast %277 : vector<8xf32> to vector<8x1xf32>
    %279 = tpu.reciprocal %278 : vector<8x1xf32> -> vector<8x1xf32>
    %280 = vector.broadcast %279 : vector<8x1xf32> to vector<8x8xf32>
    %281 = arith.mulf %276, %280 : vector<8x8xf32>
    %282 = vector.extract_strided_slice %263 {offsets = [0, 0], sizes = [8, 4], strides = [1, 1]} : vector<8x32xf32> to vector<8x4xf32>
    %cst_137 = arith.constant dense<0.000000e+00> : vector<8x4xf32>
    %283 = tpu.matmul %281, %282, %cst_137 {dimension_numbers = #tpu.dot_dimension_numbers<[1], [0], [0], [1], [0, 0, 1, 1], [], []>} : vector<8x8xf32>, vector<8x4xf32>, vector<8x4xf32> -> vector<8x4xf32>
    %c0_138 = arith.constant 0 : index
    %c0_139 = arith.constant 0 : index
    %c0_140 = arith.constant 0 : index
    %284 = vector.load %arg9[%c0_138, %c0_139, %c0_140] : memref<8x4x32xf32, #tpu.memory_space<vmem>>, vector<1x4x32xf32>
    %285 = vector.shape_cast %284 : vector<1x4x32xf32> to vector<4x32xf32>
    %cst_141 = arith.constant dense<0.000000e+00> : vector<8x32xf32>
    %286 = tpu.matmul %283, %285, %cst_141 {dimension_numbers = #tpu.dot_dimension_numbers<[1], [0], [0], [1], [0, 0, 1, 1], [], []>} : vector<8x4xf32>, vector<4x32xf32>, vector<8x32xf32> -> vector<8x32xf32>
    %287 = arith.addf %268, %286 : vector<8x32xf32>
    %288 = vector.extract_strided_slice %265 {offsets = [0, 4], sizes = [8, 4], strides = [1, 1]} : vector<8x32xf32> to vector<8x4xf32>
    %289 = vector.extract_strided_slice %260 {offsets = [0, 4], sizes = [8, 4], strides = [1, 1]} : vector<8x32xf32> to vector<8x4xf32>
    "tpu.trace_start"() <{level = 10 : i32, message = "qd,kd->qk"}> : () -> ()
    %cst_142 = arith.constant dense<0.000000e+00> : vector<8x8xf32>
    %290 = tpu.matmul %288, %289, %cst_142 {dimension_numbers = #tpu.dot_dimension_numbers<[1], [1], [0], [0], [0, 0, 1, 0], [], []>} : vector<8x4xf32>, vector<8x4xf32>, vector<8x8xf32> -> vector<8x8xf32>
    "tpu.trace_stop"() : () -> ()
    %cst_143 = arith.constant dense<0xFF800000> : vector<8xf32>
    %291 = vector.multi_reduction <maximumf>, %290, %cst_143 [1] : vector<8x8xf32> to vector<8xf32>
    %292 = vector.shape_cast %291 : vector<8xf32> to vector<8x1xf32>
    %293 = vector.broadcast %292 : vector<8x1xf32> to vector<8x8xf32>
    %294 = arith.subf %290, %293 : vector<8x8xf32>
    %295 = math.exp %294 : vector<8x8xf32>
    %cst_144 = arith.constant dense<0.000000e+00> : vector<8xf32>
    %296 = vector.multi_reduction <add>, %295, %cst_144 [1] : vector<8x8xf32> to vector<8xf32>
    %297 = vector.shape_cast %296 : vector<8xf32> to vector<8x1xf32>
    %298 = tpu.reciprocal %297 : vector<8x1xf32> -> vector<8x1xf32>
    %299 = vector.broadcast %298 : vector<8x1xf32> to vector<8x8xf32>
    %300 = arith.mulf %295, %299 : vector<8x8xf32>
    %301 = vector.extract_strided_slice %263 {offsets = [0, 4], sizes = [8, 4], strides = [1, 1]} : vector<8x32xf32> to vector<8x4xf32>
    %cst_145 = arith.constant dense<0.000000e+00> : vector<8x4xf32>
    %302 = tpu.matmul %300, %301, %cst_145 {dimension_numbers = #tpu.dot_dimension_numbers<[1], [0], [0], [1], [0, 0, 1, 1], [], []>} : vector<8x8xf32>, vector<8x4xf32>, vector<8x4xf32> -> vector<8x4xf32>
    %c1_146 = arith.constant 1 : index
    %c0_147 = arith.constant 0 : index
    %c0_148 = arith.constant 0 : index
    %303 = vector.load %arg9[%c1_146, %c0_147, %c0_148] : memref<8x4x32xf32, #tpu.memory_space<vmem>>, vector<1x4x32xf32>
    %304 = vector.shape_cast %303 : vector<1x4x32xf32> to vector<4x32xf32>
    %cst_149 = arith.constant dense<0.000000e+00> : vector<8x32xf32>
    %305 = tpu.matmul %302, %304, %cst_149 {dimension_numbers = #tpu.dot_dimension_numbers<[1], [0], [0], [1], [0, 0, 1, 1], [], []>} : vector<8x4xf32>, vector<4x32xf32>, vector<8x32xf32> -> vector<8x32xf32>
    %306 = arith.addf %287, %305 : vector<8x32xf32>
    %307 = vector.extract_strided_slice %265 {offsets = [0, 8], sizes = [8, 4], strides = [1, 1]} : vector<8x32xf32> to vector<8x4xf32>
    %308 = vector.extract_strided_slice %260 {offsets = [0, 8], sizes = [8, 4], strides = [1, 1]} : vector<8x32xf32> to vector<8x4xf32>
    "tpu.trace_start"() <{level = 10 : i32, message = "qd,kd->qk"}> : () -> ()
    %cst_150 = arith.constant dense<0.000000e+00> : vector<8x8xf32>
    %309 = tpu.matmul %307, %308, %cst_150 {dimension_numbers = #tpu.dot_dimension_numbers<[1], [1], [0], [0], [0, 0, 1, 0], [], []>} : vector<8x4xf32>, vector<8x4xf32>, vector<8x8xf32> -> vector<8x8xf32>
    "tpu.trace_stop"() : () -> ()
    %cst_151 = arith.constant dense<0xFF800000> : vector<8xf32>
    %310 = vector.multi_reduction <maximumf>, %309, %cst_151 [1] : vector<8x8xf32> to vector<8xf32>
    %311 = vector.shape_cast %310 : vector<8xf32> to vector<8x1xf32>
    %312 = vector.broadcast %311 : vector<8x1xf32> to vector<8x8xf32>
    %313 = arith.subf %309, %312 : vector<8x8xf32>
    %314 = math.exp %313 : vector<8x8xf32>
    %cst_152 = arith.constant dense<0.000000e+00> : vector<8xf32>
    %315 = vector.multi_reduction <add>, %314, %cst_152 [1] : vector<8x8xf32> to vector<8xf32>
    %316 = vector.shape_cast %315 : vector<8xf32> to vector<8x1xf32>
    %317 = tpu.reciprocal %316 : vector<8x1xf32> -> vector<8x1xf32>
    %318 = vector.broadcast %317 : vector<8x1xf32> to vector<8x8xf32>
    %319 = arith.mulf %314, %318 : vector<8x8xf32>
    %320 = vector.extract_strided_slice %263 {offsets = [0, 8], sizes = [8, 4], strides = [1, 1]} : vector<8x32xf32> to vector<8x4xf32>
    %cst_153 = arith.constant dense<0.000000e+00> : vector<8x4xf32>
    %321 = tpu.matmul %319, %320, %cst_153 {dimension_numbers = #tpu.dot_dimension_numbers<[1], [0], [0], [1], [0, 0, 1, 1], [], []>} : vector<8x8xf32>, vector<8x4xf32>, vector<8x4xf32> -> vector<8x4xf32>
    %c2_154 = arith.constant 2 : index
    %c0_155 = arith.constant 0 : index
    %c0_156 = arith.constant 0 : index
    %322 = vector.load %arg9[%c2_154, %c0_155, %c0_156] : memref<8x4x32xf32, #tpu.memory_space<vmem>>, vector<1x4x32xf32>
    %323 = vector.shape_cast %322 : vector<1x4x32xf32> to vector<4x32xf32>
    %cst_157 = arith.constant dense<0.000000e+00> : vector<8x32xf32>
    %324 = tpu.matmul %321, %323, %cst_157 {dimension_numbers = #tpu.dot_dimension_numbers<[1], [0], [0], [1], [0, 0, 1, 1], [], []>} : vector<8x4xf32>, vector<4x32xf32>, vector<8x32xf32> -> vector<8x32xf32>
    %325 = arith.addf %306, %324 : vector<8x32xf32>
    %326 = vector.extract_strided_slice %265 {offsets = [0, 12], sizes = [8, 4], strides = [1, 1]} : vector<8x32xf32> to vector<8x4xf32>
    %327 = vector.extract_strided_slice %260 {offsets = [0, 12], sizes = [8, 4], strides = [1, 1]} : vector<8x32xf32> to vector<8x4xf32>
    "tpu.trace_start"() <{level = 10 : i32, message = "qd,kd->qk"}> : () -> ()
    %cst_158 = arith.constant dense<0.000000e+00> : vector<8x8xf32>
    %328 = tpu.matmul %326, %327, %cst_158 {dimension_numbers = #tpu.dot_dimension_numbers<[1], [1], [0], [0], [0, 0, 1, 0], [], []>} : vector<8x4xf32>, vector<8x4xf32>, vector<8x8xf32> -> vector<8x8xf32>
    "tpu.trace_stop"() : () -> ()
    %cst_159 = arith.constant dense<0xFF800000> : vector<8xf32>
    %329 = vector.multi_reduction <maximumf>, %328, %cst_159 [1] : vector<8x8xf32> to vector<8xf32>
    %330 = vector.shape_cast %329 : vector<8xf32> to vector<8x1xf32>
    %331 = vector.broadcast %330 : vector<8x1xf32> to vector<8x8xf32>
    %332 = arith.subf %328, %331 : vector<8x8xf32>
    %333 = math.exp %332 : vector<8x8xf32>
    %cst_160 = arith.constant dense<0.000000e+00> : vector<8xf32>
    %334 = vector.multi_reduction <add>, %333, %cst_160 [1] : vector<8x8xf32> to vector<8xf32>
    %335 = vector.shape_cast %334 : vector<8xf32> to vector<8x1xf32>
    %336 = tpu.reciprocal %335 : vector<8x1xf32> -> vector<8x1xf32>
    %337 = vector.broadcast %336 : vector<8x1xf32> to vector<8x8xf32>
    %338 = arith.mulf %333, %337 : vector<8x8xf32>
    %339 = vector.extract_strided_slice %263 {offsets = [0, 12], sizes = [8, 4], strides = [1, 1]} : vector<8x32xf32> to vector<8x4xf32>
    %cst_161 = arith.constant dense<0.000000e+00> : vector<8x4xf32>
    %340 = tpu.matmul %338, %339, %cst_161 {dimension_numbers = #tpu.dot_dimension_numbers<[1], [0], [0], [1], [0, 0, 1, 1], [], []>} : vector<8x8xf32>, vector<8x4xf32>, vector<8x4xf32> -> vector<8x4xf32>
    %c3_162 = arith.constant 3 : index
    %c0_163 = arith.constant 0 : index
    %c0_164 = arith.constant 0 : index
    %341 = vector.load %arg9[%c3_162, %c0_163, %c0_164] : memref<8x4x32xf32, #tpu.memory_space<vmem>>, vector<1x4x32xf32>
    %342 = vector.shape_cast %341 : vector<1x4x32xf32> to vector<4x32xf32>
    %cst_165 = arith.constant dense<0.000000e+00> : vector<8x32xf32>
    %343 = tpu.matmul %340, %342, %cst_165 {dimension_numbers = #tpu.dot_dimension_numbers<[1], [0], [0], [1], [0, 0, 1, 1], [], []>} : vector<8x4xf32>, vector<4x32xf32>, vector<8x32xf32> -> vector<8x32xf32>
    %344 = arith.addf %325, %343 : vector<8x32xf32>
    %345 = vector.extract_strided_slice %265 {offsets = [0, 16], sizes = [8, 4], strides = [1, 1]} : vector<8x32xf32> to vector<8x4xf32>
    %346 = vector.extract_strided_slice %260 {offsets = [0, 16], sizes = [8, 4], strides = [1, 1]} : vector<8x32xf32> to vector<8x4xf32>
    "tpu.trace_start"() <{level = 10 : i32, message = "qd,kd->qk"}> : () -> ()
    %cst_166 = arith.constant dense<0.000000e+00> : vector<8x8xf32>
    %347 = tpu.matmul %345, %346, %cst_166 {dimension_numbers = #tpu.dot_dimension_numbers<[1], [1], [0], [0], [0, 0, 1, 0], [], []>} : vector<8x4xf32>, vector<8x4xf32>, vector<8x8xf32> -> vector<8x8xf32>
    "tpu.trace_stop"() : () -> ()
    %cst_167 = arith.constant dense<0xFF800000> : vector<8xf32>
    %348 = vector.multi_reduction <maximumf>, %347, %cst_167 [1] : vector<8x8xf32> to vector<8xf32>
    %349 = vector.shape_cast %348 : vector<8xf32> to vector<8x1xf32>
    %350 = vector.broadcast %349 : vector<8x1xf32> to vector<8x8xf32>
    %351 = arith.subf %347, %350 : vector<8x8xf32>
    %352 = math.exp %351 : vector<8x8xf32>
    %cst_168 = arith.constant dense<0.000000e+00> : vector<8xf32>
    %353 = vector.multi_reduction <add>, %352, %cst_168 [1] : vector<8x8xf32> to vector<8xf32>
    %354 = vector.shape_cast %353 : vector<8xf32> to vector<8x1xf32>
    %355 = tpu.reciprocal %354 : vector<8x1xf32> -> vector<8x1xf32>
    %356 = vector.broadcast %355 : vector<8x1xf32> to vector<8x8xf32>
    %357 = arith.mulf %352, %356 : vector<8x8xf32>
    %358 = vector.extract_strided_slice %263 {offsets = [0, 16], sizes = [8, 4], strides = [1, 1]} : vector<8x32xf32> to vector<8x4xf32>
    %cst_169 = arith.constant dense<0.000000e+00> : vector<8x4xf32>
    %359 = tpu.matmul %357, %358, %cst_169 {dimension_numbers = #tpu.dot_dimension_numbers<[1], [0], [0], [1], [0, 0, 1, 1], [], []>} : vector<8x8xf32>, vector<8x4xf32>, vector<8x4xf32> -> vector<8x4xf32>
    %c4_170 = arith.constant 4 : index
    %c0_171 = arith.constant 0 : index
    %c0_172 = arith.constant 0 : index
    %360 = vector.load %arg9[%c4_170, %c0_171, %c0_172] : memref<8x4x32xf32, #tpu.memory_space<vmem>>, vector<1x4x32xf32>
    %361 = vector.shape_cast %360 : vector<1x4x32xf32> to vector<4x32xf32>
    %cst_173 = arith.constant dense<0.000000e+00> : vector<8x32xf32>
    %362 = tpu.matmul %359, %361, %cst_173 {dimension_numbers = #tpu.dot_dimension_numbers<[1], [0], [0], [1], [0, 0, 1, 1], [], []>} : vector<8x4xf32>, vector<4x32xf32>, vector<8x32xf32> -> vector<8x32xf32>
    %363 = arith.addf %344, %362 : vector<8x32xf32>
    %364 = vector.extract_strided_slice %265 {offsets = [0, 20], sizes = [8, 4], strides = [1, 1]} : vector<8x32xf32> to vector<8x4xf32>
    %365 = vector.extract_strided_slice %260 {offsets = [0, 20], sizes = [8, 4], strides = [1, 1]} : vector<8x32xf32> to vector<8x4xf32>
    "tpu.trace_start"() <{level = 10 : i32, message = "qd,kd->qk"}> : () -> ()
    %cst_174 = arith.constant dense<0.000000e+00> : vector<8x8xf32>
    %366 = tpu.matmul %364, %365, %cst_174 {dimension_numbers = #tpu.dot_dimension_numbers<[1], [1], [0], [0], [0, 0, 1, 0], [], []>} : vector<8x4xf32>, vector<8x4xf32>, vector<8x8xf32> -> vector<8x8xf32>
    "tpu.trace_stop"() : () -> ()
    %cst_175 = arith.constant dense<0xFF800000> : vector<8xf32>
    %367 = vector.multi_reduction <maximumf>, %366, %cst_175 [1] : vector<8x8xf32> to vector<8xf32>
    %368 = vector.shape_cast %367 : vector<8xf32> to vector<8x1xf32>
    %369 = vector.broadcast %368 : vector<8x1xf32> to vector<8x8xf32>
    %370 = arith.subf %366, %369 : vector<8x8xf32>
    %371 = math.exp %370 : vector<8x8xf32>
    %cst_176 = arith.constant dense<0.000000e+00> : vector<8xf32>
    %372 = vector.multi_reduction <add>, %371, %cst_176 [1] : vector<8x8xf32> to vector<8xf32>
    %373 = vector.shape_cast %372 : vector<8xf32> to vector<8x1xf32>
    %374 = tpu.reciprocal %373 : vector<8x1xf32> -> vector<8x1xf32>
    %375 = vector.broadcast %374 : vector<8x1xf32> to vector<8x8xf32>
    %376 = arith.mulf %371, %375 : vector<8x8xf32>
    %377 = vector.extract_strided_slice %263 {offsets = [0, 20], sizes = [8, 4], strides = [1, 1]} : vector<8x32xf32> to vector<8x4xf32>
    %cst_177 = arith.constant dense<0.000000e+00> : vector<8x4xf32>
    %378 = tpu.matmul %376, %377, %cst_177 {dimension_numbers = #tpu.dot_dimension_numbers<[1], [0], [0], [1], [0, 0, 1, 1], [], []>} : vector<8x8xf32>, vector<8x4xf32>, vector<8x4xf32> -> vector<8x4xf32>
    %c5_178 = arith.constant 5 : index
    %c0_179 = arith.constant 0 : index
    %c0_180 = arith.constant 0 : index
    %379 = vector.load %arg9[%c5_178, %c0_179, %c0_180] : memref<8x4x32xf32, #tpu.memory_space<vmem>>, vector<1x4x32xf32>
    %380 = vector.shape_cast %379 : vector<1x4x32xf32> to vector<4x32xf32>
    %cst_181 = arith.constant dense<0.000000e+00> : vector<8x32xf32>
    %381 = tpu.matmul %378, %380, %cst_181 {dimension_numbers = #tpu.dot_dimension_numbers<[1], [0], [0], [1], [0, 0, 1, 1], [], []>} : vector<8x4xf32>, vector<4x32xf32>, vector<8x32xf32> -> vector<8x32xf32>
    %382 = arith.addf %363, %381 : vector<8x32xf32>
    %383 = vector.extract_strided_slice %265 {offsets = [0, 24], sizes = [8, 4], strides = [1, 1]} : vector<8x32xf32> to vector<8x4xf32>
    %384 = vector.extract_strided_slice %260 {offsets = [0, 24], sizes = [8, 4], strides = [1, 1]} : vector<8x32xf32> to vector<8x4xf32>
    "tpu.trace_start"() <{level = 10 : i32, message = "qd,kd->qk"}> : () -> ()
    %cst_182 = arith.constant dense<0.000000e+00> : vector<8x8xf32>
    %385 = tpu.matmul %383, %384, %cst_182 {dimension_numbers = #tpu.dot_dimension_numbers<[1], [1], [0], [0], [0, 0, 1, 0], [], []>} : vector<8x4xf32>, vector<8x4xf32>, vector<8x8xf32> -> vector<8x8xf32>
    "tpu.trace_stop"() : () -> ()
    %cst_183 = arith.constant dense<0xFF800000> : vector<8xf32>
    %386 = vector.multi_reduction <maximumf>, %385, %cst_183 [1] : vector<8x8xf32> to vector<8xf32>
    %387 = vector.shape_cast %386 : vector<8xf32> to vector<8x1xf32>
    %388 = vector.broadcast %387 : vector<8x1xf32> to vector<8x8xf32>
    %389 = arith.subf %385, %388 : vector<8x8xf32>
    %390 = math.exp %389 : vector<8x8xf32>
    %cst_184 = arith.constant dense<0.000000e+00> : vector<8xf32>
    %391 = vector.multi_reduction <add>, %390, %cst_184 [1] : vector<8x8xf32> to vector<8xf32>
    %392 = vector.shape_cast %391 : vector<8xf32> to vector<8x1xf32>
    %393 = tpu.reciprocal %392 : vector<8x1xf32> -> vector<8x1xf32>
    %394 = vector.broadcast %393 : vector<8x1xf32> to vector<8x8xf32>
    %395 = arith.mulf %390, %394 : vector<8x8xf32>
    %396 = vector.extract_strided_slice %263 {offsets = [0, 24], sizes = [8, 4], strides = [1, 1]} : vector<8x32xf32> to vector<8x4xf32>
    %cst_185 = arith.constant dense<0.000000e+00> : vector<8x4xf32>
    %397 = tpu.matmul %395, %396, %cst_185 {dimension_numbers = #tpu.dot_dimension_numbers<[1], [0], [0], [1], [0, 0, 1, 1], [], []>} : vector<8x8xf32>, vector<8x4xf32>, vector<8x4xf32> -> vector<8x4xf32>
    %c6_186 = arith.constant 6 : index
    %c0_187 = arith.constant 0 : index
    %c0_188 = arith.constant 0 : index
    %398 = vector.load %arg9[%c6_186, %c0_187, %c0_188] : memref<8x4x32xf32, #tpu.memory_space<vmem>>, vector<1x4x32xf32>
    %399 = vector.shape_cast %398 : vector<1x4x32xf32> to vector<4x32xf32>
    %cst_189 = arith.constant dense<0.000000e+00> : vector<8x32xf32>
    %400 = tpu.matmul %397, %399, %cst_189 {dimension_numbers = #tpu.dot_dimension_numbers<[1], [0], [0], [1], [0, 0, 1, 1], [], []>} : vector<8x4xf32>, vector<4x32xf32>, vector<8x32xf32> -> vector<8x32xf32>
    %401 = arith.addf %382, %400 : vector<8x32xf32>
    %402 = vector.extract_strided_slice %265 {offsets = [0, 28], sizes = [8, 4], strides = [1, 1]} : vector<8x32xf32> to vector<8x4xf32>
    %403 = vector.extract_strided_slice %260 {offsets = [0, 28], sizes = [8, 4], strides = [1, 1]} : vector<8x32xf32> to vector<8x4xf32>
    "tpu.trace_start"() <{level = 10 : i32, message = "qd,kd->qk"}> : () -> ()
    %cst_190 = arith.constant dense<0.000000e+00> : vector<8x8xf32>
    %404 = tpu.matmul %402, %403, %cst_190 {dimension_numbers = #tpu.dot_dimension_numbers<[1], [1], [0], [0], [0, 0, 1, 0], [], []>} : vector<8x4xf32>, vector<8x4xf32>, vector<8x8xf32> -> vector<8x8xf32>
    "tpu.trace_stop"() : () -> ()
    %cst_191 = arith.constant dense<0xFF800000> : vector<8xf32>
    %405 = vector.multi_reduction <maximumf>, %404, %cst_191 [1] : vector<8x8xf32> to vector<8xf32>
    %406 = vector.shape_cast %405 : vector<8xf32> to vector<8x1xf32>
    %407 = vector.broadcast %406 : vector<8x1xf32> to vector<8x8xf32>
    %408 = arith.subf %404, %407 : vector<8x8xf32>
    %409 = math.exp %408 : vector<8x8xf32>
    %cst_192 = arith.constant dense<0.000000e+00> : vector<8xf32>
    %410 = vector.multi_reduction <add>, %409, %cst_192 [1] : vector<8x8xf32> to vector<8xf32>
    %411 = vector.shape_cast %410 : vector<8xf32> to vector<8x1xf32>
    %412 = tpu.reciprocal %411 : vector<8x1xf32> -> vector<8x1xf32>
    %413 = vector.broadcast %412 : vector<8x1xf32> to vector<8x8xf32>
    %414 = arith.mulf %409, %413 : vector<8x8xf32>
    %415 = vector.extract_strided_slice %263 {offsets = [0, 28], sizes = [8, 4], strides = [1, 1]} : vector<8x32xf32> to vector<8x4xf32>
    %cst_193 = arith.constant dense<0.000000e+00> : vector<8x4xf32>
    %416 = tpu.matmul %414, %415, %cst_193 {dimension_numbers = #tpu.dot_dimension_numbers<[1], [0], [0], [1], [0, 0, 1, 1], [], []>} : vector<8x8xf32>, vector<8x4xf32>, vector<8x4xf32> -> vector<8x4xf32>
    %c7_194 = arith.constant 7 : index
    %c0_195 = arith.constant 0 : index
    %c0_196 = arith.constant 0 : index
    %417 = vector.load %arg9[%c7_194, %c0_195, %c0_196] : memref<8x4x32xf32, #tpu.memory_space<vmem>>, vector<1x4x32xf32>
    %418 = vector.shape_cast %417 : vector<1x4x32xf32> to vector<4x32xf32>
    %cst_197 = arith.constant dense<0.000000e+00> : vector<8x32xf32>
    %419 = tpu.matmul %416, %418, %cst_197 {dimension_numbers = #tpu.dot_dimension_numbers<[1], [0], [0], [1], [0, 0, 1, 1], [], []>} : vector<8x4xf32>, vector<4x32xf32>, vector<8x32xf32> -> vector<8x32xf32>
    %420 = arith.addf %401, %419 : vector<8x32xf32>
    %cst_198 = arith.constant dense<0.000000e+00> : vector<8xf32>
    %421 = vector.multi_reduction <add>, %420, %cst_198 [1] : vector<8x32xf32> to vector<8xf32>
    %422 = vector.shape_cast %421 : vector<8xf32> to vector<8x1xf32>
    %cst_199 = arith.constant 3.200000e+01 : f32
    %423 = vector.broadcast %cst_199 : f32 to vector<8x1xf32>
    %424 = arith.divf %422, %423 : vector<8x1xf32>
    %425 = vector.broadcast %424 : vector<8x1xf32> to vector<8x32xf32>
    %426 = arith.subf %420, %425 : vector<8x32xf32>
    %427 = arith.mulf %426, %426 : vector<8x32xf32>
    %cst_200 = arith.constant dense<0.000000e+00> : vector<8xf32>
    %428 = vector.multi_reduction <add>, %427, %cst_200 [1] : vector<8x32xf32> to vector<8xf32>
    %429 = vector.shape_cast %428 : vector<8xf32> to vector<8x1xf32>
    %cst_201 = arith.constant 3.200000e+01 : f32
    %430 = vector.broadcast %cst_201 : f32 to vector<8x1xf32>
    %431 = arith.divf %429, %430 : vector<8x1xf32>
    %432 = vector.broadcast %424 : vector<8x1xf32> to vector<8x32xf32>
    %433 = arith.subf %420, %432 : vector<8x32xf32>
    %cst_202 = arith.constant 9.99999974E-6 : f32
    %434 = vector.broadcast %cst_202 : f32 to vector<8x1xf32>
    %435 = arith.addf %431, %434 : vector<8x1xf32>
    %436 = math.rsqrt %435 : vector<8x1xf32>
    %437 = vector.broadcast %436 : vector<8x1xf32> to vector<8x32xf32>
    %438 = arith.mulf %433, %437 : vector<8x32xf32>
    %439 = vector.broadcast %7 : vector<1x32xf32> to vector<8x32xf32>
    %440 = arith.mulf %438, %439 : vector<8x32xf32>
    %441 = vector.broadcast %8 : vector<1x32xf32> to vector<8x32xf32>
    %442 = arith.addf %440, %441 : vector<8x32xf32>
    %cst_203 = arith.constant dense<0xFF800000> : vector<32xf32>
    %443 = vector.multi_reduction <maximumf>, %442, %cst_203 [0] : vector<8x32xf32> to vector<32xf32>
    %444 = vector.shape_cast %443 : vector<32xf32> to vector<1x32xf32>
    %cst_204 = arith.constant dense<0.000000e+00> : vector<32xf32>
    %445 = vector.multi_reduction <add>, %252, %cst_204 [0] : vector<8x32xf32> to vector<32xf32>
    %446 = vector.shape_cast %445 : vector<32xf32> to vector<1x32xf32>
    %cst_205 = arith.constant 8.000000e+00 : f32
    %447 = vector.broadcast %cst_205 : f32 to vector<1x32xf32>
    %448 = arith.divf %446, %447 : vector<1x32xf32>
    %cst_206 = arith.constant dense<0.000000e+00> : vector<1x16xf32>
    %449 = tpu.matmul %444, %9, %cst_206 {dimension_numbers = #tpu.dot_dimension_numbers<[1], [0], [0], [1], [0, 0, 1, 1], [], []>} : vector<1x32xf32>, vector<32x16xf32>, vector<1x16xf32> -> vector<1x16xf32>
    %cst_207 = arith.constant dense<0.000000e+00> : vector<1x16xf32>
    %450 = tpu.matmul %448, %10, %cst_207 {dimension_numbers = #tpu.dot_dimension_numbers<[1], [0], [0], [1], [0, 0, 1, 1], [], []>} : vector<1x32xf32>, vector<32x16xf32>, vector<1x16xf32> -> vector<1x16xf32>
    %451 = arith.addf %449, %450 : vector<1x16xf32>
    %452 = arith.addf %451, %11 : vector<1x16xf32>
    %cst_208 = arith.constant 0.000000e+00 : f32
    %453 = vector.broadcast %cst_208 : f32 to vector<1x16xf32>
    %454 = arith.maximumf %452, %453 : vector<1x16xf32>
    %cst_209 = arith.constant dense<0.000000e+00> : vector<1x1xf32>
    %455 = tpu.matmul %454, %12, %cst_209 {dimension_numbers = #tpu.dot_dimension_numbers<[1], [0], [0], [1], [0, 0, 1, 1], [], []>} : vector<1x16xf32>, vector<16x1xf32>, vector<1x1xf32> -> vector<1x1xf32>
    %456 = arith.addf %455, %13 : vector<1x1xf32>
    %457 = arith.negf %456 : vector<1x1xf32>
    %458 = math.exp %457 : vector<1x1xf32>
    %cst_210 = arith.constant 1.000000e+00 : f32
    %459 = vector.broadcast %cst_210 : f32 to vector<1x1xf32>
    %460 = arith.addf %459, %458 : vector<1x1xf32>
    %461 = arith.divf %459, %460 : vector<1x1xf32>
    %cst_211 = arith.constant dense<0.000000e+00> : vector<8x16xf32>
    %462 = tpu.matmul %442, %14, %cst_211 {dimension_numbers = #tpu.dot_dimension_numbers<[1], [0], [0], [1], [0, 0, 1, 1], [], []>} : vector<8x32xf32>, vector<32x16xf32>, vector<8x16xf32> -> vector<8x16xf32>
    %463 = vector.broadcast %15 : vector<1x16xf32> to vector<8x16xf32>
    %464 = arith.addf %462, %463 : vector<8x16xf32>
    %cst_212 = arith.constant 0.000000e+00 : f32
    %465 = vector.broadcast %cst_212 : f32 to vector<8x16xf32>
    %466 = arith.maximumf %464, %465 : vector<8x16xf32>
    %cst_213 = arith.constant dense<0.000000e+00> : vector<8x32xf32>
    %467 = tpu.matmul %466, %16, %cst_213 {dimension_numbers = #tpu.dot_dimension_numbers<[1], [0], [0], [1], [0, 0, 1, 1], [], []>} : vector<8x16xf32>, vector<16x32xf32>, vector<8x32xf32> -> vector<8x32xf32>
    %468 = vector.broadcast %17 : vector<1x32xf32> to vector<8x32xf32>
    %469 = arith.addf %467, %468 : vector<8x32xf32>
    %470 = arith.negf %469 : vector<8x32xf32>
    %471 = math.exp %470 : vector<8x32xf32>
    %cst_214 = arith.constant 1.000000e+00 : f32
    %472 = vector.broadcast %cst_214 : f32 to vector<8x32xf32>
    %473 = arith.addf %472, %471 : vector<8x32xf32>
    %474 = arith.divf %472, %473 : vector<8x32xf32>
    %475 = arith.mulf %442, %474 : vector<8x32xf32>
    %cst_215 = arith.constant 1.000000e+00 : f32
    %476 = vector.broadcast %cst_215 : f32 to vector<1x1xf32>
    %477 = arith.subf %476, %461 : vector<1x1xf32>
    %478 = vector.broadcast %477 : vector<1x1xf32> to vector<8x32xf32>
    %479 = arith.mulf %475, %478 : vector<8x32xf32>
    %480 = arith.addf %252, %479 : vector<8x32xf32>
    %c1_216 = arith.constant 1 : index
    %c0_217 = arith.constant 0 : index
    %c0_218 = arith.constant 0 : index
    %481 = vector.load %arg22[%c1_216, %c0_217, %c0_218] : memref<2x8x32xf32, #tpu.memory_space<vmem>>, vector<1x8x32xf32>
    %482 = vector.shape_cast %481 : vector<1x8x32xf32> to vector<8x32xf32>
    %483 = vector.shape_cast %480 : vector<8x32xf32> to vector<1x8x32xf32>
    tpu.vector_store %arg22[%c1_216, %c0_217, %c0_218], %483 {strides = array<i32>} : memref<2x8x32xf32, #tpu.memory_space<vmem>>, vector<1x8x32xf32>,
    return
  }
  func.func @transform_0(%arg0: i32) -> (i32, i32, i32) {
    %c0_i32 = arith.constant 0 : i32
    %c0_i32_0 = arith.constant 0 : i32
    %c0_i32_1 = arith.constant 0 : i32
    return %arg0, %c0_i32, %c0_i32_0 : i32, i32, i32
  }
  func.func @transform_1(%arg0: i32) -> (i32, i32, i32) {
    %c0_i32 = arith.constant 0 : i32
    %c0_i32_0 = arith.constant 0 : i32
    %c0_i32_1 = arith.constant 0 : i32
    return %arg0, %c0_i32, %c0_i32_0 : i32, i32, i32
  }
  func.func @transform_2(%arg0: i32) -> (i32, i32) {
    %c0_i32 = arith.constant 0 : i32
    %c0_i32_0 = arith.constant 0 : i32
    %c0_i32_1 = arith.constant 0 : i32
    return %c0_i32, %c0_i32_0 : i32, i32
  }
  func.func @transform_3(%arg0: i32) -> (i32, i32) {
    %c0_i32 = arith.constant 0 : i32
    %c0_i32_0 = arith.constant 0 : i32
    %c0_i32_1 = arith.constant 0 : i32
    return %c0_i32, %c0_i32_0 : i32, i32
  }
  func.func @transform_4(%arg0: i32) -> (i32, i32) {
    %c0_i32 = arith.constant 0 : i32
    %c0_i32_0 = arith.constant 0 : i32
    %c0_i32_1 = arith.constant 0 : i32
    return %c0_i32, %c0_i32_0 : i32, i32
  }
  func.func @transform_5(%arg0: i32) -> (i32, i32) {
    %c0_i32 = arith.constant 0 : i32
    %c0_i32_0 = arith.constant 0 : i32
    %c0_i32_1 = arith.constant 0 : i32
    return %c0_i32, %c0_i32_0 : i32, i32
  }
  func.func @transform_6(%arg0: i32) -> (i32, i32) {
    %c0_i32 = arith.constant 0 : i32
    %c0_i32_0 = arith.constant 0 : i32
    %c0_i32_1 = arith.constant 0 : i32
    return %c0_i32, %c0_i32_0 : i32, i32
  }
  func.func @transform_7(%arg0: i32) -> (i32, i32) {
    %c0_i32 = arith.constant 0 : i32
    %c0_i32_0 = arith.constant 0 : i32
    %c0_i32_1 = arith.constant 0 : i32
    return %c0_i32, %c0_i32_0 : i32, i32
  }
  func.func @transform_8(%arg0: i32) -> (i32, i32, i32) {
    %c0_i32 = arith.constant 0 : i32
    %c0_i32_0 = arith.constant 0 : i32
    %c0_i32_1 = arith.constant 0 : i32
    %c0_i32_2 = arith.constant 0 : i32
    return %c0_i32, %c0_i32_0, %c0_i32_1 : i32, i32, i32
  }
  func.func @transform_9(%arg0: i32) -> (i32, i32) {
    %c0_i32 = arith.constant 0 : i32
    %c0_i32_0 = arith.constant 0 : i32
    %c0_i32_1 = arith.constant 0 : i32
    return %c0_i32, %c0_i32_0 : i32, i32
  }
  func.func @transform_10(%arg0: i32) -> (i32, i32) {
    %c0_i32 = arith.constant 0 : i32
    %c0_i32_0 = arith.constant 0 : i32
    %c0_i32_1 = arith.constant 0 : i32
    return %c0_i32, %c0_i32_0 : i32, i32
  }
  func.func @transform_11(%arg0: i32) -> (i32, i32) {
    %c0_i32 = arith.constant 0 : i32
    %c0_i32_0 = arith.constant 0 : i32
    %c0_i32_1 = arith.constant 0 : i32
    return %c0_i32, %c0_i32_0 : i32, i32
  }
  func.func @transform_12(%arg0: i32) -> (i32, i32) {
    %c0_i32 = arith.constant 0 : i32
    %c0_i32_0 = arith.constant 0 : i32
    %c0_i32_1 = arith.constant 0 : i32
    return %c0_i32, %c0_i32_0 : i32, i32
  }
  func.func @transform_13(%arg0: i32) -> (i32, i32) {
    %c0_i32 = arith.constant 0 : i32
    %c0_i32_0 = arith.constant 0 : i32
    %c0_i32_1 = arith.constant 0 : i32
    return %c0_i32, %c0_i32_0 : i32, i32
  }
  func.func @transform_14(%arg0: i32) -> (i32, i32) {
    %c0_i32 = arith.constant 0 : i32
    %c0_i32_0 = arith.constant 0 : i32
    %c0_i32_1 = arith.constant 0 : i32
    return %c0_i32, %c0_i32_0 : i32, i32
  }
  func.func @transform_15(%arg0: i32) -> (i32, i32) {
    %c0_i32 = arith.constant 0 : i32
    %c0_i32_0 = arith.constant 0 : i32
    %c0_i32_1 = arith.constant 0 : i32
    return %c0_i32, %c0_i32_0 : i32, i32
  }
  func.func @transform_16(%arg0: i32) -> (i32, i32) {
    %c0_i32 = arith.constant 0 : i32
    %c0_i32_0 = arith.constant 0 : i32
    %c0_i32_1 = arith.constant 0 : i32
    return %c0_i32, %c0_i32_0 : i32, i32
  }
  func.func @transform_17(%arg0: i32) -> (i32, i32) {
    %c0_i32 = arith.constant 0 : i32
    %c0_i32_0 = arith.constant 0 : i32
    %c0_i32_1 = arith.constant 0 : i32
    return %c0_i32, %c0_i32_0 : i32, i32
  }
  func.func @transform_18(%arg0: i32) -> (i32, i32) {
    %c0_i32 = arith.constant 0 : i32
    %c0_i32_0 = arith.constant 0 : i32
    %c0_i32_1 = arith.constant 0 : i32
    return %c0_i32, %c0_i32_0 : i32, i32
  }
  func.func @transform_19(%arg0: i32) -> (i32, i32) {
    %c0_i32 = arith.constant 0 : i32
    %c0_i32_0 = arith.constant 0 : i32
    %c0_i32_1 = arith.constant 0 : i32
    return %c0_i32, %c0_i32_0 : i32, i32
  }
  func.func @transform_20(%arg0: i32) -> (i32, i32) {
    %c0_i32 = arith.constant 0 : i32
    %c0_i32_0 = arith.constant 0 : i32
    %c0_i32_1 = arith.constant 0 : i32
    return %c0_i32, %c0_i32_0 : i32, i32
  }
  func.func @transform_21(%arg0: i32) -> (i32, i32, i32) {
    %c0_i32 = arith.constant 0 : i32
    %c0_i32_0 = arith.constant 0 : i32
    %c0_i32_1 = arith.constant 0 : i32
    return %arg0, %c0_i32, %c0_i32_0 : i32, i32, i32
  }
}

</mosaic_0001>

<bundles_post_ra>
// kernel: tpu_custom_call.1
= control target key start
LH: loop header
LB: loop body
LE: loop exit
PB: predicated region body
PF: predicated region fallthrough
CT: control target
= control target key end

     0   :  { %s7314_s0 = inlined_call_operand.hbm [shape: f32[2,8,32], index: 0, kind: input, shape index: {}]   ;;  %s7315_s1 = inlined_call_operand.hbm [shape: f32[2,8,32], index: 1, kind: input, shape index: {}]   ;;  %s7316_s2 = inlined_call_operand.vmem [shape: f32[32,32], index: 2, kind: input, shape index: {}]   ;;  %s7317_s3 = inlined_call_operand.hbm [shape: f32[1,32], index: 3, kind: input, shape index: {}]   ;;  %s7318_s4 = inlined_call_operand.vmem [shape: f32[32,32], index: 4, kind: input, shape index: {}]   ;;  %s7319_s5 = inlined_call_operand.vmem [shape: f32[1,32], index: 5, kind: input, shape index: {}]   ;;  %s7320_s6 = inlined_call_operand.vmem [shape: f32[32,32], index: 6, kind: input, shape index: {}]   ;;  %s7321_s7 = inlined_call_operand.vmem [shape: f32[1,32], index: 7, kind: input, shape index: {}]   ;;  %s7322_s8 = inlined_call_operand.vmem [shape: f32[8,4,32], index: 8, kind: input, shape index: {}]   ;;  %s7323_s9 = inlined_call_operand.vmem [shape: f32[1,32], index: 9, kind: input, shape index: {}]   ;;  %s7324_s10 = inlined_call_operand.vmem [shape: f32[1,32], index: 10, kind: input, shape index: {}]   ;;  %s7325_s11 = inlined_call_operand.vmem [shape: f32[1,32], index: 11, kind: input, shape index: {}]   ;;  %s7326_s12 = inlined_call_operand.vmem [shape: f32[32,16], index: 12, kind: input, shape index: {}]   ;;  %s7327_s13 = inlined_call_operand.vmem [shape: f32[32,16], index: 13, kind: input, shape index: {}]   ;;  %s7328_s14 = inlined_call_operand.vmem [shape: f32[1,16], index: 14, kind: input, shape index: {}]   ;;  %s7329_s15 = inlined_call_operand.vmem [shape: f32[16,1], index: 15, kind: input, shape index: {}]   ;;  %s7330_s16 = inlined_call_operand.<no memory space> [shape: f32[1,1], index: 16, kind: input, shape index: {}]   ;;  %s7331_s17 = inlined_call_operand.vmem [shape: f32[32,16], index: 17, kind: input, shape index: {}]   ;;  %s7332_s18 = inlined_call_operand.vmem [shape: f32[1,16], index: 18, kind: input, shape index: {}]   ;;  %s7333_s19 = inlined_call_operand.vmem [shape: f32[16,32], index: 19, kind: input, shape index: {}]   ;;  %s7334_s20 = inlined_call_operand.vmem [shape: f32[1,32], index: 20, kind: input, shape index: {}]   ;;  %s7335_s21 = inlined_call_operand.hbm [shape: f32[2,8,32], index: 21, kind: output, shape index: {}]  }
   0x1   :  { %7342 = sst [smem:[#allocation13_spill]] %s7314_s0  ;;  %v26_v0 = vstv %s7330_s16 }
   0x2   :  { %7343 = sst [smem:[#allocation14_spill]] %s7315_s1  ;;  %27 = vst [vmem:[#allocation2] sm:$0x1] %v26_v0 }
   0x3   :  { %7344 = sst [smem:[#allocation15_spill]] %s7316_s2 }
   0x4   :  { %7345 = sst [smem:[#allocation16_spill]] %s7317_s3 }
   0x5   :  { %7346 = sst [smem:[#allocation17_spill]] %s7318_s4 }
   0x6   :  { %7347 = sst [smem:[#allocation18_spill]] %s7319_s5 }
   0x7   :  { %7348 = sst [smem:[#allocation19_spill]] %s7335_s21 }
   0x8   :  { %28 = vsyncpa [#allocation4], 0 }
   0x9   :  { %29 = vsyncpa [#allocation7], 0 }
   0xa   :  { %30 = vsyncpa [#allocation5], 0  ;;  %s6390_s26 = smov [#allocation6]   ;;  %s6391_s3 = smov [#allocation3]  }
   0xb   :  { %s48_s27 = sshll.u32 %s6390_s26, 4  ;;  %s36_s28 = sshll.u32 %s6391_s3, 4  ;;  %s49_s27 = int_to_ptr.vmem [resolvable:$true] %s48_s27  ;;  %s6519_s28 = int_to_ptr.vmem [resolvable:$true] %s36_s28 }
   0xc   :  { %s7349_s4 = sld [smem:[#allocation14_spill]] }
  0x12   :  { %s6296_s30 = scalar_lea.hbm %s7349_s4, 256 }
  0x13   :  { %p6297_p0 = scmp.ne.s32.totalorder %s7349_s4, %s6296_s30  ;;  %p6300_p1 = scmp.lt.u32.totalorder %s6296_s30, %s7349_s4 }
  0x15   :  { %p6302_p2 = pnand %p6300_p1, %p6297_p0 }
  0x17   :  { %6305 = shalt.err (!%p6302_p2)
}
  0x18   :  { %s6306_s1 = scalar_lea.vmem %s49_s27, 256  ;;  %p6311_p4 = scmp.lt.s32.totalorder %s49_s27, %s49_s27 }
  0x19   :  { %p6307_p3 = scmp.ne.s32.totalorder %s49_s27, %s6306_s1  ;;  %p6312_p5 = scmp.lt.s32.totalorder %s6306_s1, %s6306_s1 }
  0x1b   :  { %p6313_p6 = por %p6312_p5, %p6311_p4 }
  0x1d   :  { %p6314_p7 = pnand %p6313_p6, %p6307_p3 }
  0x1f   :  { %6317 = shalt.err (!%p6314_p7)
}
  0x20   :  { %s6392_s24 = smov 128   ;;  %s6393_s2 = smov 8  }
  0x21   :  { %54 = dma.hbm_to_vmem [thread:$0]  %s7349_s4, 256, %s49_s27, [#allocation7], %s6392_s24, %s6392_s24, %s6393_s2  }
  0x22   :  { %s7350_s0 = sld [smem:[#allocation13_spill]] }
  0x28   :  { %s6318_s30 = scalar_lea.hbm %s7350_s0, 256 }
  0x29   :  { %p6319_p8 = scmp.ne.s32.totalorder %s7350_s0, %s6318_s30  ;;  %p6322_p9 = scmp.lt.u32.totalorder %s6318_s30, %s7350_s0 }
  0x2b   :  { %p6324_p10 = pnand %p6322_p9, %p6319_p8 }
  0x2d   :  { %6327 = shalt.err (!%p6324_p10)
}
  0x2e   :  { %s6328_s1 = scalar_lea.vmem %s6519_s28, 256  ;;  %p6333_p12 = scmp.lt.s32.totalorder %s6519_s28, %s6519_s28 }
  0x2f   :  { %p6329_p11 = scmp.ne.s32.totalorder %s6519_s28, %s6328_s1  ;;  %p6334_p13 = scmp.lt.s32.totalorder %s6328_s1, %s6328_s1 }
  0x31   :  { %p6335_p0 = por %p6334_p13, %p6333_p12 }
  0x33   :  { %p6336_p1 = pnand %p6335_p0, %p6329_p11 }
  0x35   :  { %6339 = shalt.err (!%p6336_p1)
}
  0x36   :  { %42 = dma.hbm_to_vmem [thread:$0]  %s7350_s0, 256, %s6519_s28, [#allocation4], %s6392_s24, %s6392_s24, %s6393_s2  }
  0x37   :  { %s6394_s25 = smov [#allocation8]   ;;  %s7351_s30 = sld [smem:[#allocation16_spill]] }
  0x38   :  { %s63_s26 = sshll.u32 %s6394_s25, 4  ;;  %s64_s26 = int_to_ptr.vmem [resolvable:$true] %s63_s26 }
  0x3d   :  { %s6340_s5 = scalar_lea.hbm %s7351_s30, 16 }
  0x3e   :  { %p6341_p2 = scmp.ne.s32.totalorder %s7351_s30, %s6340_s5  ;;  %p6344_p3 = scmp.lt.u32.totalorder %s6340_s5, %s7351_s30 }
  0x40   :  { %p6346_p4 = pnand %p6344_p3, %p6341_p2 }
  0x42   :  { %6349 = shalt.err (!%p6346_p4)
}
  0x43   :  { %s6350_s21 = scalar_lea.vmem %s64_s26, 16  ;;  %s6354_s28 = scalar_lea.vmem %s64_s26, 32 }
  0x44   :  { %p6351_p5 = scmp.ne.s32.totalorder %s64_s26, %s6350_s21  ;;  %p6355_p6 = scmp.lt.s32.totalorder %s64_s26, %s64_s26 }
  0x45   :  { %p6356_p7 = scmp.lt.s32.totalorder %s6354_s28, %s6350_s21 }
  0x47   :  { %p6357_p8 = por %p6356_p7, %p6355_p6 }
  0x49   :  { %p6358_p9 = pnand %p6357_p8, %p6351_p5 }
  0x4b   :  { %6361 = shalt.err (!%p6358_p9)
}
  0x4c   :  { %66 = dma.hbm_to_vmem [thread:$0]  %s7351_s30, 16, %s64_s26, [#allocation7]  }
  0x4d   :  { %6384 = dma.done.wait [#allocation4], 256  }
  0x4e   :  { %6385 = vsyncadd [#allocation4], 4294967040 }
  0x4f   :  { %6386 = dma.done.wait [#allocation7], 272  }
  0x50   :  { %6387 = vsyncadd [#allocation7], 4294967024  ;;  %v6395_v1 = vmov 0.0|0.0   ;;  %vm6396_vm0 = vmmov 0   ;;  %v6397_v2 = vmov 0.0   ;;  %s7352_s25 = sld [smem:[#allocation17_spill]] }
  0x51   :  { %6084 = vmatprep.subr.bf16.mxu1 %v6395_v1  ;;  %6078 = vmatprep.subr.bf16.mxu0 %v6395_v1  ;;  %s7353_s5 = sld [smem:[#allocation15_spill]]  ;;  %v149_v15 = vld [vmem:[#allocation6] sm:$0xff]  ;;  %vm156_vm1 = vcmask 261120   ;;  %v6612_v16 = vld [vmem:[#allocation3] sm:$0xff]  ;;  %s7354_s29 = sld [smem:[#allocation18_spill]]  ;;  %vm393_vm2 = vcmask 31744  }
  0x52   :  { %5697 = vmatprep.mubr.msk.f32.mxu1 %vm6396_vm0, %v6397_v2  ;;  %5686 = vmatprep.mubr.msk.f32.mxu0 %vm6396_vm0, %v6397_v2  ;;  %v6628_v18 = vld [vmem:[#allocation8] ss:$0 sm:$0xff]  ;;  %s6398_s30 = smov 124   ;;  %v119_v27 = vld [vmem:[%s7320_s6 + $0x8] sm:$0xff]  ;;  %v120_v28 = vld [vmem:[%s7320_s6 + $0x10] sm:$0xff]  ;;  %vm470_vm3 = vcmask 64512  }
  0x53   :  { %v118_v26 = vld [vmem:[%s7320_s6] sm:$0xff]  ;;  %v121_v30 = vld [vmem:[%s7320_s6 + $0x18] sm:$0xff]  ;;  %vm559_vm4 = vcmask 1043456   ;;  %s6401_s3 = smov 112   ;;  %s6403_s22 = smov 104   ;;  %vm2535_vm5 = vcmask 130048  }
  0x54   :  { %v6658_v29 = vpack.c.bf16 %v119_v27, %v118_v26  ;;  %v6664_v31 = vpack.c.bf16 %v121_v30, %v120_v28  ;;  %v6677_v40 = vld [vmem:[%s7321_s7] ss:$0 sm:$0xff]  ;;  %s6404_s1 = smov 100  }
  0x55   :  { %v555_v51 = vld [vmem:[%s7322_s8] sm:$0xf] }
  0x56   :  { %v114_v3 = vld [vmem:[%s7352_s25] sm:$0xff]  ;;  %v115_v4 = vld [vmem:[%s7352_s25 + $0x8] sm:$0xff]  ;;  %v116_v8 = vld [vmem:[%s7352_s25 + $0x10] sm:$0xff] }
  0x57   :  { %v110_v5 = vld [vmem:[%s7353_s5] sm:$0xff]  ;;  %v6583_v6 = vpack.c.bf16 %v115_v4, %v114_v3  ;;  %v111_v7 = vld [vmem:[%s7353_s5 + $0x8] sm:$0xff]  ;;  %v117_v9 = vld [vmem:[%s7352_s25 + $0x18] sm:$0xff]  ;;  %s6400_s25 = smov 116  }
  0x58   :  { %v6594_v10 = vpack.c.bf16 %v111_v7, %v110_v5  ;;  %v112_v11 = vld [vmem:[%s7353_s5 + $0x10] sm:$0xff]  ;;  %v113_v12 = vld [vmem:[%s7353_s5 + $0x18] sm:$0xff]  ;;  %v6603_v13 = vpack.c.bf16 %v117_v9, %v116_v8  ;;  %v6626_v17 = vld [vmem:[%s7354_s29] ss:$0 sm:$0xff]  ;;  %s6399_s5 = smov 120   ;;  %s6402_s29 = smov 108  }
  0x59   :  { %6086 = vmatpush3.bf16.msra.mxu1 %v6583_v6  ;;  %v6607_v14 = vpack.c.bf16 %v113_v12, %v112_v11 }
  0x5a   :  { %6080 = vmatpush3.bf16.msra.mxu0 %v6594_v10  ;;  %6087 = vmatprep.subr.bf16.mxu1 %v6395_v1 }
  0x5b   :  { %6081 = vmatprep.subr.bf16.mxu0 %v6395_v1 }
  0x5d   :  { %6089 = vmatpush3.bf16.msra.mxu1 %v6603_v13 }
  0x5e   :  { %6083 = vmatpush3.bf16.msra.mxu0 %v6607_v14  ;;  %5711 = vmatprep.subr.mxu1 %v6397_v2 }
  0x5f   :  { %6090 = vmatprep.subr.bf16.mxu0 %v6395_v1 }
  0x60   :  { %5698 = vmatmul.mubr.msk.f32.vlgmr.msra.gmra.mrb[0].mxu1 %vm156_vm1, %v149_v15 }
  0x61   :  { %5687 = vmatmul.mubr.msk.f32.vlgmr.msra.gmra.mrb[0].mxu0 %vm156_vm1, %v6612_v16  ;;  %5713 = vmatprep.mubr.msk.f32.mxu1 %vm6396_vm0, %v6397_v2 }
  0x62   :  { %5708 = vmatprep.mubr.msk.f32.mxu0 %vm6396_vm0, %v6397_v2  ;;  %6092 = vmatpush3.bf16.msra.mxu0 %v6658_v29 }
  0x63   :  { %6093 = vmatprep.subr.bf16.mxu0 %v6395_v1 }
  0x66   :  { %6095 = vmatpush3.bf16.msra.mxu0 %v6664_v31 }
  0x67   :  { %5721 = vmatprep.subr.mxu0 %v6397_v2 }
  0x69   :  { %5709 = vmatmul.mubr.msk.f32.vlgmr.msra.gmra.mrb[2].mxu0 %vm156_vm1, %v149_v15 }
  0x6a   :  { %5723 = vmatprep.mubr.msk.f32.mxu0 %vm6396_vm0, %v6397_v2  ;;  %5722 = vmatpush3.msk.msra.mxu0 %vm559_vm4, %v555_v51 }
  0x6b   :  { %5731 = vmatprep.subr.mxu0 %v6397_v2 }
 0x133   :  { %v305_v19 = vpop.f32.mrb[0].mxu1 }
 0x134   :  { %v6631_v20 = vadd.f32 %v6626_v17, %v305_v19  ;;  %v226_v21 = vpop.f32.mrb[0].mxu0  ;;  %v5699_v22 = vpop.f32.mrb[1].mxu1 }
 0x135   :  { %v227_v23 = vadd.f32 %v6628_v18, %v226_v21  ;;  %v5688_v24 = vpop.f32.mrb[1].mxu0 }
 0x136   :  { %636 = vrot.lane.b32.xlu1 %v6631_v20, %s6398_s30  ;;  %5712 = vmatpush3.xpose.msk.msra.mxu1 %vm393_vm2, %v6631_v20 }
 0x137   :  { %v6638_v25 = vmul.f32 0.5, %v227_v23  ;;  %5716 = vmatprep.subr.mxu1 %v6397_v2 }
 0x139   :  { %5714 = vmatmul.mubr.msk.f32.vlgmr.msra.gmra.mrb[2].mxu1 %vm393_vm2, %v6638_v25 }
 0x13a   :  { %634 = vrot.lane.b32.xlu1 %v6638_v25, %s6398_s30  ;;  %5718 = vmatprep.mubr.msk.f32.mxu1 %vm6396_vm0, %v6397_v2 }
 0x13c   :  { %v381_v41 = vpop.f32.mrb[2].mxu0 }
 0x13d   :  { %v6680_v42 = vadd.f32 %v6677_v40, %v381_v41  ;;  %v5710_v43 = vpop.f32.mrb[3].mxu0 }
 0x13e   :  { %879 = vrot.lane.b32.xlu1 %v6638_v25, %s6399_s5 }
 0x13f   :  { %5717 = vmatpush3.msra.mxu1 %v6680_v42 }
 0x140   :  { %5726 = vmatprep.subr.mxu1 %v6397_v2 }
 0x1a8   :  { %v637_v45 = vpop.permute.xlu1 %636 }
 0x1ac   :  { %v635_v48 = vpop.permute.xlu1 %634 }
 0x1b0   :  { %v880_v50 = vpop.permute.xlu1 %879 }
 0x20c   :  { %v466_v32 = vpop.f32.mrb[2].mxu1 }
 0x20d   :  { %v5715_v33 = vpop.f32.mrb[3].mxu1  ;;  %v471_v34 = vsel %vm470_vm3, %v466_v32, -inf }
 0x20e   :  { %472 = vmax.xlane.f32.xlu0 %v471_v34 }
 0x29b   :  { %v473_v35 = vpop.xlane.xlu0 %472 }
 0x29c   :  { %v474_v36 = vsub.f32 %v466_v32, %v473_v35 }
 0x29e   :  { %v475_v37 = vmul.f32 1.442695, %v474_v36 }
 0x2a0   :  { %6212 = vpow2.f32 %v475_v37 }
 0x2aa   :  { %v6213_v38 = vpop.eup %6212 }
 0x2ab   :  { %v477_v39 = vsel %vm470_vm3, %v6213_v38, 0.0 }
 0x2ac   :  { %478 = vadd.xlane.f32.xlu0 %v477_v39 }
 0x2c2   :  { %881 = vrot.lane.b32.xlu0 %v6631_v20, %s6399_s5 }
 0x339   :  { %v479_v44 = vpop.xlane.xlu0 %478 }
 0x33a   :  { %6214 = vrcp.f32 %v479_v44 }
 0x33d   :  { %v882_v49 = vpop.permute.xlu0 %881 }
 0x344   :  { %v6215_v46 = vpop.eup %6214 }
 0x345   :  { %v481_v47 = vmul.f32 %v6215_v46, %v6213_v38 }
 0x347   :  { %5719 = vmatmul.mubr.msk.f32.vlgmr.msra.gmra.mrb[4].mxu1 %vm470_vm3, %v481_v47 }
 0x348   :  { %5727 = vmatpush3.xpose.msk.msra.mxu1 %vm393_vm2, %v637_v45  ;;  %5728 = vmatprep.mubr.msk.f32.mxu1 %vm6396_vm0, %v6397_v2 }
 0x349   :  { %5741 = vmatprep.subr.mxu1 %v6397_v2 }
 0x34b   :  { %5729 = vmatmul.mubr.msk.f32.vlgmr.msra.gmra.mrb[6].mxu1 %vm393_vm2, %v635_v48 }
 0x34c   :  { %5742 = vmatpush3.xpose.msk.msra.mxu1 %vm393_vm2, %v882_v49  ;;  %5743 = vmatprep.mubr.msk.f32.mxu1 %vm6396_vm0, %v6397_v2 }
 0x34d   :  { %5746 = vmatprep.subr.mxu1 %v6397_v2 }
 0x34f   :  { %5744 = vmatmul.mubr.msk.f32.vlgmr.msra.gmra.mrb[8].mxu1 %vm393_vm2, %v880_v50 }
 0x350   :  { %5748 = vmatprep.mubr.msk.f32.mxu1 %vm6396_vm0, %v6397_v2 }
 0x41a   :  { %v551_v52 = vpop.f32.mrb[4].mxu1 }
 0x41b   :  { %v5720_v53 = vpop.f32.mrb[5].mxu1  ;;  %5724 = vmatmul.mubr.msk.f32.vlgmr.msra.gmra.mrb[4].mxu0 %vm393_vm2, %v551_v52 }
 0x41c   :  { %5733 = vmatprep.mubr.msk.f32.mxu0 %vm6396_vm0, %v6397_v2 }
 0x41e   :  { %v6707_v54 = vpop.f32.mrb[6].mxu1 }
 0x41f   :  { %v5730_v55 = vpop.f32.mrb[7].mxu1  ;;  %v712_v3 = vsel %vm470_vm3, %v6707_v54, -inf }
 0x422   :  { %v953_v56 = vpop.f32.mrb[8].mxu1 }
 0x423   :  { %v5745_v57 = vpop.f32.mrb[9].mxu1  ;;  %v957_v58 = vsel %vm470_vm3, %v953_v56, -inf }
 0x424   :  { %958 = vmax.xlane.f32.xlu1 %v957_v58  ;;  %v5403_v57 = vld [vmem:[%s7322_s8 + $0x4] sm:$0xf] }
 0x435   :  { %968 = vrot.lane.b32.xlu1 %v6680_v42, %s6399_s5 }
 0x439   :  { %1123 = vrot.lane.b32.xlu1 %v6638_v25, %s6400_s25 }
 0x43d   :  { %1369 = vrot.lane.b32.xlu1 %v6631_v20, %s6401_s3 }
 0x441   :  { %1367 = vrot.lane.b32.xlu1 %v6638_v25, %s6401_s3 }
 0x4b1   :  { %v959_v59 = vpop.xlane.xlu1 %958 }
 0x4b2   :  { %v960_v60 = vsub.f32 %v953_v56, %v959_v59 }
 0x4b4   :  { %v961_v61 = vmul.f32 1.442695, %v960_v60 }
 0x4b5   :  { %v969_v62 = vpop.permute.xlu1 %968 }
 0x4b6   :  { %6216 = vpow2.f32 %v961_v61  ;;  %5747 = vmatpush3.msra.mxu1 %v969_v62 }
 0x4b7   :  { %5756 = vmatprep.subr.mxu1 %v6397_v2 }
 0x4b9   :  { %v1124_v5 = vpop.permute.xlu1 %1123 }
 0x4bd   :  { %v1370_v11 = vpop.permute.xlu1 %1369 }
 0x4c0   :  { %v6217_v63 = vpop.eup %6216 }
 0x4c1   :  { %v963_v0 = vsel %vm470_vm3, %v6217_v63, 0.0  ;;  %v1368_v12 = vpop.permute.xlu1 %1367 }
 0x4c2   :  { %964 = vadd.xlane.f32.xlu0 %v963_v0 }
 0x4d8   :  { %1125 = vrot.lane.b32.xlu0 %v6631_v20, %s6400_s25 }
 0x4f7   :  { %713 = vmax.xlane.f32.xlu0 %v712_v3 }
 0x54f   :  { %v965_v4 = vpop.xlane.xlu0 %964 }
 0x550   :  { %6218 = vrcp.f32 %v965_v4 }
 0x553   :  { %v1126_v9 = vpop.permute.xlu0 %1125 }
 0x55a   :  { %v6219_v7 = vpop.eup %6218 }
 0x55b   :  { %v967_v8 = vmul.f32 %v6219_v7, %v6217_v63  ;;  %v5409_v7 = vld [vmem:[%s7322_s8 + $0x8] sm:$0xf] }
 0x55d   :  { %5749 = vmatmul.mubr.msk.f32.vlgmr.msra.gmra.mrb[10].mxu1 %vm470_vm3, %v967_v8 }
 0x55e   :  { %5757 = vmatpush3.xpose.msk.msra.mxu1 %vm393_vm2, %v1126_v9  ;;  %5758 = vmatprep.mubr.msk.f32.mxu1 %vm6396_vm0, %v6397_v2 }
 0x55f   :  { %5771 = vmatprep.subr.mxu1 %v6397_v2 }
 0x561   :  { %5759 = vmatmul.mubr.msk.f32.vlgmr.msra.gmra.mrb[12].mxu1 %vm393_vm2, %v1124_v5 }
 0x562   :  { %5772 = vmatpush3.xpose.msk.msra.mxu1 %vm393_vm2, %v1370_v11  ;;  %5773 = vmatprep.mubr.msk.f32.mxu1 %vm6396_vm0, %v6397_v2 }
 0x563   :  { %5776 = vmatprep.subr.mxu1 %v6397_v2 }
 0x565   :  { %5774 = vmatmul.mubr.msk.f32.vlgmr.msra.gmra.mrb[14].mxu1 %vm393_vm2, %v1368_v12 }
 0x566   :  { %5778 = vmatprep.mubr.msk.f32.mxu1 %vm6396_vm0, %v6397_v2 }
 0x584   :  { %v714_v41 = vpop.xlane.xlu0 %713 }
 0x585   :  { %v715_v43 = vsub.f32 %v6707_v54, %v714_v41  ;;  %v5421_v41 = vld [vmem:[%s7322_s8 + $0x10] sm:$0xf] }
 0x587   :  { %v716_v44 = vmul.f32 1.442695, %v715_v43 }
 0x630   :  { %v6737_v15 = vpop.f32.mrb[10].mxu1 }
 0x631   :  { %v5750_v19 = vpop.f32.mrb[11].mxu1 }
 0x634   :  { %v6739_v21 = vpop.f32.mrb[12].mxu1 }
 0x635   :  { %v5760_v22 = vpop.f32.mrb[13].mxu1  ;;  %v1201_v27 = vsel %vm470_vm3, %v6739_v21, -inf }
 0x638   :  { %v1441_v23 = vpop.f32.mrb[14].mxu1 }
 0x639   :  { %v5775_v24 = vpop.f32.mrb[15].mxu1  ;;  %v1445_v26 = vsel %vm470_vm3, %v1441_v23, -inf }
 0x63a   :  { %1446 = vmax.xlane.f32.xlu1 %v1445_v26 }
 0x64b   :  { %1456 = vrot.lane.b32.xlu1 %v6680_v42, %s6401_s3 }
 0x64f   :  { %1611 = vrot.lane.b32.xlu1 %v6638_v25, %s6402_s29 }
 0x653   :  { %1857 = vrot.lane.b32.xlu1 %v6631_v20, %s6403_s22 }
 0x657   :  { %1855 = vrot.lane.b32.xlu1 %v6638_v25, %s6403_s22 }
 0x65b   :  { %724 = vrot.lane.b32.xlu1 %v6680_v42, %s6398_s30 }
 0x67f   :  { %1202 = vmax.xlane.f32.xlu1 %v1201_v27 }
 0x690   :  { %1944 = vrot.lane.b32.xlu1 %v6680_v42, %s6403_s22 }
 0x6c7   :  { %v1447_v28 = vpop.xlane.xlu1 %1446 }
 0x6c8   :  { %v1448_v30 = vsub.f32 %v1441_v23, %v1447_v28 }
 0x6ca   :  { %v1449_v32 = vmul.f32 1.442695, %v1448_v30 }
 0x6cb   :  { %v1457_v33 = vpop.permute.xlu1 %1456 }
 0x6cc   :  { %6220 = vpow2.f32 %v1449_v32  ;;  %5777 = vmatpush3.msra.mxu1 %v1457_v33 }
 0x6cd   :  { %5786 = vmatprep.subr.mxu1 %v6397_v2  ;;  %6222 = vpow2.f32 %v716_v44 }
 0x6cf   :  { %v1612_v34 = vpop.permute.xlu1 %1611 }
 0x6d3   :  { %v1858_v35 = vpop.permute.xlu1 %1857 }
 0x6d6   :  { %v6221_v36 = vpop.eup %6220 }
 0x6d7   :  { %v1856_v37 = vpop.permute.xlu1 %1855  ;;  %v1451_v38 = vsel %vm470_vm3, %v6221_v36, 0.0  ;;  %v6223_v45 = vpop.eup %6222 }
 0x6d8   :  { %1452 = vadd.xlane.f32.xlu0 %v1451_v38  ;;  %v718_v47 = vsel %vm470_vm3, %v6223_v45, 0.0 }
 0x6db   :  { %v725_v39 = vpop.permute.xlu1 %724 }
 0x6dc   :  { %5732 = vmatpush3.msra.mxu0 %v725_v39 }
 0x6dd   :  { %5736 = vmatprep.subr.mxu0 %v6397_v2 }
 0x6ee   :  { %1613 = vrot.lane.b32.xlu0 %v6631_v20, %s6402_s29 }
 0x70c   :  { %v1203_v46 = vpop.xlane.xlu1 %1202 }
 0x70d   :  { %v1204_v48 = vsub.f32 %v6739_v21, %v1203_v46  ;;  %719 = vadd.xlane.f32.xlu0 %v718_v47 }
 0x70f   :  { %v1205_v58 = vmul.f32 1.442695, %v1204_v48  ;;  %v5427_v48 = vld [vmem:[%s7322_s8 + $0x14] sm:$0xf] }
 0x710   :  { %v1945_v53 = vpop.permute.xlu1 %1944 }
 0x765   :  { %v1453_v49 = vpop.xlane.xlu0 %1452 }
 0x766   :  { %6224 = vrcp.f32 %v1453_v49 }
 0x769   :  { %v1614_v52 = vpop.permute.xlu0 %1613 }
 0x770   :  { %v6225_v50 = vpop.eup %6224 }
 0x771   :  { %v1455_v51 = vmul.f32 %v6225_v50, %v6221_v36 }
 0x773   :  { %5779 = vmatmul.mubr.msk.f32.vlgmr.msra.gmra.mrb[16].mxu1 %vm470_vm3, %v1455_v51 }
 0x774   :  { %5787 = vmatpush3.xpose.msk.msra.mxu1 %vm393_vm2, %v1614_v52  ;;  %5788 = vmatprep.mubr.msk.f32.mxu1 %vm6396_vm0, %v6397_v2 }
 0x775   :  { %5801 = vmatprep.subr.mxu1 %v6397_v2 }
 0x777   :  { %5789 = vmatmul.mubr.msk.f32.vlgmr.msra.gmra.mrb[18].mxu1 %vm393_vm2, %v1612_v34 }
 0x778   :  { %5802 = vmatpush3.xpose.msk.msra.mxu1 %vm393_vm2, %v1858_v35  ;;  %5803 = vmatprep.mubr.msk.f32.mxu1 %vm6396_vm0, %v6397_v2  ;;  %v5415_v35 = vld [vmem:[%s7322_s8 + $0xc] sm:$0xf] }
 0x779   :  { %5806 = vmatprep.subr.mxu1 %v6397_v2 }
 0x77b   :  { %5804 = vmatmul.mubr.msk.f32.vlgmr.msra.gmra.mrb[20].mxu1 %vm393_vm2, %v1856_v37 }
 0x77c   :  { %5807 = vmatpush3.msra.mxu1 %v1945_v53  ;;  %5808 = vmatprep.mubr.msk.f32.mxu1 %vm6396_vm0, %v6397_v2 }
 0x77d   :  { %5816 = vmatprep.subr.mxu1 %v6397_v2 }
 0x79a   :  { %v720_v54 = vpop.xlane.xlu0 %719 }
 0x79b   :  { %6226 = vrcp.f32 %v720_v54  ;;  %v5433_v54 = vld [vmem:[%s7322_s8 + $0x18] sm:$0xf] }
 0x79c   :  { %6228 = vpow2.f32 %v1205_v58 }
 0x7a5   :  { %v6227_v55 = vpop.eup %6226 }
 0x7a6   :  { %v722_v56 = vmul.f32 %v6227_v55, %v6223_v45  ;;  %v6229_v4 = vpop.eup %6228 }
 0x7a7   :  { %v1207_v5 = vsel %vm470_vm3, %v6229_v4, 0.0 }
 0x7a8   :  { %5734 = vmatmul.mubr.msk.f32.vlgmr.msra.gmra.mrb[6].mxu0 %vm470_vm3, %v722_v56 }
 0x7a9   :  { %5738 = vmatprep.mubr.msk.f32.mxu0 %vm6396_vm0, %v6397_v2  ;;  %5737 = vmatpush3.msk.msra.mxu0 %vm559_vm4, %v5403_v57 }
 0x7aa   :  { %5751 = vmatprep.subr.mxu0 %v6397_v2 }
 0x846   :  { %v6786_v59 = vpop.f32.mrb[16].mxu1 }
 0x847   :  { %v5780_v60 = vpop.f32.mrb[17].mxu1 }
 0x84a   :  { %v1685_v61 = vpop.f32.mrb[18].mxu1 }
 0x84b   :  { %v5790_v62 = vpop.f32.mrb[19].mxu1 }
 0x84e   :  { %v1929_v63 = vpop.f32.mrb[20].mxu1 }
 0x84f   :  { %v5805_v0 = vpop.f32.mrb[21].mxu1  ;;  %v1933_v3 = vsel %vm470_vm3, %v1929_v63, -inf }
 0x850   :  { %1934 = vmax.xlane.f32.xlu0 %v1933_v3 }
 0x854   :  { %1208 = vadd.xlane.f32.xlu0 %v1207_v5 }
 0x86a   :  { %1212 = vrot.lane.b32.xlu0 %v6680_v42, %s6400_s25 }
 0x86e   :  { %2101 = vrot.lane.b32.xlu0 %v6631_v20, %s6404_s1  ;;  %v1689_v20 = vsel %vm470_vm3, %v1685_v61, -inf }
 0x87b   :  { %v796_v8 = vpop.f32.mrb[6].mxu0 }
 0x87c   :  { %v5735_v9 = vpop.f32.mrb[7].mxu0  ;;  %5739 = vmatmul.mubr.msk.f32.vlgmr.msra.gmra.mrb[4].mxu0 %vm393_vm2, %v796_v8 }
 0x87d   :  { %5752 = vmatpush3.msk.msra.mxu0 %vm559_vm4, %v5409_v7  ;;  %5753 = vmatprep.mubr.msk.f32.mxu0 %vm6396_vm0, %v6397_v2  ;;  %v6881_v7 = vld [vmem:[%s7323_s9] ss:$0 sm:$0xff] }
 0x87e   :  { %5761 = vmatprep.subr.mxu0 %v6397_v2 }
 0x884   :  { %5754 = vmatmul.mubr.msk.f32.vlgmr.msra.gmra.mrb[4].mxu0 %vm393_vm2, %v6737_v15 }
 0x885   :  { %5763 = vmatprep.mubr.msk.f32.mxu0 %vm6396_vm0, %v6397_v2 }
 0x88d   :  { %1690 = vmax.xlane.f32.xlu0 %v1689_v20 }
 0x8a3   :  { %1700 = vrot.lane.b32.xlu0 %v6680_v42, %s6402_s29 }
 0x8dd   :  { %v1935_v11 = vpop.xlane.xlu0 %1934 }
 0x8de   :  { %v1936_v12 = vsub.f32 %v1929_v63, %v1935_v11 }
 0x8e0   :  { %v1937_v19 = vmul.f32 1.442695, %v1936_v12 }
 0x8e1   :  { %v1209_v21 = vpop.xlane.xlu0 %1208 }
 0x8e2   :  { %6230 = vpow2.f32 %v1937_v19 }
 0x8e3   :  { %6232 = vrcp.f32 %v1209_v21 }
 0x8e5   :  { %v1213_v22 = vpop.permute.xlu0 %1212 }
 0x8e6   :  { %5762 = vmatpush3.msra.mxu0 %v1213_v22 }
 0x8e7   :  { %5766 = vmatprep.subr.mxu0 %v6397_v2 }
 0x8e9   :  { %v2102_v27 = vpop.permute.xlu0 %2101 }
 0x8ec   :  { %v6231_v15 = vpop.eup %6230 }
 0x8ed   :  { %v6233_v23 = vpop.eup %6232  ;;  %v1939_v24 = vsel %vm470_vm3, %v6231_v15, 0.0 }
 0x8ee   :  { %v1211_v26 = vmul.f32 %v6233_v23, %v6229_v4  ;;  %1940 = vadd.xlane.f32.xlu1 %v1939_v24  ;;  %v5439_v4 = vld [vmem:[%s7322_s8 + $0x1c] sm:$0xf]  ;;  %v2378_v23 = vsel %vm156_vm1, %v6612_v16, 0.0 }
 0x8ef   :  { %v2379_v24 = vrot.slane %v2378_v23, 4 }
 0x8f0   :  { %5764 = vmatmul.mubr.msk.f32.vlgmr.msra.gmra.mrb[8].mxu0 %vm470_vm3, %v1211_v26 }
 0x8f1   :  { %5768 = vmatprep.mubr.msk.f32.mxu0 %vm6396_vm0, %v6397_v2  ;;  %5767 = vmatpush3.msk.msra.mxu0 %vm559_vm4, %v5415_v35  ;;  %v2380_v26 = vadd.f32 %v2379_v24, %v2378_v23  ;;  %v143_v23 = vld [vmem:[%s7331_s17 + $0x18] sm:$0xff] }
 0x8f2   :  { %5781 = vmatprep.subr.mxu0 %v6397_v2 }
 0x8ff   :  { %2099 = vrot.lane.b32.xlu1 %v6638_v25, %s6404_s1 }
 0x91a   :  { %v1691_v28 = vpop.xlane.xlu0 %1690 }
 0x91b   :  { %v1692_v30 = vsub.f32 %v1685_v61, %v1691_v28 }
 0x91d   :  { %v1693_v32 = vmul.f32 1.442695, %v1692_v30 }
 0x91e   :  { %v1701_v46 = vpop.permute.xlu0 %1700 }
 0x91f   :  { %6234 = vpow2.f32 %v1693_v32  ;;  %v132_v32 = vld [vmem:[%s7327_s13] sm:$0xff] }
 0x929   :  { %v6235_v33 = vpop.eup %6234 }
 0x92a   :  { %v1695_v34 = vsel %vm470_vm3, %v6235_v33, 0.0 }
 0x92b   :  { %1696 = vadd.xlane.f32.xlu1 %v1695_v34  ;;  %v128_v34 = vld [vmem:[%s7326_s12] sm:$0xff] }
 0x97b   :  { %v1941_v36 = vpop.xlane.xlu1 %1940 }
 0x97c   :  { %6236 = vrcp.f32 %v1941_v36  ;;  %v129_v36 = vld [vmem:[%s7326_s12 + $0x8] sm:$0xff] }
 0x97f   :  { %v2100_v38 = vpop.permute.xlu1 %2099 }
 0x986   :  { %v6237_v25 = vpop.eup %6236 }
 0x987   :  { %v1943_v37 = vmul.f32 %v6237_v25, %v6231_v15  ;;  %v134_v25 = vld [vmem:[%s7327_s13 + $0x10] sm:$0xff] }
 0x989   :  { %5809 = vmatmul.mubr.msk.f32.vlgmr.msra.gmra.mrb[22].mxu1 %vm470_vm3, %v1943_v37  ;;  %v135_v37 = vld [vmem:[%s7327_s13 + $0x18] sm:$0xff] }
 0x98a   :  { %5817 = vmatpush3.xpose.msk.msra.mxu1 %vm393_vm2, %v2102_v27  ;;  %5818 = vmatprep.mubr.msk.f32.mxu1 %vm6396_vm0, %v6397_v2  ;;  %v2381_v27 = vrot.slane %v2380_v26, 2 }
 0x98b   :  { %6096 = vmatprep.subr.bf16.mxu1 %v6395_v1 }
 0x98c   :  { %v2382_v28 = vadd.f32 %v2381_v27, %v2380_v26  ;;  %v145_v26 = vld [vmem:[%s7333_s19] sm:$0xff]  ;;  %v146_v27 = vld [vmem:[%s7333_s19 + $0x8] sm:$0xff] }
 0x98d   :  { %5819 = vmatmul.mubr.msk.f32.vlgmr.msra.gmra.mrb[24].mxu1 %vm393_vm2, %v2100_v38 }
 0x98e   :  { %5839 = vmatprep.mubr.msk.f32.mxu1 %vm6396_vm0, %v6397_v2  ;;  %v2383_v30 = vrot.slane %v2382_v28, 1 }
 0x990   :  { %v2384_v38 = vadd.f32 %v2383_v30, %v2382_v28  ;;  %v7003_v28 = vpack.c.bf16 %v146_v27, %v145_v26 }
 0x9b8   :  { %v1697_v39 = vpop.xlane.xlu1 %1696 }
 0x9b9   :  { %6238 = vrcp.f32 %v1697_v39  ;;  %v6908_v39 = vpack.c.bf16 %v129_v36, %v128_v34  ;;  %v7016_v36 = vld [vmem:[%s7332_s18] ss:$0 sm:$0xff] }
 0x9c3   :  { %v1284_v43 = vpop.f32.mrb[8].mxu0  ;;  %v6239_v45 = vpop.eup %6238 }
 0x9c4   :  { %v5765_v44 = vpop.f32.mrb[9].mxu0  ;;  %5769 = vmatmul.mubr.msk.f32.vlgmr.msra.gmra.mrb[4].mxu0 %vm393_vm2, %v1284_v43  ;;  %v1699_v47 = vmul.f32 %v6239_v45, %v6235_v33  ;;  %v133_v33 = vld [vmem:[%s7327_s13 + $0x8] sm:$0xff]  ;;  %v131_v43 = vld [vmem:[%s7326_s12 + $0x18] sm:$0xff] }
 0x9c5   :  { %5782 = vmatpush3.msk.msra.mxu0 %vm559_vm4, %v5421_v41  ;;  %5783 = vmatprep.mubr.msk.f32.mxu0 %vm6396_vm0, %v6397_v2  ;;  %v6897_v35 = vpack.c.bf16 %v133_v33, %v132_v32  ;;  %v130_v41 = vld [vmem:[%s7326_s12 + $0x10] sm:$0xff]  ;;  %v6917_v44 = vpack.c.bf16 %v135_v37, %v134_v25 }
 0x9c6   :  { %5791 = vmatprep.subr.mxu0 %v6397_v2  ;;  %v6921_v45 = vpack.c.bf16 %v131_v43, %v130_v41 }
 0x9c7   :  { %6098 = vmatpush3.bf16.msra.mxu1 %v6897_v35 }
 0x9c8   :  { %6099 = vmatprep.subr.bf16.mxu1 %v6395_v1 }
 0x9cb   :  { %6101 = vmatpush3.bf16.msra.mxu1 %v6917_v44 }
 0x9cc   :  { %5784 = vmatmul.mubr.msk.f32.vlgmr.msra.gmra.mrb[4].mxu0 %vm393_vm2, %v6786_v59  ;;  %6108 = vmatprep.subr.bf16.mxu1 %v6395_v1 }
 0x9cd   :  { %5792 = vmatpush3.msra.mxu0 %v1701_v46  ;;  %5793 = vmatprep.mubr.msk.f32.mxu0 %vm6396_vm0, %v6397_v2  ;;  %v2386_v46 = vmul.f32 0.125, %v2384_v38 }
 0x9ce   :  { %5796 = vmatprep.subr.mxu0 %v6397_v2 }
 0x9cf   :  { %5840 = vmatmul.mubr.msk.f32.vlgmr.msra.gmra.mrb[26].mxu1 %vm156_vm1, %v2386_v46 }
 0x9d0   :  { %5794 = vmatmul.mubr.msk.f32.vlgmr.msra.gmra.mrb[10].mxu0 %vm470_vm3, %v1699_v47  ;;  %5857 = vmatprep.mubr.msk.f32.mxu1 %vm6396_vm0, %v6397_v2 }
 0x9d1   :  { %5798 = vmatprep.mubr.msk.f32.mxu0 %vm6396_vm0, %v6397_v2  ;;  %5797 = vmatpush3.msk.msra.mxu0 %vm559_vm4, %v5427_v48 }
 0x9d2   :  { %5811 = vmatprep.subr.mxu0 %v6397_v2 }
 0xa5c   :  { %v2016_v49 = vpop.f32.mrb[22].mxu1 }
 0xa5d   :  { %v5810_v50 = vpop.f32.mrb[23].mxu1 }
 0xa60   :  { %v2173_v51 = vpop.f32.mrb[24].mxu1 }
 0xa61   :  { %v5820_v52 = vpop.f32.mrb[25].mxu1  ;;  %v2177_v53 = vsel %vm470_vm3, %v2173_v51, -inf }
 0xa62   :  { %2178 = vmax.xlane.f32.xlu1 %v2177_v53  ;;  %v6939_v53 = vld [vmem:[%s7325_s11] ss:$0 sm:$0xff] }
 0xaa3   :  { %v1772_v55 = vpop.f32.mrb[10].mxu0 }
 0xaa4   :  { %v5795_v56 = vpop.f32.mrb[11].mxu0  ;;  %5799 = vmatmul.mubr.msk.f32.vlgmr.msra.gmra.mrb[4].mxu0 %vm393_vm2, %v1772_v55 }
 0xaa5   :  { %5812 = vmatpush3.msk.msra.mxu0 %vm559_vm4, %v5433_v54  ;;  %5813 = vmatprep.mubr.msk.f32.mxu0 %vm6396_vm0, %v6397_v2 }
 0xaa6   :  { %5821 = vmatprep.subr.mxu0 %v6397_v2 }
 0xaac   :  { %5814 = vmatmul.mubr.msk.f32.vlgmr.msra.gmra.mrb[4].mxu0 %vm393_vm2, %v2016_v49 }
 0xaad   :  { %5823 = vmatprep.mubr.msk.f32.mxu0 %vm6396_vm0, %v6397_v2 }
 0xaef   :  { %v2179_v57 = vpop.xlane.xlu1 %2178 }
 0xaf0   :  { %v2180_v58 = vsub.f32 %v2173_v51, %v2179_v57  ;;  %v6934_v51 = vld [vmem:[%s7324_s10] ss:$0 sm:$0xff] }
 0xaf2   :  { %v2181_v59 = vmul.f32 1.442695, %v2180_v58 }
 0xaf4   :  { %6240 = vpow2.f32 %v2181_v59 }
 0xafe   :  { %v6241_v60 = vpop.eup %6240 }
 0xaff   :  { %v2183_v61 = vsel %vm470_vm3, %v6241_v60, 0.0 }
 0xb00   :  { %2184 = vadd.xlane.f32.xlu1 %v2183_v61 }
 0xb11   :  { %2188 = vrot.lane.b32.xlu1 %v6680_v42, %s6404_s1 }
 0xb8d   :  { %v2185_v62 = vpop.xlane.xlu1 %2184 }
 0xb8e   :  { %6242 = vrcp.f32 %v2185_v62 }
 0xb91   :  { %v2189_v63 = vpop.permute.xlu1 %2188 }
 0xb92   :  { %5822 = vmatpush3.msra.mxu0 %v2189_v63  ;;  %v2456_v63 = vpop.f32.mrb[26].mxu1 }
 0xb93   :  { %5826 = vmatprep.subr.mxu0 %v6397_v2 }
 0xb98   :  { %v6243_v0 = vpop.eup %6242 }
 0xb99   :  { %v2187_v3 = vmul.f32 %v6243_v0, %v6241_v60  ;;  %v5841_v0 = vpop.f32.mrb[27].mxu1 }
 0xb9b   :  { %5824 = vmatmul.mubr.msk.f32.vlgmr.msra.gmra.mrb[12].mxu0 %vm470_vm3, %v2187_v3  ;;  %v137_v3 = vld [vmem:[%s7329_s15] sm:$0xff] }
 0xb9c   :  { %5827 = vmatpush3.msk.msra.mxu0 %vm559_vm4, %v5439_v4  ;;  %5828 = vmatprep.mubr.msk.f32.mxu0 %vm6396_vm0, %v6397_v2  ;;  %v138_v4 = vld [vmem:[%s7329_s15 + $0x8] sm:$0xff] }
 0xb9d   :  { %6102 = vmatprep.subr.bf16.mxu0 %v6395_v1 }
 0xc6e   :  { %v2260_v42 = vpop.f32.mrb[12].mxu0 }
 0xc6f   :  { %v5825_v5 = vpop.f32.mrb[13].mxu0  ;;  %5829 = vmatmul.mubr.msk.f32.vlgmr.msra.gmra.mrb[4].mxu0 %vm393_vm2, %v2260_v42  ;;  %v6956_v42 = vpack.c.bf16 %v138_v4, %v137_v3 }
 0xc70   :  { %5850 = vmatprep.mubr.msk.f32.mxu0 %vm6396_vm0, %v6397_v2  ;;  %6104 = vmatpush3.bf16.msra.mxu0 %v6908_v39  ;;  %v6963_v5 = vld [vmem:[%s7328_s14] sm:$0x1] }
 0xc71   :  { %6105 = vmatprep.subr.bf16.mxu0 %v6395_v1  ;;  %6110 = vmatpush3.bf16.msra.mxu1 %v6956_v42 }
 0xc72   :  { %6111 = vmatprep.subr.bf16.mxu1 %v6395_v1 }
 0xc74   :  { %6107 = vmatpush3.bf16.msra.mxu0 %v6921_v45 }
 0xc75   :  { %6117 = vmatprep.subr.bf16.mxu0 %v6395_v1 }
 0xd42   :  { %v2338_v8 = vpop.f32.mrb[4].mxu0 }
 0xd43   :  { %v6162_v9 = vadd.f32 %v6881_v7, %v2338_v8  ;;  %v5830_v20 = vpop.f32.mrb[5].mxu0 }
 0xd45   :  { %v2343_v11 = vsel %vm156_vm1, %v6162_v9, 0.0 }
 0xd46   :  { %2344 = vadd.xlane.f32.xlu0 %v2343_v11  ;;  %v140_v11 = vld [vmem:[%s7331_s17] sm:$0xff] }
 0xdd3   :  { %v2345_v12 = vpop.xlane.xlu0 %2344 }
 0xdd4   :  { %v2347_v19 = vmul.f32 0.03125, %v2345_v12  ;;  %v141_v12 = vld [vmem:[%s7331_s17 + $0x8] sm:$0xff] }
 0xdd6   :  { %v2348_v21 = vsub.f32 %v6162_v9, %v2347_v19 }
 0xdd8   :  { %v2349_v22 = vmul.f32 %v2348_v21, %v2348_v21 }
 0xdda   :  { %v2350_v15 = vsel %vm156_vm1, %v2349_v22, 0.0 }
 0xddb   :  { %2351 = vadd.xlane.f32.xlu1 %v2350_v15  ;;  %v142_v15 = vld [vmem:[%s7331_s17 + $0x10] sm:$0xff] }
 0xddc   :  { %v6982_v24 = vpack.c.bf16 %v143_v23, %v142_v15 }
 0xe68   :  { %v2352_v47 = vpop.xlane.xlu1 %2351 }
 0xe69   :  { %v2353_v48 = vmul.f32 0.03125, %v2352_v47  ;;  %v7025_v47 = vld [vmem:[#allocation3 + $0x8] sm:$0xff] }
 0xe6b   :  { %v2354_v49 = vadd.f32 1e-05, %v2353_v48 }
 0xe6d   :  { %6244 = vrsqrt.f32 %v2354_v49 }
 0xe77   :  { %v6245_v50 = vpop.eup %6244 }
 0xe78   :  { %v2356_v52 = vmul.f32 %v6245_v50, %v2348_v21  ;;  %v6972_v21 = vpack.c.bf16 %v141_v12, %v140_v11 }
 0xe7a   :  { %v2363_v54 = vmul.f32 %v6934_v51, %v2356_v52 }
 0xe7c   :  { %v6943_v55 = vadd.f32 %v6939_v53, %v2363_v54 }
 0xe7e   :  { %v2371_v56 = vsel %vm156_vm1, %v6943_v55, -inf }
 0xe7f   :  { %v2372_v57 = vrot.slane %v2371_v56, 4 }
 0xe81   :  { %v2373_v58 = vmax.f32 %v2371_v56, %v2372_v57 }
 0xe83   :  { %v2374_v59 = vrot.slane %v2373_v58, 2 }
 0xe85   :  { %v2375_v60 = vmax.f32 %v2373_v58, %v2374_v59 }
 0xe87   :  { %v2376_v61 = vrot.slane %v2375_v60, 1 }
 0xe89   :  { %v2377_v62 = vmax.f32 %v2375_v60, %v2376_v61 }
 0xe8b   :  { %5851 = vmatmul.mubr.msk.f32.vlgmr.msra.gmra.mrb[14].mxu0 %vm156_vm1, %v2377_v62 }
 0xe8c   :  { %5875 = vmatprep.mubr.msk.f32.mxu0 %vm6396_vm0, %v6397_v2  ;;  %6119 = vmatpush3.bf16.msra.mxu0 %v7003_v28 }
 0xe8d   :  { %6120 = vmatprep.subr.bf16.mxu0 %v6395_v1 }
 0xf5e   :  { %v2529_v8 = vpop.f32.mrb[14].mxu0 }
 0xf5f   :  { %v2530_v9 = vadd.f32 %v2529_v8, %v2456_v63  ;;  %v5852_v20 = vpop.f32.mrb[15].mxu0 }
 0xf61   :  { %v2533_v19 = vadd.f32 %v2530_v9, %v6963_v5 }
 0xf63   :  { %v2534_v22 = vmax.f32 %v2533_v19, 0.0 }
 0xf65   :  { %5858 = vmatmul.mubr.msk.f32.vlgmr.msra.gmra.mrb[28].mxu1 %vm2535_vm5, %v2534_v22 }
 0xf66   :  { %6113 = vmatpush3.bf16.msra.mxu1 %v6972_v21  ;;  %5868 = vmatprep.mubr.msk.f32.mxu1 %vm6396_vm0, %v6397_v2 }
 0xf67   :  { %6114 = vmatprep.subr.bf16.mxu1 %v6395_v1 }
 0xf6a   :  { %6116 = vmatpush3.bf16.msra.mxu1 %v6982_v24 }
 0xf6b   :  { %6126 = vmatprep.subr.bf16.mxu1 %v6395_v1 }
 0xf6d   :  { %5869 = vmatmul.mubr.msk.f32.vlgmr.msra.gmra.mrb[30].mxu1 %vm156_vm1, %v6943_v55 }
 0xf6e   :  { %6128 = vmatpush3.bf16.msra.mxu1 %v6583_v6  ;;  %5897 = vmatprep.mubr.msk.f32.mxu1 %vm6396_vm0, %v6397_v2  ;;  %v2792_v6 = vld [vmem:[#allocation6 + $0x8] sm:$0xff] }
 0xf6f   :  { %6129 = vmatprep.subr.bf16.mxu1 %v6395_v1 }
 0xf72   :  { %6131 = vmatpush3.bf16.msra.mxu1 %v6603_v13  ;;  %v7010_v13 = vld [vmem:[#allocation2] sm:$0x1] }
 0xf73   :  { %5911 = vmatprep.subr.mxu1 %v6397_v2 }
 0xf75   :  { %5898 = vmatmul.mubr.msk.f32.vlgmr.msra.gmra.mrb[32].mxu1 %vm156_vm1, %v2792_v6 }
 0xf76   :  { %5913 = vmatprep.mubr.msk.f32.mxu1 %vm6396_vm0, %v6397_v2 }
0x1038   :  { %v2605_v30 = vpop.f32.mrb[28].mxu1 }
0x1039   :  { %v2606_v32 = vadd.f32 %v2605_v30, %v7010_v13  ;;  %v5859_v33 = vpop.f32.mrb[29].mxu1 }
0x103a   :  { %v3170_v33 = vld [vmem:[%s7322_s8] sm:$0xf] }
0x103b   :  { %v5447_v34 = vmul.f32 -1.442695, %v2606_v32 }
0x103d   :  { %6246 = vpow2.f32 %v5447_v34 }
0x1040   :  { %v2690_v25 = vpop.f32.mrb[30].mxu1 }
0x1041   :  { %v2691_v37 = vadd.f32 %v7016_v36, %v2690_v25  ;;  %v5870_v38 = vpop.f32.mrb[31].mxu1 }
0x1043   :  { %v2694_v41 = vmax.f32 %v2691_v37, 0.0 }
0x1045   :  { %5876 = vmatmul.mubr.msk.f32.vlgmr.msra.gmra.mrb[16].mxu0 %vm2535_vm5, %v2694_v41 }
0x1046   :  { %6122 = vmatpush3.bf16.msra.mxu0 %v6594_v10  ;;  %5886 = vmatprep.mubr.msk.f32.mxu0 %vm6396_vm0, %v6397_v2 }
0x1047   :  { %v6247_v43 = vpop.eup %6246  ;;  %6123 = vmatprep.subr.bf16.mxu0 %v6395_v1 }
0x1048   :  { %v2612_v46 = vadd.f32 1.0, %v6247_v43  ;;  %v2935_v48 = vpop.f32.mrb[32].mxu1 }
0x1049   :  { %v5899_v49 = vpop.f32.mrb[33].mxu1 }
0x104a   :  { %6125 = vmatpush3.bf16.msra.mxu0 %v6607_v14  ;;  %6248 = vrcp.f32 %v2612_v46 }
0x104b   :  { %6132 = vmatprep.subr.bf16.mxu0 %v6395_v1 }
0x104d   :  { %5887 = vmatmul.mubr.msk.f32.vlgmr.msra.gmra.mrb[18].mxu0 %vm156_vm1, %v7025_v47 }
0x104e   :  { %6134 = vmatpush3.bf16.msra.mxu0 %v6658_v29  ;;  %5908 = vmatprep.mubr.msk.f32.mxu0 %vm6396_vm0, %v6397_v2  ;;  %v7040_v29 = vadd.f32 %v6626_v17, %v2935_v48 }
0x104f   :  { %6135 = vmatprep.subr.bf16.mxu0 %v6395_v1 }
0x1050   :  { %5912 = vmatpush3.xpose.msk.msra.mxu1 %vm393_vm2, %v7040_v29 }
0x1051   :  { %5916 = vmatprep.subr.mxu1 %v6397_v2 }
0x1052   :  { %6137 = vmatpush3.bf16.msra.mxu0 %v6664_v31  ;;  %v7048_v31 = vld [vmem:[%s7334_s20] ss:$0 sm:$0xff] }
0x1053   :  { %5921 = vmatprep.subr.mxu0 %v6397_v2 }
0x1054   :  { %v6249_v10 = vpop.eup %6248 }
0x1055   :  { %v2781_v14 = vsub.f32 1.0, %v6249_v10  ;;  %5909 = vmatmul.mubr.msk.f32.vlgmr.msra.gmra.mrb[20].mxu0 %vm156_vm1, %v2792_v6 }
0x1056   :  { %5923 = vmatprep.mubr.msk.f32.mxu0 %vm6396_vm0, %v6397_v2  ;;  %5922 = vmatpush3.msk.msra.mxu0 %vm559_vm4, %v3170_v33 }
0x1057   :  { %6192 = vpush %v2781_v14  ;;  %5931 = vmatprep.subr.mxu0 %v6397_v2 }
0x1088   :  { %s6193_s20 = spop %6192 }
0x1089   :  { %v2784_v63 = vstv %s6193_s20 }
0x1118   :  { %v2770_v50 = vpop.f32.mrb[16].mxu0 }
0x1119   :  { %v2771_v52 = vadd.f32 %v7048_v31, %v2770_v50  ;;  %v5877_v54 = vpop.f32.mrb[17].mxu0 }
0x111b   :  { %v5452_v56 = vmul.f32 -1.442695, %v2771_v52 }
0x111d   :  { %6250 = vpow2.f32 %v5452_v56 }
0x1120   :  { %v2862_v57 = vpop.f32.mrb[18].mxu0 }
0x1121   :  { %v2863_v17 = vadd.f32 %v6628_v18, %v2862_v57  ;;  %v5888_v58 = vpop.f32.mrb[19].mxu0 }
0x1123   :  { %v7052_v59 = vmul.f32 0.5, %v2863_v17 }
0x1125   :  { %3248 = vrot.lane.b32.xlu1 %v7052_v59, %s6398_s30  ;;  %5914 = vmatmul.mubr.msk.f32.vlgmr.msra.gmra.mrb[34].mxu1 %vm393_vm2, %v7052_v59 }
0x1126   :  { %5918 = vmatprep.mubr.msk.f32.mxu1 %vm6396_vm0, %v6397_v2 }
0x1127   :  { %v6251_v60 = vpop.eup %6250 }
0x1128   :  { %v2777_v61 = vadd.f32 1.0, %v6251_v60 }
0x1129   :  { %3492 = vrot.lane.b32.xlu1 %v7052_v59, %s6399_s5 }
0x112a   :  { %6252 = vrcp.f32 %v2777_v61 }
0x112d   :  { %3737 = vrot.lane.b32.xlu1 %v7040_v29, %s6400_s25 }
0x1134   :  { %v6253_v18 = vpop.eup %6252 }
0x1135   :  { %v2780_v62 = vmul.f32 %v6253_v18, %v6943_v55  ;;  %v3005_v55 = vpop.f32.mrb[20].mxu0 }
0x1136   :  { %v7070_v15 = vadd.f32 %v6677_v40, %v3005_v55 }
0x1137   :  { %v2786_v0 = vmul.f32 %v2784_v63, %v2780_v62 }
0x1138   :  { %5917 = vmatpush3.msra.mxu1 %v7070_v15 }
0x1139   :  { %v2787_v3 = vadd.f32 %v2786_v0, %v6612_v16  ;;  %v5910_v16 = vpop.f32.mrb[21].mxu0  ;;  %5926 = vmatprep.subr.mxu1 %v6397_v2 }
0x113b   :  { %2788 = vst.msk [vmem:[#allocation9] sm:$0xff] %vm156_vm1, %v2787_v3 }
0x1197   :  { %v3249_v40 = vpop.permute.xlu1 %3248 }
0x119b   :  { %v3493_v32 = vpop.permute.xlu1 %3492 }
0x119f   :  { %v3738_v54 = vpop.permute.xlu1 %3737 }
0x11f8   :  { %v3082_v4 = vpop.f32.mrb[34].mxu1 }
0x11f9   :  { %v5915_v8 = vpop.f32.mrb[35].mxu1  ;;  %v3086_v9 = vsel %vm470_vm3, %v3082_v4, -inf }
0x11fa   :  { %3087 = vmax.xlane.f32.xlu0 %v3086_v9 }
0x1287   :  { %v3088_v20 = vpop.xlane.xlu0 %3087 }
0x1288   :  { %v3089_v11 = vsub.f32 %v3082_v4, %v3088_v20 }
0x128a   :  { %v3090_v12 = vmul.f32 1.442695, %v3089_v11 }
0x128c   :  { %6254 = vpow2.f32 %v3090_v12 }
0x1296   :  { %v6255_v19 = vpop.eup %6254 }
0x1297   :  { %v3092_v22 = vsel %vm470_vm3, %v6255_v19, 0.0 }
0x1298   :  { %3093 = vadd.xlane.f32.xlu0 %v3092_v22 }
0x12ae   :  { %3250 = vrot.lane.b32.xlu0 %v7040_v29, %s6398_s30 }
0x12b2   :  { %3494 = vrot.lane.b32.xlu0 %v7040_v29, %s6399_s5 }
0x1325   :  { %v3094_v23 = vpop.xlane.xlu0 %3093 }
0x1326   :  { %6256 = vrcp.f32 %v3094_v23 }
0x1329   :  { %v3251_v6 = vpop.permute.xlu0 %3250 }
0x132d   :  { %v3495_v30 = vpop.permute.xlu0 %3494 }
0x1330   :  { %v6257_v26 = vpop.eup %6256 }
0x1331   :  { %v3096_v27 = vmul.f32 %v6257_v26, %v6255_v19 }
0x1333   :  { %5919 = vmatmul.mubr.msk.f32.vlgmr.msra.gmra.mrb[36].mxu1 %vm470_vm3, %v3096_v27 }
0x1334   :  { %5927 = vmatpush3.xpose.msk.msra.mxu1 %vm393_vm2, %v3251_v6  ;;  %5928 = vmatprep.mubr.msk.f32.mxu1 %vm6396_vm0, %v6397_v2 }
0x1335   :  { %5941 = vmatprep.subr.mxu1 %v6397_v2 }
0x1337   :  { %5929 = vmatmul.mubr.msk.f32.vlgmr.msra.gmra.mrb[38].mxu1 %vm393_vm2, %v3249_v40 }
0x1338   :  { %5942 = vmatpush3.xpose.msk.msra.mxu1 %vm393_vm2, %v3495_v30  ;;  %5943 = vmatprep.mubr.msk.f32.mxu1 %vm6396_vm0, %v6397_v2 }
0x1339   :  { %5946 = vmatprep.subr.mxu1 %v6397_v2 }
0x133b   :  { %5944 = vmatmul.mubr.msk.f32.vlgmr.msra.gmra.mrb[40].mxu1 %vm393_vm2, %v3493_v32 }
0x133c   :  { %5948 = vmatprep.mubr.msk.f32.mxu1 %vm6396_vm0, %v6397_v2 }
0x1406   :  { %v3166_v34 = vpop.f32.mrb[36].mxu1 }
0x1407   :  { %v5920_v25 = vpop.f32.mrb[37].mxu1  ;;  %5924 = vmatmul.mubr.msk.f32.vlgmr.msra.gmra.mrb[22].mxu0 %vm393_vm2, %v3166_v34 }
0x1408   :  { %5933 = vmatprep.mubr.msk.f32.mxu0 %vm6396_vm0, %v6397_v2 }
0x140a   :  { %v3322_v37 = vpop.f32.mrb[38].mxu1 }
0x140b   :  { %v5930_v38 = vpop.f32.mrb[39].mxu1  ;;  %v3326_v20 = vsel %vm470_vm3, %v3322_v37, -inf }
0x140e   :  { %v3566_v41 = vpop.f32.mrb[40].mxu1 }
0x140f   :  { %v5945_v43 = vpop.f32.mrb[41].mxu1  ;;  %v3570_v46 = vsel %vm470_vm3, %v3566_v41, -inf }
0x1410   :  { %3571 = vmax.xlane.f32.xlu0 %v3570_v46 }
0x1426   :  { %3581 = vrot.lane.b32.xlu0 %v7070_v15, %s6399_s5 }
0x142a   :  { %3735 = vrot.lane.b32.xlu0 %v7052_v59, %s6400_s25 }
0x142e   :  { %3978 = vrot.lane.b32.xlu0 %v7052_v59, %s6401_s3 }
0x1432   :  { %4067 = vrot.lane.b32.xlu0 %v7070_v15, %s6401_s3 }
0x149d   :  { %v3572_v10 = vpop.xlane.xlu0 %3571 }
0x149e   :  { %v3573_v14 = vsub.f32 %v3566_v41, %v3572_v10 }
0x14a0   :  { %v3574_v48 = vmul.f32 1.442695, %v3573_v14 }
0x14a1   :  { %v3582_v49 = vpop.permute.xlu0 %3581 }
0x14a2   :  { %6258 = vpow2.f32 %v3574_v48  ;;  %5947 = vmatpush3.msra.mxu1 %v3582_v49 }
0x14a3   :  { %5956 = vmatprep.subr.mxu1 %v6397_v2 }
0x14a5   :  { %v3736_v57 = vpop.permute.xlu0 %3735 }
0x14a9   :  { %v3979_v60 = vpop.permute.xlu0 %3978 }
0x14ac   :  { %v6259_v50 = vpop.eup %6258 }
0x14ad   :  { %v3576_v52 = vsel %vm470_vm3, %v6259_v50, 0.0  ;;  %v4068_v18 = vpop.permute.xlu0 %4067 }
0x14ae   :  { %3577 = vadd.xlane.f32.xlu1 %v3576_v52 }
0x14bf   :  { %3980 = vrot.lane.b32.xlu1 %v7040_v29, %s6401_s3 }
0x153b   :  { %v3578_v56 = vpop.xlane.xlu1 %3577 }
0x153c   :  { %6260 = vrcp.f32 %v3578_v56 }
0x153f   :  { %v3981_v61 = vpop.permute.xlu1 %3980 }
0x1546   :  { %v6261_v17 = vpop.eup %6260 }
0x1547   :  { %v3580_v58 = vmul.f32 %v6261_v17, %v6259_v50  ;;  %v5470_v17 = vld [vmem:[%s7322_s8 + $0x8] sm:$0xf] }
0x1549   :  { %5949 = vmatmul.mubr.msk.f32.vlgmr.msra.gmra.mrb[42].mxu1 %vm470_vm3, %v3580_v58 }
0x154a   :  { %5957 = vmatpush3.xpose.msk.msra.mxu1 %vm393_vm2, %v3738_v54  ;;  %5958 = vmatprep.mubr.msk.f32.mxu1 %vm6396_vm0, %v6397_v2  ;;  %v5464_v54 = vld [vmem:[%s7322_s8 + $0x4] sm:$0xf] }
0x154b   :  { %5971 = vmatprep.subr.mxu1 %v6397_v2 }
0x154d   :  { %5959 = vmatmul.mubr.msk.f32.vlgmr.msra.gmra.mrb[44].mxu1 %vm393_vm2, %v3736_v57 }
0x154e   :  { %5972 = vmatpush3.xpose.msk.msra.mxu1 %vm393_vm2, %v3981_v61  ;;  %5973 = vmatprep.mubr.msk.f32.mxu1 %vm6396_vm0, %v6397_v2 }
0x154f   :  { %5976 = vmatprep.subr.mxu1 %v6397_v2 }
0x1551   :  { %5974 = vmatmul.mubr.msk.f32.vlgmr.msra.gmra.mrb[46].mxu1 %vm393_vm2, %v3979_v60 }
0x1552   :  { %5977 = vmatpush3.msra.mxu1 %v4068_v18  ;;  %5978 = vmatprep.mubr.msk.f32.mxu1 %vm6396_vm0, %v6397_v2 }
0x1553   :  { %5986 = vmatprep.subr.mxu1 %v6397_v2 }
0x161c   :  { %v7126_v62 = vpop.f32.mrb[42].mxu1 }
0x161d   :  { %v5950_v63 = vpop.f32.mrb[43].mxu1 }
0x1620   :  { %v3809_v0 = vpop.f32.mrb[44].mxu1 }
0x1621   :  { %v5960_v3 = vpop.f32.mrb[45].mxu1  ;;  %v3813_v40 = vsel %vm470_vm3, %v3809_v0, -inf }
0x1624   :  { %v4052_v4 = vpop.f32.mrb[46].mxu1 }
0x1625   :  { %v5975_v8 = vpop.f32.mrb[47].mxu1  ;;  %v4056_v9 = vsel %vm470_vm3, %v4052_v4, -inf }
0x1626   :  { %4057 = vmax.xlane.f32.xlu1 %v4056_v9 }
0x162a   :  { %3327 = vmax.xlane.f32.xlu1 %v3326_v20 }
0x163b   :  { %4223 = vrot.lane.b32.xlu1 %v7040_v29, %s6402_s29 }
0x163f   :  { %4466 = vrot.lane.b32.xlu1 %v7040_v29, %s6403_s22 }
0x16b3   :  { %v4058_v11 = vpop.xlane.xlu1 %4057 }
0x16b4   :  { %v4059_v12 = vsub.f32 %v4052_v4, %v4058_v11 }
0x16b6   :  { %v4060_v19 = vmul.f32 1.442695, %v4059_v12 }
0x16b7   :  { %v3328_v22 = vpop.xlane.xlu1 %3327 }
0x16b8   :  { %6262 = vpow2.f32 %v4060_v19  ;;  %v3329_v55 = vsub.f32 %v3322_v37, %v3328_v22 }
0x16ba   :  { %v3330_v16 = vmul.f32 1.442695, %v3329_v55 }
0x16bb   :  { %v4224_v30 = vpop.permute.xlu1 %4223 }
0x16bc   :  { %6264 = vpow2.f32 %v3330_v16 }
0x16bf   :  { %v4467_v32 = vpop.permute.xlu1 %4466 }
0x16c2   :  { %v6263_v23 = vpop.eup %6262 }
0x16c3   :  { %v4062_v26 = vsel %vm470_vm3, %v6263_v23, 0.0 }
0x16c4   :  { %4063 = vadd.xlane.f32.xlu0 %v4062_v26 }
0x16c6   :  { %v6265_v27 = vpop.eup %6264 }
0x16c7   :  { %v3332_v6 = vsel %vm470_vm3, %v6265_v27, 0.0 }
0x16c8   :  { %3333 = vadd.xlane.f32.xlu1 %v3332_v6 }
0x16da   :  { %4221 = vrot.lane.b32.xlu0 %v7052_v59, %s6402_s29 }
0x16de   :  { %4464 = vrot.lane.b32.xlu0 %v7052_v59, %s6403_s22 }
0x16e2   :  { %3338 = vrot.lane.b32.xlu0 %v7070_v15, %s6398_s30 }
0x1701   :  { %3814 = vmax.xlane.f32.xlu0 %v3813_v40  ;;  %v5476_v40 = vld [vmem:[%s7322_s8 + $0xc] sm:$0xf] }
0x1751   :  { %v4064_v33 = vpop.xlane.xlu0 %4063 }
0x1752   :  { %6266 = vrcp.f32 %v4064_v33 }
0x1755   :  { %v4222_v34 = vpop.permute.xlu0 %4221  ;;  %v3334_v25 = vpop.xlane.xlu1 %3333 }
0x1756   :  { %6268 = vrcp.f32 %v3334_v25  ;;  %v5482_v25 = vld [vmem:[%s7322_s8 + $0x10] sm:$0xf] }
0x1759   :  { %v4465_v37 = vpop.permute.xlu0 %4464 }
0x175c   :  { %v6267_v38 = vpop.eup %6266 }
0x175d   :  { %v4066_v41 = vmul.f32 %v6267_v38, %v6263_v23  ;;  %v3339_v43 = vpop.permute.xlu0 %3338 }
0x175e   :  { %5932 = vmatpush3.msra.mxu0 %v3339_v43 }
0x175f   :  { %5979 = vmatmul.mubr.msk.f32.vlgmr.msra.gmra.mrb[48].mxu1 %vm470_vm3, %v4066_v41  ;;  %5936 = vmatprep.subr.mxu0 %v6397_v2 }
0x1760   :  { %v6269_v46 = vpop.eup %6268  ;;  %5987 = vmatpush3.xpose.msk.msra.mxu1 %vm393_vm2, %v4224_v30  ;;  %5988 = vmatprep.mubr.msk.f32.mxu1 %vm6396_vm0, %v6397_v2 }
0x1761   :  { %v3336_v10 = vmul.f32 %v6269_v46, %v6265_v27  ;;  %6001 = vmatprep.subr.mxu1 %v6397_v2  ;;  %v5488_v46 = vld [vmem:[%s7322_s8 + $0x14] sm:$0xf] }
0x1763   :  { %5934 = vmatmul.mubr.msk.f32.vlgmr.msra.gmra.mrb[24].mxu0 %vm470_vm3, %v3336_v10  ;;  %5989 = vmatmul.mubr.msk.f32.vlgmr.msra.gmra.mrb[50].mxu1 %vm393_vm2, %v4222_v34 }
0x1764   :  { %6002 = vmatpush3.xpose.msk.msra.mxu1 %vm393_vm2, %v4467_v32  ;;  %6003 = vmatprep.mubr.msk.f32.mxu1 %vm6396_vm0, %v6397_v2 }
0x1765   :  { %5938 = vmatprep.mubr.msk.f32.mxu0 %vm6396_vm0, %v6397_v2  ;;  %6006 = vmatprep.subr.mxu1 %v6397_v2 }
0x1766   :  { %5937 = vmatpush3.msk.msra.mxu0 %vm559_vm4, %v5464_v54 }
0x1767   :  { %6004 = vmatmul.mubr.msk.f32.vlgmr.msra.gmra.mrb[52].mxu1 %vm393_vm2, %v4465_v37  ;;  %5951 = vmatprep.subr.mxu0 %v6397_v2 }
0x1768   :  { %6008 = vmatprep.mubr.msk.f32.mxu1 %vm6396_vm0, %v6397_v2 }
0x178e   :  { %v3815_v14 = vpop.xlane.xlu0 %3814 }
0x178f   :  { %v3816_v48 = vsub.f32 %v3809_v0, %v3815_v14 }
0x1791   :  { %v3817_v49 = vmul.f32 1.442695, %v3816_v48 }
0x1793   :  { %6270 = vpow2.f32 %v3817_v49 }
0x179d   :  { %v6271_v50 = vpop.eup %6270 }
0x179e   :  { %v3819_v52 = vsel %vm470_vm3, %v6271_v50, 0.0 }
0x179f   :  { %3820 = vadd.xlane.f32.xlu0 %v3819_v52  ;;  %v5494_v52 = vld [vmem:[%s7322_s8 + $0x18] sm:$0xf] }
0x182c   :  { %v3821_v8 = vpop.xlane.xlu0 %3820 }
0x182d   :  { %6272 = vrcp.f32 %v3821_v8 }
0x1832   :  { %v7166_v56 = vpop.f32.mrb[48].mxu1 }
0x1833   :  { %v5980_v57 = vpop.f32.mrb[49].mxu1 }
0x1836   :  { %v3410_v58 = vpop.f32.mrb[24].mxu0  ;;  %v4295_v60 = vpop.f32.mrb[50].mxu1 }
0x1837   :  { %v5935_v61 = vpop.f32.mrb[25].mxu0  ;;  %5939 = vmatmul.mubr.msk.f32.vlgmr.msra.gmra.mrb[22].mxu0 %vm393_vm2, %v3410_v58  ;;  %v5990_v18 = vpop.f32.mrb[51].mxu1  ;;  %v4299_v4 = vsel %vm470_vm3, %v4295_v60, -inf }
0x1838   :  { %5952 = vmatpush3.msk.msra.mxu0 %vm559_vm4, %v5470_v17  ;;  %5953 = vmatprep.mubr.msk.f32.mxu0 %vm6396_vm0, %v6397_v2  ;;  %v6273_v20 = vpop.eup %6272 }
0x1839   :  { %5961 = vmatprep.subr.mxu0 %v6397_v2  ;;  %v3823_v12 = vmul.f32 %v6273_v20, %v6271_v50 }
0x183a   :  { %v4538_v63 = vpop.f32.mrb[52].mxu1 }
0x183b   :  { %v6005_v0 = vpop.f32.mrb[53].mxu1  ;;  %v4542_v3 = vsel %vm470_vm3, %v4538_v63, -inf }
0x183c   :  { %4543 = vmax.xlane.f32.xlu1 %v4542_v3 }
0x183f   :  { %5954 = vmatmul.mubr.msk.f32.vlgmr.msra.gmra.mrb[22].mxu0 %vm393_vm2, %v7126_v62 }
0x1840   :  { %5963 = vmatprep.mubr.msk.f32.mxu0 %vm6396_vm0, %v6397_v2 }
0x184d   :  { %3824 = vrot.lane.b32.xlu1 %v7070_v15, %s6400_s25 }
0x1851   :  { %4709 = vrot.lane.b32.xlu1 %v7040_v29, %s6404_s1 }
0x1855   :  { %4707 = vrot.lane.b32.xlu1 %v7052_v59, %s6404_s1 }
0x1879   :  { %4300 = vmax.xlane.f32.xlu1 %v4299_v4  ;;  %v5500_v4 = vld [vmem:[%s7322_s8 + $0x1c] sm:$0xf] }
0x18c9   :  { %v4544_v9 = vpop.xlane.xlu1 %4543 }
0x18ca   :  { %v4545_v62 = vsub.f32 %v4538_v63, %v4544_v9 }
0x18cc   :  { %v4546_v11 = vmul.f32 1.442695, %v4545_v62 }
0x18cd   :  { %v3825_v19 = vpop.permute.xlu1 %3824 }
0x18ce   :  { %6274 = vpow2.f32 %v4546_v11  ;;  %5962 = vmatpush3.msra.mxu0 %v3825_v19 }
0x18cf   :  { %5964 = vmatmul.mubr.msk.f32.vlgmr.msra.gmra.mrb[26].mxu0 %vm470_vm3, %v3823_v12  ;;  %5966 = vmatprep.subr.mxu0 %v6397_v2 }
0x18d0   :  { %5968 = vmatprep.mubr.msk.f32.mxu0 %vm6396_vm0, %v6397_v2  ;;  %5967 = vmatpush3.msk.msra.mxu0 %vm559_vm4, %v5476_v40 }
0x18d1   :  { %v4710_v22 = vpop.permute.xlu1 %4709  ;;  %5981 = vmatprep.subr.mxu0 %v6397_v2 }
0x18d5   :  { %v4708_v55 = vpop.permute.xlu1 %4707 }
0x18d8   :  { %v6275_v29 = vpop.eup %6274 }
0x18d9   :  { %v4548_v59 = vsel %vm470_vm3, %v6275_v29, 0.0 }
0x18da   :  { %4549 = vadd.xlane.f32.xlu0 %v4548_v59 }
0x18f0   :  { %4553 = vrot.lane.b32.xlu0 %v7070_v15, %s6403_s22 }
0x1906   :  { %v4301_v16 = vpop.xlane.xlu1 %4300 }
0x1907   :  { %v4302_v23 = vsub.f32 %v4295_v60, %v4301_v16 }
0x1909   :  { %v4303_v26 = vmul.f32 1.442695, %v4302_v23 }
0x190b   :  { %6276 = vpow2.f32 %v4303_v26 }
0x1915   :  { %v6277_v27 = vpop.eup %6276 }
0x1916   :  { %v4305_v6 = vsel %vm470_vm3, %v6277_v27, 0.0 }
0x1917   :  { %4306 = vadd.xlane.f32.xlu0 %v4305_v6 }
0x192d   :  { %4310 = vrot.lane.b32.xlu0 %v7070_v15, %s6402_s29 }
0x1967   :  { %v4550_v30 = vpop.xlane.xlu0 %4549 }
0x1968   :  { %6278 = vrcp.f32 %v4550_v30 }
0x196b   :  { %v4554_v32 = vpop.permute.xlu0 %4553 }
0x196c   :  { %6007 = vmatpush3.msra.mxu1 %v4554_v32 }
0x196d   :  { %6016 = vmatprep.subr.mxu1 %v6397_v2 }
0x1972   :  { %v6279_v33 = vpop.eup %6278 }
0x1973   :  { %v4552_v34 = vmul.f32 %v6279_v33, %v6275_v29 }
0x1975   :  { %6009 = vmatmul.mubr.msk.f32.vlgmr.msra.gmra.mrb[54].mxu1 %vm470_vm3, %v4552_v34 }
0x1976   :  { %6017 = vmatpush3.xpose.msk.msra.mxu1 %vm393_vm2, %v4710_v22  ;;  %6018 = vmatprep.mubr.msk.f32.mxu1 %vm6396_vm0, %v6397_v2  ;;  %v4972_v22 = vsel %vm156_vm1, %v7025_v47, 0.0 }
0x1977   :  { %6138 = vmatprep.subr.bf16.mxu1 %v6395_v1 }
0x1979   :  { %6019 = vmatmul.mubr.msk.f32.vlgmr.msra.gmra.mrb[56].mxu1 %vm393_vm2, %v4708_v55 }
0x197a   :  { %6140 = vmatpush3.bf16.msra.mxu1 %v6897_v35  ;;  %6039 = vmatprep.mubr.msk.f32.mxu1 %vm6396_vm0, %v6397_v2 }
0x197b   :  { %6141 = vmatprep.subr.bf16.mxu1 %v6395_v1 }
0x197e   :  { %6143 = vmatpush3.bf16.msra.mxu1 %v6917_v44 }
0x197f   :  { %6150 = vmatprep.subr.bf16.mxu1 %v6395_v1 }
0x19a2   :  { %v3896_v37 = vpop.f32.mrb[26].mxu0 }
0x19a3   :  { %v5965_v38 = vpop.f32.mrb[27].mxu0  ;;  %5969 = vmatmul.mubr.msk.f32.vlgmr.msra.gmra.mrb[22].mxu0 %vm393_vm2, %v3896_v37 }
0x19a4   :  { %v4307_v41 = vpop.xlane.xlu0 %4306  ;;  %5982 = vmatpush3.msk.msra.mxu0 %vm559_vm4, %v5482_v25  ;;  %5983 = vmatprep.mubr.msk.f32.mxu0 %vm6396_vm0, %v6397_v2 }
0x19a5   :  { %6280 = vrcp.f32 %v4307_v41  ;;  %5991 = vmatprep.subr.mxu0 %v6397_v2 }
0x19a8   :  { %v4311_v35 = vpop.permute.xlu0 %4310 }
0x19ab   :  { %5984 = vmatmul.mubr.msk.f32.vlgmr.msra.gmra.mrb[22].mxu0 %vm393_vm2, %v7166_v56 }
0x19ac   :  { %5992 = vmatpush3.msra.mxu0 %v4311_v35  ;;  %5993 = vmatprep.mubr.msk.f32.mxu0 %vm6396_vm0, %v6397_v2 }
0x19ad   :  { %5996 = vmatprep.subr.mxu0 %v6397_v2 }
0x19af   :  { %v6281_v44 = vpop.eup %6280 }
0x19b0   :  { %v4309_v43 = vmul.f32 %v6281_v44, %v6277_v27 }
0x19b2   :  { %5994 = vmatmul.mubr.msk.f32.vlgmr.msra.gmra.mrb[28].mxu0 %vm470_vm3, %v4309_v43 }
0x19b3   :  { %5998 = vmatprep.mubr.msk.f32.mxu0 %vm6396_vm0, %v6397_v2  ;;  %5997 = vmatpush3.msk.msra.mxu0 %vm559_vm4, %v5488_v46 }
0x19b4   :  { %6011 = vmatprep.subr.mxu0 %v6397_v2 }
0x1a48   :  { %v4625_v10 = vpop.f32.mrb[54].mxu1 }
0x1a49   :  { %v6010_v14 = vpop.f32.mrb[55].mxu1 }
0x1a4c   :  { %v4781_v48 = vpop.f32.mrb[56].mxu1 }
0x1a4d   :  { %v6020_v49 = vpop.f32.mrb[57].mxu1  ;;  %v4785_v50 = vsel %vm470_vm3, %v4781_v48, -inf }
0x1a4e   :  { %4786 = vmax.xlane.f32.xlu1 %v4785_v50 }
0x1a85   :  { %v4382_v54 = vpop.f32.mrb[28].mxu0 }
0x1a86   :  { %v5995_v56 = vpop.f32.mrb[29].mxu0  ;;  %5999 = vmatmul.mubr.msk.f32.vlgmr.msra.gmra.mrb[22].mxu0 %vm393_vm2, %v4382_v54 }
0x1a87   :  { %6012 = vmatpush3.msk.msra.mxu0 %vm559_vm4, %v5494_v52  ;;  %6013 = vmatprep.mubr.msk.f32.mxu0 %vm6396_vm0, %v6397_v2 }
0x1a88   :  { %6021 = vmatprep.subr.mxu0 %v6397_v2 }
0x1a8e   :  { %6014 = vmatmul.mubr.msk.f32.vlgmr.msra.gmra.mrb[22].mxu0 %vm393_vm2, %v4625_v10 }
0x1a8f   :  { %6023 = vmatprep.mubr.msk.f32.mxu0 %vm6396_vm0, %v6397_v2 }
0x1adb   :  { %v4787_v57 = vpop.xlane.xlu1 %4786 }
0x1adc   :  { %v4788_v17 = vsub.f32 %v4781_v48, %v4787_v57 }
0x1ade   :  { %v4789_v58 = vmul.f32 1.442695, %v4788_v17 }
0x1ae0   :  { %6282 = vpow2.f32 %v4789_v58 }
0x1aea   :  { %v6283_v60 = vpop.eup %6282 }
0x1aeb   :  { %v4791_v61 = vsel %vm470_vm3, %v6283_v60, 0.0 }
0x1aec   :  { %4792 = vadd.xlane.f32.xlu1 %v4791_v61 }
0x1afd   :  { %4796 = vrot.lane.b32.xlu1 %v7070_v15, %s6404_s1  ;;  %s6405_s1 = smov [#allocation9]  }
0x1afe   :  { %s5375_s26 = sshll.u32 %s6405_s1, 4  ;;  %s5376_s26 = int_to_ptr.vmem [resolvable:$true] %s5375_s26 }
0x1aff   :  { %s6362_s12 = scalar_lea.vmem %s5376_s26, 256  ;;  %p6367_p11 = scmp.lt.s32.totalorder %s5376_s26, %s5376_s26 }
0x1b00   :  { %p6363_p10 = scmp.ne.s32.totalorder %s5376_s26, %s6362_s12  ;;  %p6368_p12 = scmp.lt.s32.totalorder %s6362_s12, %s6362_s12 }
0x1b02   :  { %p6369_p13 = por %p6368_p12, %p6367_p11 }
0x1b04   :  { %p6370_p0 = pnand %p6369_p13, %p6363_p10 }
0x1b79   :  { %v4793_v18 = vpop.xlane.xlu1 %4792 }
0x1b7a   :  { %6284 = vrcp.f32 %v4793_v18 }
0x1b7d   :  { %v4797_v63 = vpop.permute.xlu1 %4796 }
0x1b7e   :  { %6022 = vmatpush3.msra.mxu0 %v4797_v63 }
0x1b7f   :  { %6026 = vmatprep.subr.mxu0 %v6397_v2 }
0x1b84   :  { %v6285_v0 = vpop.eup %6284 }
0x1b85   :  { %v4795_v3 = vmul.f32 %v6285_v0, %v6283_v60 }
0x1b87   :  { %6024 = vmatmul.mubr.msk.f32.vlgmr.msra.gmra.mrb[30].mxu0 %vm470_vm3, %v4795_v3 }
0x1b88   :  { %6027 = vmatpush3.msk.msra.mxu0 %vm559_vm4, %v5500_v4  ;;  %6028 = vmatprep.mubr.msk.f32.mxu0 %vm6396_vm0, %v6397_v2 }
0x1b89   :  { %6144 = vmatprep.subr.bf16.mxu0 %v6395_v1 }
0x1c5a   :  { %v4868_v15 = vpop.f32.mrb[30].mxu0 }
0x1c5b   :  { %v6025_v8 = vpop.f32.mrb[31].mxu0  ;;  %6029 = vmatmul.mubr.msk.f32.vlgmr.msra.gmra.mrb[22].mxu0 %vm393_vm2, %v4868_v15 }
0x1c5c   :  { %6146 = vmatpush3.bf16.msra.mxu0 %v6908_v39  ;;  %6050 = vmatprep.mubr.msk.f32.mxu0 %vm6396_vm0, %v6397_v2 }
0x1c5d   :  { %6147 = vmatprep.subr.bf16.mxu0 %v6395_v1 }
0x1c60   :  { %6149 = vmatpush3.bf16.msra.mxu0 %v6921_v45  ;;  %v4973_v45 = vrot.slane %v4972_v22, 4 }
0x1c61   :  { %6159 = vmatprep.subr.bf16.mxu0 %v6395_v1 }
0x1c62   :  { %v4974_v55 = vadd.f32 %v4973_v45, %v4972_v22 }
0x1c64   :  { %v4975_v16 = vrot.slane %v4974_v55, 2 }
0x1c66   :  { %v4976_v23 = vadd.f32 %v4975_v16, %v4974_v55 }
0x1c68   :  { %v4977_v26 = vrot.slane %v4976_v23, 1 }
0x1d2e   :  { %v4945_v9 = vpop.f32.mrb[22].mxu0 }
0x1d2f   :  { %v6163_v20 = vadd.f32 %v6881_v7, %v4945_v9  ;;  %v6030_v62 = vpop.f32.mrb[23].mxu0  ;;  %v4978_v7 = vadd.f32 %v4977_v26, %v4976_v23 }
0x1d31   :  { %v4950_v11 = vsel %vm156_vm1, %v6163_v20, 0.0  ;;  %v4979_v27 = vmul.f32 0.125, %v4978_v7 }
0x1d32   :  { %4951 = vadd.xlane.f32.xlu0 %v4950_v11 }
0x1d33   :  { %6040 = vmatmul.mubr.msk.f32.vlgmr.msra.gmra.mrb[58].mxu1 %vm156_vm1, %v4979_v27 }
0x1d34   :  { %6152 = vmatpush3.bf16.msra.mxu1 %v6956_v42  ;;  %6057 = vmatprep.mubr.msk.f32.mxu1 %vm6396_vm0, %v6397_v2 }
0x1d35   :  { %6153 = vmatprep.subr.bf16.mxu1 %v6395_v1 }
0x1dbf   :  { %v4952_v12 = vpop.xlane.xlu0 %4951 }
0x1dc0   :  { %v4953_v19 = vmul.f32 0.03125, %v4952_v12 }
0x1dc2   :  { %v4954_v29 = vsub.f32 %v6163_v20, %v4953_v19 }
0x1dc4   :  { %v4955_v39 = vmul.f32 %v4954_v29, %v4954_v29 }
0x1dc6   :  { %v4956_v59 = vsel %vm156_vm1, %v4955_v39, 0.0 }
0x1dc7   :  { %4957 = vadd.xlane.f32.xlu1 %v4956_v59 }
0x1e06   :  { %v5049_v46 = vpop.f32.mrb[58].mxu1 }
0x1e07   :  { %v6041_v10 = vpop.f32.mrb[59].mxu1 }
0x1e54   :  { %v4958_v6 = vpop.xlane.xlu1 %4957 }
0x1e55   :  { %v4959_v40 = vmul.f32 0.03125, %v4958_v6 }
0x1e57   :  { %v4960_v30 = vadd.f32 1e-05, %v4959_v40 }
0x1e59   :  { %6286 = vrsqrt.f32 %v4960_v30 }
0x1e63   :  { %v6287_v32 = vpop.eup %6286 }
0x1e64   :  { %v4962_v33 = vmul.f32 %v6287_v32, %v4954_v29 }
0x1e66   :  { %v4963_v34 = vmul.f32 %v6934_v51, %v4962_v33 }
0x1e68   :  { %v4964_v25 = vadd.f32 %v6939_v53, %v4963_v34 }
0x1e6a   :  { %v4965_v37 = vsel %vm156_vm1, %v4964_v25, -inf }
0x1e6b   :  { %v4966_v38 = vrot.slane %v4965_v37, 4 }
0x1e6d   :  { %v4967_v41 = vmax.f32 %v4965_v37, %v4966_v38 }
0x1e6f   :  { %v4968_v42 = vrot.slane %v4967_v41, 2 }
0x1e71   :  { %v4969_v35 = vmax.f32 %v4967_v41, %v4968_v42 }
0x1e73   :  { %v4970_v44 = vrot.slane %v4969_v35, 1 }
0x1e75   :  { %v4971_v43 = vmax.f32 %v4969_v35, %v4970_v44 }
0x1e77   :  { %6051 = vmatmul.mubr.msk.f32.vlgmr.msra.gmra.mrb[32].mxu0 %vm156_vm1, %v4971_v43 }
0x1e78   :  { %6161 = vmatpush3.bf16.msra.mxu0 %v7003_v28  ;;  %6075 = vmatprep.mubr.msk.f32.mxu0 %vm6396_vm0, %v6397_v2 }
0x1f4a   :  { %v5122_v51 = vpop.f32.mrb[32].mxu0 }
0x1f4b   :  { %v5123_v14 = vadd.f32 %v5122_v51, %v5049_v46  ;;  %v6052_v53 = vpop.f32.mrb[33].mxu0 }
0x1f4d   :  { %v5126_v48 = vadd.f32 %v5123_v14, %v6963_v5 }
0x1f4f   :  { %v5127_v49 = vmax.f32 %v5126_v48, 0.0 }
0x1f51   :  { %6058 = vmatmul.mubr.msk.f32.vlgmr.msra.gmra.mrb[60].mxu1 %vm2535_vm5, %v5127_v49 }
0x1f52   :  { %6155 = vmatpush3.bf16.msra.mxu1 %v6972_v21  ;;  %6068 = vmatprep.mubr.msk.f32.mxu1 %vm6396_vm0, %v6397_v2 }
0x1f53   :  { %6156 = vmatprep.subr.bf16.mxu1 %v6395_v1 }
0x1f56   :  { %6158 = vmatpush3.bf16.msra.mxu1 %v6982_v24 }
0x1f59   :  { %6069 = vmatmul.mubr.msk.f32.vlgmr.msra.gmra.mrb[62].mxu1 %vm156_vm1, %v4964_v25 }
0x2024   :  { %v5197_v28 = vpop.f32.mrb[60].mxu1 }
0x2025   :  { %v5198_v50 = vadd.f32 %v5197_v28, %v7010_v13  ;;  %v6059_v52 = vpop.f32.mrb[61].mxu1 }
0x2027   :  { %v5506_v54 = vmul.f32 -1.442695, %v5198_v50 }
0x2029   :  { %6288 = vpow2.f32 %v5506_v54 }
0x202c   :  { %v5276_v5 = vpop.f32.mrb[62].mxu1 }
0x202d   :  { %v5277_v56 = vadd.f32 %v7016_v36, %v5276_v5  ;;  %v6070_v57 = vpop.f32.mrb[63].mxu1 }
0x202f   :  { %v5280_v21 = vmax.f32 %v5277_v56, 0.0 }
0x2031   :  { %6076 = vmatmul.mubr.msk.f32.vlgmr.msra.gmra.mrb[34].mxu0 %vm2535_vm5, %v5280_v21 }
0x2033   :  { %v6289_v2 = vpop.eup %6288 }
0x2034   :  { %v5204_v17 = vadd.f32 1.0, %v6289_v2 }
0x2036   :  { %6290 = vrcp.f32 %v5204_v17 }
0x2040   :  { %v6291_v1 = vpop.eup %6290 }
0x2041   :  { %v5361_v24 = vsub.f32 1.0, %v6291_v1 }
0x2043   :  { %6194 = vpush %v5361_v24 }
0x2074   :  { %s6195_s8 = spop %6194 }
0x2075   :  { %v5364_v3 = vstv %s6195_s8 }
0x2104   :  { %v5350_v58 = vpop.f32.mrb[34].mxu0 }
0x2105   :  { %v5351_v60 = vadd.f32 %v7048_v31, %v5350_v58  ;;  %v6077_v13 = vpop.f32.mrb[35].mxu0 }
0x2107   :  { %v5509_v61 = vmul.f32 -1.442695, %v5351_v60 }
0x2109   :  { %6292 = vpow2.f32 %v5509_v61 }
0x2113   :  { %v6293_v18 = vpop.eup %6292 }
0x2114   :  { %v5357_v63 = vadd.f32 1.0, %v6293_v18 }
0x2116   :  { %6294 = vrcp.f32 %v5357_v63 }
0x2120   :  { %v6295_v36 = vpop.eup %6294 }
0x2121   :  { %v5360_v0 = vmul.f32 %v6295_v36, %v4964_v25 }
0x2123   :  { %v5366_v4 = vmul.f32 %v5364_v3, %v5360_v0 }
0x2125   :  { %v5367_v15 = vadd.f32 %v5366_v4, %v7025_v47 }
0x2127   :  { %5369 = vst.msk [vmem:[#allocation9 + $0x8] sm:$0xff] %vm156_vm1, %v5367_v15 }
0x2128   :  { %6373 = shalt.err (!%p6370_p0)
}
0x2129   :  { %s7355_s16 = sld [smem:[#allocation19_spill]] }
0x212f   :  { %s6374_s23 = scalar_lea.hbm %s7355_s16, 256 }
0x2130   :  { %p6375_p1 = scmp.ne.s32.totalorder %s7355_s16, %s6374_s23  ;;  %p6378_p2 = scmp.lt.u32.totalorder %s6374_s23, %s7355_s16 }
0x2132   :  { %p6380_p3 = pnand %p6378_p2, %p6375_p1 }
0x2134   :  { %6383 = shalt.err (!%p6380_p3)
}
0x2135   :  { %5381 = dma.vmem_to_hbm [thread:$0]  %s5376_s26, 256, %s7355_s16, [#allocation5], %s6392_s24, %s6392_s24, %s6393_s2  }
0x2136   :  { %6388 = dma.done.wait [#allocation5], 256  }
0x2137   :  { %6389 = vsyncadd [#allocation5], 4294967040 }
0x2138   :  { %5385 = vsyncpa [#allocation4], 1 }
0x2139   :  { %5386 = vsyncpa [#allocation7], 1 }
0x213a   :  { %5387 = vsyncpa [#allocation5], 1 }

// kernel: tpu_custom_call.1
= control target key start
LH: loop header
LB: loop body
LE: loop exit
PB: predicated region body
PF: predicated region fallthrough
CT: control target
= control target key end

     0   :  { %s7314_s0 = inlined_call_operand.hbm [shape: f32[2,8,32], index: 0, kind: input, shape index: {}]   ;;  %s7315_s1 = inlined_call_operand.hbm [shape: f32[2,8,32], index: 1, kind: input, shape index: {}]   ;;  %s7316_s2 = inlined_call_operand.vmem [shape: f32[32,32], index: 2, kind: input, shape index: {}]   ;;  %s7317_s3 = inlined_call_operand.hbm [shape: f32[1,32], index: 3, kind: input, shape index: {}]   ;;  %s7318_s4 = inlined_call_operand.vmem [shape: f32[32,32], index: 4, kind: input, shape index: {}]   ;;  %s7319_s5 = inlined_call_operand.vmem [shape: f32[1,32], index: 5, kind: input, shape index: {}]   ;;  %s7320_s6 = inlined_call_operand.vmem [shape: f32[32,32], index: 6, kind: input, shape index: {}]   ;;  %s7321_s7 = inlined_call_operand.vmem [shape: f32[1,32], index: 7, kind: input, shape index: {}]   ;;  %s7322_s8 = inlined_call_operand.vmem [shape: f32[8,4,32], index: 8, kind: input, shape index: {}]   ;;  %s7323_s9 = inlined_call_operand.vmem [shape: f32[1,32], index: 9, kind: input, shape index: {}]   ;;  %s7324_s10 = inlined_call_operand.vmem [shape: f32[1,32], index: 10, kind: input, shape index: {}]   ;;  %s7325_s11 = inlined_call_operand.vmem [shape: f32[1,32], index: 11, kind: input, shape index: {}]   ;;  %s7326_s12 = inlined_call_operand.vmem [shape: f32[32,16], index: 12, kind: input, shape index: {}]   ;;  %s7327_s13 = inlined_call_operand.vmem [shape: f32[32,16], index: 13, kind: input, shape index: {}]   ;;  %s7328_s14 = inlined_call_operand.vmem [shape: f32[1,16], index: 14, kind: input, shape index: {}]   ;;  %s7329_s15 = inlined_call_operand.vmem [shape: f32[16,1], index: 15, kind: input, shape index: {}]   ;;  %s7330_s16 = inlined_call_operand.<no memory space> [shape: f32[1,1], index: 16, kind: input, shape index: {}]   ;;  %s7331_s17 = inlined_call_operand.vmem [shape: f32[32,16], index: 17, kind: input, shape index: {}]   ;;  %s7332_s18 = inlined_call_operand.vmem [shape: f32[1,16], index: 18, kind: input, shape index: {}]   ;;  %s7333_s19 = inlined_call_operand.vmem [shape: f32[16,32], index: 19, kind: input, shape index: {}]   ;;  %s7334_s20 = inlined_call_operand.vmem [shape: f32[1,32], index: 20, kind: input, shape index: {}]   ;;  %s7335_s21 = inlined_call_operand.hbm [shape: f32[2,8,32], index: 21, kind: output, shape index: {}]  }
   0x1   :  { %7342 = sst [smem:[#allocation13_spill]] %s7314_s0  ;;  %v26_v0 = vstv %s7330_s16 }
   0x2   :  { %7343 = sst [smem:[#allocation14_spill]] %s7315_s1  ;;  %27 = vst [vmem:[#allocation2] sm:$0x1] %v26_v0 }
   0x3   :  { %7344 = sst [smem:[#allocation15_spill]] %s7316_s2 }
   0x4   :  { %7345 = sst [smem:[#allocation16_spill]] %s7317_s3 }
   0x5   :  { %7346 = sst [smem:[#allocation17_spill]] %s7318_s4 }
   0x6   :  { %7347 = sst [smem:[#allocation18_spill]] %s7319_s5 }
   0x7   :  { %7348 = sst [smem:[#allocation19_spill]] %s7335_s21 }
   0x8   :  { %28 = vsyncpa [#allocation4], 0 }
   0x9   :  { %29 = vsyncpa [#allocation7], 0 }
   0xa   :  { %30 = vsyncpa [#allocation5], 0  ;;  %s6390_s26 = smov [#allocation6]   ;;  %s6391_s3 = smov [#allocation3]  }
   0xb   :  { %s48_s27 = sshll.u32 %s6390_s26, 4  ;;  %s36_s28 = sshll.u32 %s6391_s3, 4  ;;  %s49_s27 = int_to_ptr.vmem [resolvable:$true] %s48_s27  ;;  %s6519_s28 = int_to_ptr.vmem [resolvable:$true] %s36_s28 }
   0xc   :  { %s7349_s4 = sld [smem:[#allocation14_spill]] }
  0x12   :  { %s6296_s30 = scalar_lea.hbm %s7349_s4, 256 }
  0x13   :  { %p6297_p0 = scmp.ne.s32.totalorder %s7349_s4, %s6296_s30  ;;  %p6300_p1 = scmp.lt.u32.totalorder %s6296_s30, %s7349_s4 }
  0x15   :  { %p6302_p2 = pnand %p6300_p1, %p6297_p0 }
  0x17   :  { %6305 = shalt.err (!%p6302_p2)
}
  0x18   :  { %s6306_s1 = scalar_lea.vmem %s49_s27, 256  ;;  %p6311_p4 = scmp.lt.s32.totalorder %s49_s27, %s49_s27 }
  0x19   :  { %p6307_p3 = scmp.ne.s32.totalorder %s49_s27, %s6306_s1  ;;  %p6312_p5 = scmp.lt.s32.totalorder %s6306_s1, %s6306_s1 }
  0x1b   :  { %p6313_p6 = por %p6312_p5, %p6311_p4 }
  0x1d   :  { %p6314_p7 = pnand %p6313_p6, %p6307_p3 }
  0x1f   :  { %6317 = shalt.err (!%p6314_p7)
}
  0x20   :  { %s6392_s24 = smov 128   ;;  %s6393_s2 = smov 8  }
  0x21   :  { %54 = dma.hbm_to_vmem [thread:$0]  %s7349_s4, 256, %s49_s27, [#allocation7], %s6392_s24, %s6392_s24, %s6393_s2  }
  0x22   :  { %s7350_s0 = sld [smem:[#allocation13_spill]] }
  0x28   :  { %s6318_s30 = scalar_lea.hbm %s7350_s0, 256 }
  0x29   :  { %p6319_p8 = scmp.ne.s32.totalorder %s7350_s0, %s6318_s30  ;;  %p6322_p9 = scmp.lt.u32.totalorder %s6318_s30, %s7350_s0 }
  0x2b   :  { %p6324_p10 = pnand %p6322_p9, %p6319_p8 }
  0x2d   :  { %6327 = shalt.err (!%p6324_p10)
}
  0x2e   :  { %s6328_s1 = scalar_lea.vmem %s6519_s28, 256  ;;  %p6333_p12 = scmp.lt.s32.totalorder %s6519_s28, %s6519_s28 }
  0x2f   :  { %p6329_p11 = scmp.ne.s32.totalorder %s6519_s28, %s6328_s1  ;;  %p6334_p13 = scmp.lt.s32.totalorder %s6328_s1, %s6328_s1 }
  0x31   :  { %p6335_p0 = por %p6334_p13, %p6333_p12 }
  0x33   :  { %p6336_p1 = pnand %p6335_p0, %p6329_p11 }
  0x35   :  { %6339 = shalt.err (!%p6336_p1)
}
  0x36   :  { %42 = dma.hbm_to_vmem [thread:$0]  %s7350_s0, 256, %s6519_s28, [#allocation4], %s6392_s24, %s6392_s24, %s6393_s2  }
  0x37   :  { %s6394_s25 = smov [#allocation8]   ;;  %s7351_s30 = sld [smem:[#allocation16_spill]] }
  0x38   :  { %s63_s26 = sshll.u32 %s6394_s25, 4  ;;  %s64_s26 = int_to_ptr.vmem [resolvable:$true] %s63_s26 }
  0x3d   :  { %s6340_s5 = scalar_lea.hbm %s7351_s30, 16 }
  0x3e   :  { %p6341_p2 = scmp.ne.s32.totalorder %s7351_s30, %s6340_s5  ;;  %p6344_p3 = scmp.lt.u32.totalorder %s6340_s5, %s7351_s30 }
  0x40   :  { %p6346_p4 = pnand %p6344_p3, %p6341_p2 }
  0x42   :  { %6349 = shalt.err (!%p6346_p4)
}
  0x43   :  { %s6350_s21 = scalar_lea.vmem %s64_s26, 16  ;;  %s6354_s28 = scalar_lea.vmem %s64_s26, 32 }
  0x44   :  { %p6351_p5 = scmp.ne.s32.totalorder %s64_s26, %s6350_s21  ;;  %p6355_p6 = scmp.lt.s32.totalorder %s64_s26, %s64_s26 }
  0x45   :  { %p6356_p7 = scmp.lt.s32.totalorder %s6354_s28, %s6350_s21 }
  0x47   :  { %p6357_p8 = por %p6356_p7, %p6355_p6 }
  0x49   :  { %p6358_p9 = pnand %p6357_p8, %p6351_p5 }
  0x4b   :  { %6361 = shalt.err (!%p6358_p9)
}
  0x4c   :  { %66 = dma.hbm_to_vmem [thread:$0]  %s7351_s30, 16, %s64_s26, [#allocation7]  }
  0x4d   :  { %6384 = dma.done.wait [#allocation4], 256  }
  0x4e   :  { %6385 = vsyncadd [#allocation4], 4294967040 }
  0x4f   :  { %6386 = dma.done.wait [#allocation7], 272  }
  0x50   :  { %6387 = vsyncadd [#allocation7], 4294967024  ;;  %v6395_v1 = vmov 0.0|0.0   ;;  %vm6396_vm0 = vmmov 0   ;;  %v6397_v2 = vmov 0.0   ;;  %s7352_s25 = sld [smem:[#allocation17_spill]] }
  0x51   :  { %6084 = vmatprep.subr.bf16.mxu1 %v6395_v1  ;;  %6078 = vmatprep.subr.bf16.mxu0 %v6395_v1  ;;  %s7353_s5 = sld [smem:[#allocation15_spill]]  ;;  %v149_v15 = vld [vmem:[#allocation6] sm:$0xff]  ;;  %vm156_vm1 = vcmask 261120   ;;  %v6612_v16 = vld [vmem:[#allocation3] sm:$0xff]  ;;  %s7354_s29 = sld [smem:[#allocation18_spill]]  ;;  %vm393_vm2 = vcmask 31744  }
  0x52   :  { %5697 = vmatprep.mubr.msk.f32.mxu1 %vm6396_vm0, %v6397_v2  ;;  %5686 = vmatprep.mubr.msk.f32.mxu0 %vm6396_vm0, %v6397_v2  ;;  %v6628_v18 = vld [vmem:[#allocation8] ss:$0 sm:$0xff]  ;;  %s6398_s30 = smov 124   ;;  %v119_v27 = vld [vmem:[%s7320_s6 + $0x8] sm:$0xff]  ;;  %v120_v28 = vld [vmem:[%s7320_s6 + $0x10] sm:$0xff]  ;;  %vm470_vm3 = vcmask 64512  }
  0x53   :  { %v118_v26 = vld [vmem:[%s7320_s6] sm:$0xff]  ;;  %v121_v30 = vld [vmem:[%s7320_s6 + $0x18] sm:$0xff]  ;;  %vm559_vm4 = vcmask 1043456   ;;  %s6401_s3 = smov 112   ;;  %s6403_s22 = smov 104   ;;  %vm2535_vm5 = vcmask 130048  }
  0x54   :  { %v6658_v29 = vpack.c.bf16 %v119_v27, %v118_v26  ;;  %v6664_v31 = vpack.c.bf16 %v121_v30, %v120_v28  ;;  %v6677_v40 = vld [vmem:[%s7321_s7] ss:$0 sm:$0xff]  ;;  %s6404_s1 = smov 100  }
  0x55   :  { %v555_v51 = vld [vmem:[%s7322_s8] sm:$0xf] }
  0x56   :  { %v114_v3 = vld [vmem:[%s7352_s25] sm:$0xff]  ;;  %v115_v4 = vld [vmem:[%s7352_s25 + $0x8] sm:$0xff]  ;;  %v116_v8 = vld [vmem:[%s7352_s25 + $0x10] sm:$0xff] }
  0x57   :  { %v110_v5 = vld [vmem:[%s7353_s5] sm:$0xff]  ;;  %v6583_v6 = vpack.c.bf16 %v115_v4, %v114_v3  ;;  %v111_v7 = vld [vmem:[%s7353_s5 + $0x8] sm:$0xff]  ;;  %v117_v9 = vld [vmem:[%s7352_s25 + $0x18] sm:$0xff]  ;;  %s6400_s25 = smov 116  }
  0x58   :  { %v6594_v10 = vpack.c.bf16 %v111_v7, %v110_v5  ;;  %v112_v11 = vld [vmem:[%s7353_s5 + $0x10] sm:$0xff]  ;;  %v113_v12 = vld [vmem:[%s7353_s5 + $0x18] sm:$0xff]  ;;  %v6603_v13 = vpack.c.bf16 %v117_v9, %v116_v8  ;;  %v6626_v17 = vld [vmem:[%s7354_s29] ss:$0 sm:$0xff]  ;;  %s6399_s5 = smov 120   ;;  %s6402_s29 = smov 108  }
  0x59   :  { %6086 = vmatpush3.bf16.msra.mxu1 %v6583_v6  ;;  %v6607_v14 = vpack.c.bf16 %v113_v12, %v112_v11 }
  0x5a   :  { %6080 = vmatpush3.bf16.msra.mxu0 %v6594_v10  ;;  %6087 = vmatprep.subr.bf16.mxu1 %v6395_v1 }
  0x5b   :  { %6081 = vmatprep.subr.bf16.mxu0 %v6395_v1 }
  0x5d   :  { %6089 = vmatpush3.bf16.msra.mxu1 %v6603_v13 }
  0x5e   :  { %6083 = vmatpush3.bf16.msra.mxu0 %v6607_v14  ;;  %5711 = vmatprep.subr.mxu1 %v6397_v2 }
  0x5f   :  { %6090 = vmatprep.subr.bf16.mxu0 %v6395_v1 }
  0x60   :  { %5698 = vmatmul.mubr.msk.f32.vlgmr.msra.gmra.mrb[0].mxu1 %vm156_vm1, %v149_v15 }
  0x61   :  { %5687 = vmatmul.mubr.msk.f32.vlgmr.msra.gmra.mrb[0].mxu0 %vm156_vm1, %v6612_v16  ;;  %5713 = vmatprep.mubr.msk.f32.mxu1 %vm6396_vm0, %v6397_v2 }
  0x62   :  { %5708 = vmatprep.mubr.msk.f32.mxu0 %vm6396_vm0, %v6397_v2  ;;  %6092 = vmatpush3.bf16.msra.mxu0 %v6658_v29 }
  0x63   :  { %6093 = vmatprep.subr.bf16.mxu0 %v6395_v1 }
  0x66   :  { %6095 = vmatpush3.bf16.msra.mxu0 %v6664_v31 }
  0x67   :  { %5721 = vmatprep.subr.mxu0 %v6397_v2 }
  0x69   :  { %5709 = vmatmul.mubr.msk.f32.vlgmr.msra.gmra.mrb[2].mxu0 %vm156_vm1, %v149_v15 }
  0x6a   :  { %5723 = vmatprep.mubr.msk.f32.mxu0 %vm6396_vm0, %v6397_v2  ;;  %5722 = vmatpush3.msk.msra.mxu0 %vm559_vm4, %v555_v51 }
  0x6b   :  { %5731 = vmatprep.subr.mxu0 %v6397_v2 }
 0x133   :  { %v305_v19 = vpop.f32.mrb[0].mxu1 }
 0x134   :  { %v6631_v20 = vadd.f32 %v6626_v17, %v305_v19  ;;  %v226_v21 = vpop.f32.mrb[0].mxu0  ;;  %v5699_v22 = vpop.f32.mrb[1].mxu1 }
 0x135   :  { %v227_v23 = vadd.f32 %v6628_v18, %v226_v21  ;;  %v5688_v24 = vpop.f32.mrb[1].mxu0 }
 0x136   :  { %636 = vrot.lane.b32.xlu1 %v6631_v20, %s6398_s30  ;;  %5712 = vmatpush3.xpose.msk.msra.mxu1 %vm393_vm2, %v6631_v20 }
 0x137   :  { %v6638_v25 = vmul.f32 0.5, %v227_v23  ;;  %5716 = vmatprep.subr.mxu1 %v6397_v2 }
 0x139   :  { %5714 = vmatmul.mubr.msk.f32.vlgmr.msra.gmra.mrb[2].mxu1 %vm393_vm2, %v6638_v25 }
 0x13a   :  { %634 = vrot.lane.b32.xlu1 %v6638_v25, %s6398_s30  ;;  %5718 = vmatprep.mubr.msk.f32.mxu1 %vm6396_vm0, %v6397_v2 }
 0x13c   :  { %v381_v41 = vpop.f32.mrb[2].mxu0 }
 0x13d   :  { %v6680_v42 = vadd.f32 %v6677_v40, %v381_v41  ;;  %v5710_v43 = vpop.f32.mrb[3].mxu0 }
 0x13e   :  { %879 = vrot.lane.b32.xlu1 %v6638_v25, %s6399_s5 }
 0x13f   :  { %5717 = vmatpush3.msra.mxu1 %v6680_v42 }
 0x140   :  { %5726 = vmatprep.subr.mxu1 %v6397_v2 }
 0x1a8   :  { %v637_v45 = vpop.permute.xlu1 %636 }
 0x1ac   :  { %v635_v48 = vpop.permute.xlu1 %634 }
 0x1b0   :  { %v880_v50 = vpop.permute.xlu1 %879 }
 0x20c   :  { %v466_v32 = vpop.f32.mrb[2].mxu1 }
 0x20d   :  { %v5715_v33 = vpop.f32.mrb[3].mxu1  ;;  %v471_v34 = vsel %vm470_vm3, %v466_v32, -inf }
 0x20e   :  { %472 = vmax.xlane.f32.xlu0 %v471_v34 }
 0x29b   :  { %v473_v35 = vpop.xlane.xlu0 %472 }
 0x29c   :  { %v474_v36 = vsub.f32 %v466_v32, %v473_v35 }
 0x29e   :  { %v475_v37 = vmul.f32 1.442695, %v474_v36 }
 0x2a0   :  { %6212 = vpow2.f32 %v475_v37 }
 0x2aa   :  { %v6213_v38 = vpop.eup %6212 }
 0x2ab   :  { %v477_v39 = vsel %vm470_vm3, %v6213_v38, 0.0 }
 0x2ac   :  { %478 = vadd.xlane.f32.xlu0 %v477_v39 }
 0x2c2   :  { %881 = vrot.lane.b32.xlu0 %v6631_v20, %s6399_s5 }
 0x339   :  { %v479_v44 = vpop.xlane.xlu0 %478 }
 0x33a   :  { %6214 = vrcp.f32 %v479_v44 }
 0x33d   :  { %v882_v49 = vpop.permute.xlu0 %881 }
 0x344   :  { %v6215_v46 = vpop.eup %6214 }
 0x345   :  { %v481_v47 = vmul.f32 %v6215_v46, %v6213_v38 }
 0x347   :  { %5719 = vmatmul.mubr.msk.f32.vlgmr.msra.gmra.mrb[4].mxu1 %vm470_vm3, %v481_v47 }
 0x348   :  { %5727 = vmatpush3.xpose.msk.msra.mxu1 %vm393_vm2, %v637_v45  ;;  %5728 = vmatprep.mubr.msk.f32.mxu1 %vm6396_vm0, %v6397_v2 }
 0x349   :  { %5741 = vmatprep.subr.mxu1 %v6397_v2 }
 0x34b   :  { %5729 = vmatmul.mubr.msk.f32.vlgmr.msra.gmra.mrb[6].mxu1 %vm393_vm2, %v635_v48 }
 0x34c   :  { %5742 = vmatpush3.xpose.msk.msra.mxu1 %vm393_vm2, %v882_v49  ;;  %5743 = vmatprep.mubr.msk.f32.mxu1 %vm6396_vm0, %v6397_v2 }
 0x34d   :  { %5746 = vmatprep.subr.mxu1 %v6397_v2 }
 0x34f   :  { %5744 = vmatmul.mubr.msk.f32.vlgmr.msra.gmra.mrb[8].mxu1 %vm393_vm2, %v880_v50 }
 0x350   :  { %5748 = vmatprep.mubr.msk.f32.mxu1 %vm6396_vm0, %v6397_v2 }
 0x41a   :  { %v551_v52 = vpop.f32.mrb[4].mxu1 }
 0x41b   :  { %v5720_v53 = vpop.f32.mrb[5].mxu1  ;;  %5724 = vmatmul.mubr.msk.f32.vlgmr.msra.gmra.mrb[4].mxu0 %vm393_vm2, %v551_v52 }
 0x41c   :  { %5733 = vmatprep.mubr.msk.f32.mxu0 %vm6396_vm0, %v6397_v2 }
 0x41e   :  { %v6707_v54 = vpop.f32.mrb[6].mxu1 }
 0x41f   :  { %v5730_v55 = vpop.f32.mrb[7].mxu1  ;;  %v712_v3 = vsel %vm470_vm3, %v6707_v54, -inf }
 0x422   :  { %v953_v56 = vpop.f32.mrb[8].mxu1 }
 0x423   :  { %v5745_v57 = vpop.f32.mrb[9].mxu1  ;;  %v957_v58 = vsel %vm470_vm3, %v953_v56, -inf }
 0x424   :  { %958 = vmax.xlane.f32.xlu1 %v957_v58  ;;  %v5403_v57 = vld [vmem:[%s7322_s8 + $0x4] sm:$0xf] }
 0x435   :  { %968 = vrot.lane.b32.xlu1 %v6680_v42, %s6399_s5 }
 0x439   :  { %1123 = vrot.lane.b32.xlu1 %v6638_v25, %s6400_s25 }
 0x43d   :  { %1369 = vrot.lane.b32.xlu1 %v6631_v20, %s6401_s3 }
 0x441   :  { %1367 = vrot.lane.b32.xlu1 %v6638_v25, %s6401_s3 }
 0x4b1   :  { %v959_v59 = vpop.xlane.xlu1 %958 }
 0x4b2   :  { %v960_v60 = vsub.f32 %v953_v56, %v959_v59 }
 0x4b4   :  { %v961_v61 = vmul.f32 1.442695, %v960_v60 }
 0x4b5   :  { %v969_v62 = vpop.permute.xlu1 %968 }
 0x4b6   :  { %6216 = vpow2.f32 %v961_v61  ;;  %5747 = vmatpush3.msra.mxu1 %v969_v62 }
 0x4b7   :  { %5756 = vmatprep.subr.mxu1 %v6397_v2 }
 0x4b9   :  { %v1124_v5 = vpop.permute.xlu1 %1123 }
 0x4bd   :  { %v1370_v11 = vpop.permute.xlu1 %1369 }
 0x4c0   :  { %v6217_v63 = vpop.eup %6216 }
 0x4c1   :  { %v963_v0 = vsel %vm470_vm3, %v6217_v63, 0.0  ;;  %v1368_v12 = vpop.permute.xlu1 %1367 }
 0x4c2   :  { %964 = vadd.xlane.f32.xlu0 %v963_v0 }
 0x4d8   :  { %1125 = vrot.lane.b32.xlu0 %v6631_v20, %s6400_s25 }
 0x4f7   :  { %713 = vmax.xlane.f32.xlu0 %v712_v3 }
 0x54f   :  { %v965_v4 = vpop.xlane.xlu0 %964 }
 0x550   :  { %6218 = vrcp.f32 %v965_v4 }
 0x553   :  { %v1126_v9 = vpop.permute.xlu0 %1125 }
 0x55a   :  { %v6219_v7 = vpop.eup %6218 }
 0x55b   :  { %v967_v8 = vmul.f32 %v6219_v7, %v6217_v63  ;;  %v5409_v7 = vld [vmem:[%s7322_s8 + $0x8] sm:$0xf] }
 0x55d   :  { %5749 = vmatmul.mubr.msk.f32.vlgmr.msra.gmra.mrb[10].mxu1 %vm470_vm3, %v967_v8 }
 0x55e   :  { %5757 = vmatpush3.xpose.msk.msra.mxu1 %vm393_vm2, %v1126_v9  ;;  %5758 = vmatprep.mubr.msk.f32.mxu1 %vm6396_vm0, %v6397_v2 }
 0x55f   :  { %5771 = vmatprep.subr.mxu1 %v6397_v2 }
 0x561   :  { %5759 = vmatmul.mubr.msk.f32.vlgmr.msra.gmra.mrb[12].mxu1 %vm393_vm2, %v1124_v5 }
 0x562   :  { %5772 = vmatpush3.xpose.msk.msra.mxu1 %vm393_vm2, %v1370_v11  ;;  %5773 = vmatprep.mubr.msk.f32.mxu1 %vm6396_vm0, %v6397_v2 }
 0x563   :  { %5776 = vmatprep.subr.mxu1 %v6397_v2 }
 0x565   :  { %5774 = vmatmul.mubr.msk.f32.vlgmr.msra.gmra.mrb[14].mxu1 %vm393_vm2, %v1368_v12 }
 0x566   :  { %5778 = vmatprep.mubr.msk.f32.mxu1 %vm6396_vm0, %v6397_v2 }
 0x584   :  { %v714_v41 = vpop.xlane.xlu0 %713 }
 0x585   :  { %v715_v43 = vsub.f32 %v6707_v54, %v714_v41  ;;  %v5421_v41 = vld [vmem:[%s7322_s8 + $0x10] sm:$0xf] }
 0x587   :  { %v716_v44 = vmul.f32 1.442695, %v715_v43 }
 0x630   :  { %v6737_v15 = vpop.f32.mrb[10].mxu1 }
 0x631   :  { %v5750_v19 = vpop.f32.mrb[11].mxu1 }
 0x634   :  { %v6739_v21 = vpop.f32.mrb[12].mxu1 }
 0x635   :  { %v5760_v22 = vpop.f32.mrb[13].mxu1  ;;  %v1201_v27 = vsel %vm470_vm3, %v6739_v21, -inf }
 0x638   :  { %v1441_v23 = vpop.f32.mrb[14].mxu1 }
 0x639   :  { %v5775_v24 = vpop.f32.mrb[15].mxu1  ;;  %v1445_v26 = vsel %vm470_vm3, %v1441_v23, -inf }
 0x63a   :  { %1446 = vmax.xlane.f32.xlu1 %v1445_v26 }
 0x64b   :  { %1456 = vrot.lane.b32.xlu1 %v6680_v42, %s6401_s3 }
 0x64f   :  { %1611 = vrot.lane.b32.xlu1 %v6638_v25, %s6402_s29 }
 0x653   :  { %1857 = vrot.lane.b32.xlu1 %v6631_v20, %s6403_s22 }
 0x657   :  { %1855 = vrot.lane.b32.xlu1 %v6638_v25, %s6403_s22 }
 0x65b   :  { %724 = vrot.lane.b32.xlu1 %v6680_v42, %s6398_s30 }
 0x67f   :  { %1202 = vmax.xlane.f32.xlu1 %v1201_v27 }
 0x690   :  { %1944 = vrot.lane.b32.xlu1 %v6680_v42, %s6403_s22 }
 0x6c7   :  { %v1447_v28 = vpop.xlane.xlu1 %1446 }
 0x6c8   :  { %v1448_v30 = vsub.f32 %v1441_v23, %v1447_v28 }
 0x6ca   :  { %v1449_v32 = vmul.f32 1.442695, %v1448_v30 }
 0x6cb   :  { %v1457_v33 = vpop.permute.xlu1 %1456 }
 0x6cc   :  { %6220 = vpow2.f32 %v1449_v32  ;;  %5777 = vmatpush3.msra.mxu1 %v1457_v33 }
 0x6cd   :  { %5786 = vmatprep.subr.mxu1 %v6397_v2  ;;  %6222 = vpow2.f32 %v716_v44 }
 0x6cf   :  { %v1612_v34 = vpop.permute.xlu1 %1611 }
 0x6d3   :  { %v1858_v35 = vpop.permute.xlu1 %1857 }
 0x6d6   :  { %v6221_v36 = vpop.eup %6220 }
 0x6d7   :  { %v1856_v37 = vpop.permute.xlu1 %1855  ;;  %v1451_v38 = vsel %vm470_vm3, %v6221_v36, 0.0  ;;  %v6223_v45 = vpop.eup %6222 }
 0x6d8   :  { %1452 = vadd.xlane.f32.xlu0 %v1451_v38  ;;  %v718_v47 = vsel %vm470_vm3, %v6223_v45, 0.0 }
 0x6db   :  { %v725_v39 = vpop.permute.xlu1 %724 }
 0x6dc   :  { %5732 = vmatpush3.msra.mxu0 %v725_v39 }
 0x6dd   :  { %5736 = vmatprep.subr.mxu0 %v6397_v2 }
 0x6ee   :  { %1613 = vrot.lane.b32.xlu0 %v6631_v20, %s6402_s29 }
 0x70c   :  { %v1203_v46 = vpop.xlane.xlu1 %1202 }
 0x70d   :  { %v1204_v48 = vsub.f32 %v6739_v21, %v1203_v46  ;;  %719 = vadd.xlane.f32.xlu0 %v718_v47 }
 0x70f   :  { %v1205_v58 = vmul.f32 1.442695, %v1204_v48  ;;  %v5427_v48 = vld [vmem:[%s7322_s8 + $0x14] sm:$0xf] }
 0x710   :  { %v1945_v53 = vpop.permute.xlu1 %1944 }
 0x765   :  { %v1453_v49 = vpop.xlane.xlu0 %1452 }
 0x766   :  { %6224 = vrcp.f32 %v1453_v49 }
 0x769   :  { %v1614_v52 = vpop.permute.xlu0 %1613 }
 0x770   :  { %v6225_v50 = vpop.eup %6224 }
 0x771   :  { %v1455_v51 = vmul.f32 %v6225_v50, %v6221_v36 }
 0x773   :  { %5779 = vmatmul.mubr.msk.f32.vlgmr.msra.gmra.mrb[16].mxu1 %vm470_vm3, %v1455_v51 }
 0x774   :  { %5787 = vmatpush3.xpose.msk.msra.mxu1 %vm393_vm2, %v1614_v52  ;;  %5788 = vmatprep.mubr.msk.f32.mxu1 %vm6396_vm0, %v6397_v2 }
 0x775   :  { %5801 = vmatprep.subr.mxu1 %v6397_v2 }
 0x777   :  { %5789 = vmatmul.mubr.msk.f32.vlgmr.msra.gmra.mrb[18].mxu1 %vm393_vm2, %v1612_v34 }
 0x778   :  { %5802 = vmatpush3.xpose.msk.msra.mxu1 %vm393_vm2, %v1858_v35  ;;  %5803 = vmatprep.mubr.msk.f32.mxu1 %vm6396_vm0, %v6397_v2  ;;  %v5415_v35 = vld [vmem:[%s7322_s8 + $0xc] sm:$0xf] }
 0x779   :  { %5806 = vmatprep.subr.mxu1 %v6397_v2 }
 0x77b   :  { %5804 = vmatmul.mubr.msk.f32.vlgmr.msra.gmra.mrb[20].mxu1 %vm393_vm2, %v1856_v37 }
 0x77c   :  { %5807 = vmatpush3.msra.mxu1 %v1945_v53  ;;  %5808 = vmatprep.mubr.msk.f32.mxu1 %vm6396_vm0, %v6397_v2 }
 0x77d   :  { %5816 = vmatprep.subr.mxu1 %v6397_v2 }
 0x79a   :  { %v720_v54 = vpop.xlane.xlu0 %719 }
 0x79b   :  { %6226 = vrcp.f32 %v720_v54  ;;  %v5433_v54 = vld [vmem:[%s7322_s8 + $0x18] sm:$0xf] }
 0x79c   :  { %6228 = vpow2.f32 %v1205_v58 }
 0x7a5   :  { %v6227_v55 = vpop.eup %6226 }
 0x7a6   :  { %v722_v56 = vmul.f32 %v6227_v55, %v6223_v45  ;;  %v6229_v4 = vpop.eup %6228 }
 0x7a7   :  { %v1207_v5 = vsel %vm470_vm3, %v6229_v4, 0.0 }
 0x7a8   :  { %5734 = vmatmul.mubr.msk.f32.vlgmr.msra.gmra.mrb[6].mxu0 %vm470_vm3, %v722_v56 }
 0x7a9   :  { %5738 = vmatprep.mubr.msk.f32.mxu0 %vm6396_vm0, %v6397_v2  ;;  %5737 = vmatpush3.msk.msra.mxu0 %vm559_vm4, %v5403_v57 }
 0x7aa   :  { %5751 = vmatprep.subr.mxu0 %v6397_v2 }
 0x846   :  { %v6786_v59 = vpop.f32.mrb[16].mxu1 }
 0x847   :  { %v5780_v60 = vpop.f32.mrb[17].mxu1 }
 0x84a   :  { %v1685_v61 = vpop.f32.mrb[18].mxu1 }
 0x84b   :  { %v5790_v62 = vpop.f32.mrb[19].mxu1 }
 0x84e   :  { %v1929_v63 = vpop.f32.mrb[20].mxu1 }
 0x84f   :  { %v5805_v0 = vpop.f32.mrb[21].mxu1  ;;  %v1933_v3 = vsel %vm470_vm3, %v1929_v63, -inf }
 0x850   :  { %1934 = vmax.xlane.f32.xlu0 %v1933_v3 }
 0x854   :  { %1208 = vadd.xlane.f32.xlu0 %v1207_v5 }
 0x86a   :  { %1212 = vrot.lane.b32.xlu0 %v6680_v42, %s6400_s25 }
 0x86e   :  { %2101 = vrot.lane.b32.xlu0 %v6631_v20, %s6404_s1  ;;  %v1689_v20 = vsel %vm470_vm3, %v1685_v61, -inf }
 0x87b   :  { %v796_v8 = vpop.f32.mrb[6].mxu0 }
 0x87c   :  { %v5735_v9 = vpop.f32.mrb[7].mxu0  ;;  %5739 = vmatmul.mubr.msk.f32.vlgmr.msra.gmra.mrb[4].mxu0 %vm393_vm2, %v796_v8 }
 0x87d   :  { %5752 = vmatpush3.msk.msra.mxu0 %vm559_vm4, %v5409_v7  ;;  %5753 = vmatprep.mubr.msk.f32.mxu0 %vm6396_vm0, %v6397_v2  ;;  %v6881_v7 = vld [vmem:[%s7323_s9] ss:$0 sm:$0xff] }
 0x87e   :  { %5761 = vmatprep.subr.mxu0 %v6397_v2 }
 0x884   :  { %5754 = vmatmul.mubr.msk.f32.vlgmr.msra.gmra.mrb[4].mxu0 %vm393_vm2, %v6737_v15 }
 0x885   :  { %5763 = vmatprep.mubr.msk.f32.mxu0 %vm6396_vm0, %v6397_v2 }
 0x88d   :  { %1690 = vmax.xlane.f32.xlu0 %v1689_v20 }
 0x8a3   :  { %1700 = vrot.lane.b32.xlu0 %v6680_v42, %s6402_s29 }
 0x8dd   :  { %v1935_v11 = vpop.xlane.xlu0 %1934 }
 0x8de   :  { %v1936_v12 = vsub.f32 %v1929_v63, %v1935_v11 }
 0x8e0   :  { %v1937_v19 = vmul.f32 1.442695, %v1936_v12 }
 0x8e1   :  { %v1209_v21 = vpop.xlane.xlu0 %1208 }
 0x8e2   :  { %6230 = vpow2.f32 %v1937_v19 }
 0x8e3   :  { %6232 = vrcp.f32 %v1209_v21 }
 0x8e5   :  { %v1213_v22 = vpop.permute.xlu0 %1212 }
 0x8e6   :  { %5762 = vmatpush3.msra.mxu0 %v1213_v22 }
 0x8e7   :  { %5766 = vmatprep.subr.mxu0 %v6397_v2 }
 0x8e9   :  { %v2102_v27 = vpop.permute.xlu0 %2101 }
 0x8ec   :  { %v6231_v15 = vpop.eup %6230 }
 0x8ed   :  { %v6233_v23 = vpop.eup %6232  ;;  %v1939_v24 = vsel %vm470_vm3, %v6231_v15, 0.0 }
 0x8ee   :  { %v1211_v26 = vmul.f32 %v6233_v23, %v6229_v4  ;;  %1940 = vadd.xlane.f32.xlu1 %v1939_v24  ;;  %v5439_v4 = vld [vmem:[%s7322_s8 + $0x1c] sm:$0xf]  ;;  %v2378_v23 = vsel %vm156_vm1, %v6612_v16, 0.0 }
 0x8ef   :  { %v2379_v24 = vrot.slane %v2378_v23, 4 }
 0x8f0   :  { %5764 = vmatmul.mubr.msk.f32.vlgmr.msra.gmra.mrb[8].mxu0 %vm470_vm3, %v1211_v26 }
 0x8f1   :  { %5768 = vmatprep.mubr.msk.f32.mxu0 %vm6396_vm0, %v6397_v2  ;;  %5767 = vmatpush3.msk.msra.mxu0 %vm559_vm4, %v5415_v35  ;;  %v2380_v26 = vadd.f32 %v2379_v24, %v2378_v23  ;;  %v143_v23 = vld [vmem:[%s7331_s17 + $0x18] sm:$0xff] }
 0x8f2   :  { %5781 = vmatprep.subr.mxu0 %v6397_v2 }
 0x8ff   :  { %2099 = vrot.lane.b32.xlu1 %v6638_v25, %s6404_s1 }
 0x91a   :  { %v1691_v28 = vpop.xlane.xlu0 %1690 }
 0x91b   :  { %v1692_v30 = vsub.f32 %v1685_v61, %v1691_v28 }
 0x91d   :  { %v1693_v32 = vmul.f32 1.442695, %v1692_v30 }
 0x91e   :  { %v1701_v46 = vpop.permute.xlu0 %1700 }
 0x91f   :  { %6234 = vpow2.f32 %v1693_v32  ;;  %v132_v32 = vld [vmem:[%s7327_s13] sm:$0xff] }
 0x929   :  { %v6235_v33 = vpop.eup %6234 }
 0x92a   :  { %v1695_v34 = vsel %vm470_vm3, %v6235_v33, 0.0 }
 0x92b   :  { %1696 = vadd.xlane.f32.xlu1 %v1695_v34  ;;  %v128_v34 = vld [vmem:[%s7326_s12] sm:$0xff] }
 0x97b   :  { %v1941_v36 = vpop.xlane.xlu1 %1940 }
 0x97c   :  { %6236 = vrcp.f32 %v1941_v36  ;;  %v129_v36 = vld [vmem:[%s7326_s12 + $0x8] sm:$0xff] }
 0x97f   :  { %v2100_v38 = vpop.permute.xlu1 %2099 }
 0x986   :  { %v6237_v25 = vpop.eup %6236 }
 0x987   :  { %v1943_v37 = vmul.f32 %v6237_v25, %v6231_v15  ;;  %v134_v25 = vld [vmem:[%s7327_s13 + $0x10] sm:$0xff] }
 0x989   :  { %5809 = vmatmul.mubr.msk.f32.vlgmr.msra.gmra.mrb[22].mxu1 %vm470_vm3, %v1943_v37  ;;  %v135_v37 = vld [vmem:[%s7327_s13 + $0x18] sm:$0xff] }
 0x98a   :  { %5817 = vmatpush3.xpose.msk.msra.mxu1 %vm393_vm2, %v2102_v27  ;;  %5818 = vmatprep.mubr.msk.f32.mxu1 %vm6396_vm0, %v6397_v2  ;;  %v2381_v27 = vrot.slane %v2380_v26, 2 }
 0x98b   :  { %6096 = vmatprep.subr.bf16.mxu1 %v6395_v1 }
 0x98c   :  { %v2382_v28 = vadd.f32 %v2381_v27, %v2380_v26  ;;  %v145_v26 = vld [vmem:[%s7333_s19] sm:$0xff]  ;;  %v146_v27 = vld [vmem:[%s7333_s19 + $0x8] sm:$0xff] }
 0x98d   :  { %5819 = vmatmul.mubr.msk.f32.vlgmr.msra.gmra.mrb[24].mxu1 %vm393_vm2, %v2100_v38 }
 0x98e   :  { %5839 = vmatprep.mubr.msk.f32.mxu1 %vm6396_vm0, %v6397_v2  ;;  %v2383_v30 = vrot.slane %v2382_v28, 1 }
 0x990   :  { %v2384_v38 = vadd.f32 %v2383_v30, %v2382_v28  ;;  %v7003_v28 = vpack.c.bf16 %v146_v27, %v145_v26 }
 0x9b8   :  { %v1697_v39 = vpop.xlane.xlu1 %1696 }
 0x9b9   :  { %6238 = vrcp.f32 %v1697_v39  ;;  %v6908_v39 = vpack.c.bf16 %v129_v36, %v128_v34  ;;  %v7016_v36 = vld [vmem:[%s7332_s18] ss:$0 sm:$0xff] }
 0x9c3   :  { %v1284_v43 = vpop.f32.mrb[8].mxu0  ;;  %v6239_v45 = vpop.eup %6238 }
 0x9c4   :  { %v5765_v44 = vpop.f32.mrb[9].mxu0  ;;  %5769 = vmatmul.mubr.msk.f32.vlgmr.msra.gmra.mrb[4].mxu0 %vm393_vm2, %v1284_v43  ;;  %v1699_v47 = vmul.f32 %v6239_v45, %v6235_v33  ;;  %v133_v33 = vld [vmem:[%s7327_s13 + $0x8] sm:$0xff]  ;;  %v131_v43 = vld [vmem:[%s7326_s12 + $0x18] sm:$0xff] }
 0x9c5   :  { %5782 = vmatpush3.msk.msra.mxu0 %vm559_vm4, %v5421_v41  ;;  %5783 = vmatprep.mubr.msk.f32.mxu0 %vm6396_vm0, %v6397_v2  ;;  %v6897_v35 = vpack.c.bf16 %v133_v33, %v132_v32  ;;  %v130_v41 = vld [vmem:[%s7326_s12 + $0x10] sm:$0xff]  ;;  %v6917_v44 = vpack.c.bf16 %v135_v37, %v134_v25 }
 0x9c6   :  { %5791 = vmatprep.subr.mxu0 %v6397_v2  ;;  %v6921_v45 = vpack.c.bf16 %v131_v43, %v130_v41 }
 0x9c7   :  { %6098 = vmatpush3.bf16.msra.mxu1 %v6897_v35 }
 0x9c8   :  { %6099 = vmatprep.subr.bf16.mxu1 %v6395_v1 }
 0x9cb   :  { %6101 = vmatpush3.bf16.msra.mxu1 %v6917_v44 }
 0x9cc   :  { %5784 = vmatmul.mubr.msk.f32.vlgmr.msra.gmra.mrb[4].mxu0 %vm393_vm2, %v6786_v59  ;;  %6108 = vmatprep.subr.bf16.mxu1 %v6395_v1 }
 0x9cd   :  { %5792 = vmatpush3.msra.mxu0 %v1701_v46  ;;  %5793 = vmatprep.mubr.msk.f32.mxu0 %vm6396_vm0, %v6397_v2  ;;  %v2386_v46 = vmul.f32 0.125, %v2384_v38 }
 0x9ce   :  { %5796 = vmatprep.subr.mxu0 %v6397_v2 }
 0x9cf   :  { %5840 = vmatmul.mubr.msk.f32.vlgmr.msra.gmra.mrb[26].mxu1 %vm156_vm1, %v2386_v46 }
 0x9d0   :  { %5794 = vmatmul.mubr.msk.f32.vlgmr.msra.gmra.mrb[10].mxu0 %vm470_vm3, %v1699_v47  ;;  %5857 = vmatprep.mubr.msk.f32.mxu1 %vm6396_vm0, %v6397_v2 }
 0x9d1   :  { %5798 = vmatprep.mubr.msk.f32.mxu0 %vm6396_vm0, %v6397_v2  ;;  %5797 = vmatpush3.msk.msra.mxu0 %vm559_vm4, %v5427_v48 }
 0x9d2   :  { %5811 = vmatprep.subr.mxu0 %v6397_v2 }
 0xa5c   :  { %v2016_v49 = vpop.f32.mrb[22].mxu1 }
 0xa5d   :  { %v5810_v50 = vpop.f32.mrb[23].mxu1 }
 0xa60   :  { %v2173_v51 = vpop.f32.mrb[24].mxu1 }
 0xa61   :  { %v5820_v52 = vpop.f32.mrb[25].mxu1  ;;  %v2177_v53 = vsel %vm470_vm3, %v2173_v51, -inf }
 0xa62   :  { %2178 = vmax.xlane.f32.xlu1 %v2177_v53  ;;  %v6939_v53 = vld [vmem:[%s7325_s11] ss:$0 sm:$0xff] }
 0xaa3   :  { %v1772_v55 = vpop.f32.mrb[10].mxu0 }
 0xaa4   :  { %v5795_v56 = vpop.f32.mrb[11].mxu0  ;;  %5799 = vmatmul.mubr.msk.f32.vlgmr.msra.gmra.mrb[4].mxu0 %vm393_vm2, %v1772_v55 }
 0xaa5   :  { %5812 = vmatpush3.msk.msra.mxu0 %vm559_vm4, %v5433_v54  ;;  %5813 = vmatprep.mubr.msk.f32.mxu0 %vm6396_vm0, %v6397_v2 }
 0xaa6   :  { %5821 = vmatprep.subr.mxu0 %v6397_v2 }
 0xaac   :  { %5814 = vmatmul.mubr.msk.f32.vlgmr.msra.gmra.mrb[4].mxu0 %vm393_vm2, %v2016_v49 }
 0xaad   :  { %5823 = vmatprep.mubr.msk.f32.mxu0 %vm6396_vm0, %v6397_v2 }
 0xaef   :  { %v2179_v57 = vpop.xlane.xlu1 %2178 }
 0xaf0   :  { %v2180_v58 = vsub.f32 %v2173_v51, %v2179_v57  ;;  %v6934_v51 = vld [vmem:[%s7324_s10] ss:$0 sm:$0xff] }
 0xaf2   :  { %v2181_v59 = vmul.f32 1.442695, %v2180_v58 }
 0xaf4   :  { %6240 = vpow2.f32 %v2181_v59 }
 0xafe   :  { %v6241_v60 = vpop.eup %6240 }
 0xaff   :  { %v2183_v61 = vsel %vm470_vm3, %v6241_v60, 0.0 }
 0xb00   :  { %2184 = vadd.xlane.f32.xlu1 %v2183_v61 }
 0xb11   :  { %2188 = vrot.lane.b32.xlu1 %v6680_v42, %s6404_s1 }
 0xb8d   :  { %v2185_v62 = vpop.xlane.xlu1 %2184 }
 0xb8e   :  { %6242 = vrcp.f32 %v2185_v62 }
 0xb91   :  { %v2189_v63 = vpop.permute.xlu1 %2188 }
 0xb92   :  { %5822 = vmatpush3.msra.mxu0 %v2189_v63  ;;  %v2456_v63 = vpop.f32.mrb[26].mxu1 }
 0xb93   :  { %5826 = vmatprep.subr.mxu0 %v6397_v2 }
 0xb98   :  { %v6243_v0 = vpop.eup %6242 }
 0xb99   :  { %v2187_v3 = vmul.f32 %v6243_v0, %v6241_v60  ;;  %v5841_v0 = vpop.f32.mrb[27].mxu1 }
 0xb9b   :  { %5824 = vmatmul.mubr.msk.f32.vlgmr.msra.gmra.mrb[12].mxu0 %vm470_vm3, %v2187_v3  ;;  %v137_v3 = vld [vmem:[%s7329_s15] sm:$0xff] }
 0xb9c   :  { %5827 = vmatpush3.msk.msra.mxu0 %vm559_vm4, %v5439_v4  ;;  %5828 = vmatprep.mubr.msk.f32.mxu0 %vm6396_vm0, %v6397_v2  ;;  %v138_v4 = vld [vmem:[%s7329_s15 + $0x8] sm:$0xff] }
 0xb9d   :  { %6102 = vmatprep.subr.bf16.mxu0 %v6395_v1 }
 0xc6e   :  { %v2260_v42 = vpop.f32.mrb[12].mxu0 }
 0xc6f   :  { %v5825_v5 = vpop.f32.mrb[13].mxu0  ;;  %5829 = vmatmul.mubr.msk.f32.vlgmr.msra.gmra.mrb[4].mxu0 %vm393_vm2, %v2260_v42  ;;  %v6956_v42 = vpack.c.bf16 %v138_v4, %v137_v3 }
 0xc70   :  { %5850 = vmatprep.mubr.msk.f32.mxu0 %vm6396_vm0, %v6397_v2  ;;  %6104 = vmatpush3.bf16.msra.mxu0 %v6908_v39  ;;  %v6963_v5 = vld [vmem:[%s7328_s14] sm:$0x1] }
 0xc71   :  { %6105 = vmatprep.subr.bf16.mxu0 %v6395_v1  ;;  %6110 = vmatpush3.bf16.msra.mxu1 %v6956_v42 }
 0xc72   :  { %6111 = vmatprep.subr.bf16.mxu1 %v6395_v1 }
 0xc74   :  { %6107 = vmatpush3.bf16.msra.mxu0 %v6921_v45 }
 0xc75   :  { %6117 = vmatprep.subr.bf16.mxu0 %v6395_v1 }
 0xd42   :  { %v2338_v8 = vpop.f32.mrb[4].mxu0 }
 0xd43   :  { %v6162_v9 = vadd.f32 %v6881_v7, %v2338_v8  ;;  %v5830_v20 = vpop.f32.mrb[5].mxu0 }
 0xd45   :  { %v2343_v11 = vsel %vm156_vm1, %v6162_v9, 0.0 }
 0xd46   :  { %2344 = vadd.xlane.f32.xlu0 %v2343_v11  ;;  %v140_v11 = vld [vmem:[%s7331_s17] sm:$0xff] }
 0xdd3   :  { %v2345_v12 = vpop.xlane.xlu0 %2344 }
 0xdd4   :  { %v2347_v19 = vmul.f32 0.03125, %v2345_v12  ;;  %v141_v12 = vld [vmem:[%s7331_s17 + $0x8] sm:$0xff] }
 0xdd6   :  { %v2348_v21 = vsub.f32 %v6162_v9, %v2347_v19 }
 0xdd8   :  { %v2349_v22 = vmul.f32 %v2348_v21, %v2348_v21 }
 0xdda   :  { %v2350_v15 = vsel %vm156_vm1, %v2349_v22, 0.0 }
 0xddb   :  { %2351 = vadd.xlane.f32.xlu1 %v2350_v15  ;;  %v142_v15 = vld [vmem:[%s7331_s17 + $0x10] sm:$0xff] }
 0xddc   :  { %v6982_v24 = vpack.c.bf16 %v143_v23, %v142_v15 }
 0xe68   :  { %v2352_v47 = vpop.xlane.xlu1 %2351 }
 0xe69   :  { %v2353_v48 = vmul.f32 0.03125, %v2352_v47  ;;  %v7025_v47 = vld [vmem:[#allocation3 + $0x8] sm:$0xff] }
 0xe6b   :  { %v2354_v49 = vadd.f32 1e-05, %v2353_v48 }
 0xe6d   :  { %6244 = vrsqrt.f32 %v2354_v49 }
 0xe77   :  { %v6245_v50 = vpop.eup %6244 }
 0xe78   :  { %v2356_v52 = vmul.f32 %v6245_v50, %v2348_v21  ;;  %v6972_v21 = vpack.c.bf16 %v141_v12, %v140_v11 }
 0xe7a   :  { %v2363_v54 = vmul.f32 %v6934_v51, %v2356_v52 }
 0xe7c   :  { %v6943_v55 = vadd.f32 %v6939_v53, %v2363_v54 }
 0xe7e   :  { %v2371_v56 = vsel %vm156_vm1, %v6943_v55, -inf }
 0xe7f   :  { %v2372_v57 = vrot.slane %v2371_v56, 4 }
 0xe81   :  { %v2373_v58 = vmax.f32 %v2371_v56, %v2372_v57 }
 0xe83   :  { %v2374_v59 = vrot.slane %v2373_v58, 2 }
 0xe85   :  { %v2375_v60 = vmax.f32 %v2373_v58, %v2374_v59 }
 0xe87   :  { %v2376_v61 = vrot.slane %v2375_v60, 1 }
 0xe89   :  { %v2377_v62 = vmax.f32 %v2375_v60, %v2376_v61 }
 0xe8b   :  { %5851 = vmatmul.mubr.msk.f32.vlgmr.msra.gmra.mrb[14].mxu0 %vm156_vm1, %v2377_v62 }
 0xe8c   :  { %5875 = vmatprep.mubr.msk.f32.mxu0 %vm6396_vm0, %v6397_v2  ;;  %6119 = vmatpush3.bf16.msra.mxu0 %v7003_v28 }
 0xe8d   :  { %6120 = vmatprep.subr.bf16.mxu0 %v6395_v1 }
 0xf5e   :  { %v2529_v8 = vpop.f32.mrb[14].mxu0 }
 0xf5f   :  { %v2530_v9 = vadd.f32 %v2529_v8, %v2456_v63  ;;  %v5852_v20 = vpop.f32.mrb[15].mxu0 }
 0xf61   :  { %v2533_v19 = vadd.f32 %v2530_v9, %v6963_v5 }
 0xf63   :  { %v2534_v22 = vmax.f32 %v2533_v19, 0.0 }
 0xf65   :  { %5858 = vmatmul.mubr.msk.f32.vlgmr.msra.gmra.mrb[28].mxu1 %vm2535_vm5, %v2534_v22 }
 0xf66   :  { %6113 = vmatpush3.bf16.msra.mxu1 %v6972_v21  ;;  %5868 = vmatprep.mubr.msk.f32.mxu1 %vm6396_vm0, %v6397_v2 }
 0xf67   :  { %6114 = vmatprep.subr.bf16.mxu1 %v6395_v1 }
 0xf6a   :  { %6116 = vmatpush3.bf16.msra.mxu1 %v6982_v24 }
 0xf6b   :  { %6126 = vmatprep.subr.bf16.mxu1 %v6395_v1 }
 0xf6d   :  { %5869 = vmatmul.mubr.msk.f32.vlgmr.msra.gmra.mrb[30].mxu1 %vm156_vm1, %v6943_v55 }
 0xf6e   :  { %6128 = vmatpush3.bf16.msra.mxu1 %v6583_v6  ;;  %5897 = vmatprep.mubr.msk.f32.mxu1 %vm6396_vm0, %v6397_v2  ;;  %v2792_v6 = vld [vmem:[#allocation6 + $0x8] sm:$0xff] }
 0xf6f   :  { %6129 = vmatprep.subr.bf16.mxu1 %v6395_v1 }
 0xf72   :  { %6131 = vmatpush3.bf16.msra.mxu1 %v6603_v13  ;;  %v7010_v13 = vld [vmem:[#allocation2] sm:$0x1] }
 0xf73   :  { %5911 = vmatprep.subr.mxu1 %v6397_v2 }
 0xf75   :  { %5898 = vmatmul.mubr.msk.f32.vlgmr.msra.gmra.mrb[32].mxu1 %vm156_vm1, %v2792_v6 }
 0xf76   :  { %5913 = vmatprep.mubr.msk.f32.mxu1 %vm6396_vm0, %v6397_v2 }
0x1038   :  { %v2605_v30 = vpop.f32.mrb[28].mxu1 }
0x1039   :  { %v2606_v32 = vadd.f32 %v2605_v30, %v7010_v13  ;;  %v5859_v33 = vpop.f32.mrb[29].mxu1 }
0x103a   :  { %v3170_v33 = vld [vmem:[%s7322_s8] sm:$0xf] }
0x103b   :  { %v5447_v34 = vmul.f32 -1.442695, %v2606_v32 }
0x103d   :  { %6246 = vpow2.f32 %v5447_v34 }
0x1040   :  { %v2690_v25 = vpop.f32.mrb[30].mxu1 }
0x1041   :  { %v2691_v37 = vadd.f32 %v7016_v36, %v2690_v25  ;;  %v5870_v38 = vpop.f32.mrb[31].mxu1 }
0x1043   :  { %v2694_v41 = vmax.f32 %v2691_v37, 0.0 }
0x1045   :  { %5876 = vmatmul.mubr.msk.f32.vlgmr.msra.gmra.mrb[16].mxu0 %vm2535_vm5, %v2694_v41 }
0x1046   :  { %6122 = vmatpush3.bf16.msra.mxu0 %v6594_v10  ;;  %5886 = vmatprep.mubr.msk.f32.mxu0 %vm6396_vm0, %v6397_v2 }
0x1047   :  { %v6247_v43 = vpop.eup %6246  ;;  %6123 = vmatprep.subr.bf16.mxu0 %v6395_v1 }
0x1048   :  { %v2612_v46 = vadd.f32 1.0, %v6247_v43  ;;  %v2935_v48 = vpop.f32.mrb[32].mxu1 }
0x1049   :  { %v5899_v49 = vpop.f32.mrb[33].mxu1 }
0x104a   :  { %6125 = vmatpush3.bf16.msra.mxu0 %v6607_v14  ;;  %6248 = vrcp.f32 %v2612_v46 }
0x104b   :  { %6132 = vmatprep.subr.bf16.mxu0 %v6395_v1 }
0x104d   :  { %5887 = vmatmul.mubr.msk.f32.vlgmr.msra.gmra.mrb[18].mxu0 %vm156_vm1, %v7025_v47 }
0x104e   :  { %6134 = vmatpush3.bf16.msra.mxu0 %v6658_v29  ;;  %5908 = vmatprep.mubr.msk.f32.mxu0 %vm6396_vm0, %v6397_v2  ;;  %v7040_v29 = vadd.f32 %v6626_v17, %v2935_v48 }
0x104f   :  { %6135 = vmatprep.subr.bf16.mxu0 %v6395_v1 }
0x1050   :  { %5912 = vmatpush3.xpose.msk.msra.mxu1 %vm393_vm2, %v7040_v29 }
0x1051   :  { %5916 = vmatprep.subr.mxu1 %v6397_v2 }
0x1052   :  { %6137 = vmatpush3.bf16.msra.mxu0 %v6664_v31  ;;  %v7048_v31 = vld [vmem:[%s7334_s20] ss:$0 sm:$0xff] }
0x1053   :  { %5921 = vmatprep.subr.mxu0 %v6397_v2 }
0x1054   :  { %v6249_v10 = vpop.eup %6248 }
0x1055   :  { %v2781_v14 = vsub.f32 1.0, %v6249_v10  ;;  %5909 = vmatmul.mubr.msk.f32.vlgmr.msra.gmra.mrb[20].mxu0 %vm156_vm1, %v2792_v6 }
0x1056   :  { %5923 = vmatprep.mubr.msk.f32.mxu0 %vm6396_vm0, %v6397_v2  ;;  %5922 = vmatpush3.msk.msra.mxu0 %vm559_vm4, %v3170_v33 }
0x1057   :  { %6192 = vpush %v2781_v14  ;;  %5931 = vmatprep.subr.mxu0 %v6397_v2 }
0x1088   :  { %s6193_s20 = spop %6192 }
0x1089   :  { %v2784_v63 = vstv %s6193_s20 }
0x1118   :  { %v2770_v50 = vpop.f32.mrb[16].mxu0 }
0x1119   :  { %v2771_v52 = vadd.f32 %v7048_v31, %v2770_v50  ;;  %v5877_v54 = vpop.f32.mrb[17].mxu0 }
0x111b   :  { %v5452_v56 = vmul.f32 -1.442695, %v2771_v52 }
0x111d   :  { %6250 = vpow2.f32 %v5452_v56 }
0x1120   :  { %v2862_v57 = vpop.f32.mrb[18].mxu0 }
0x1121   :  { %v2863_v17 = vadd.f32 %v6628_v18, %v2862_v57  ;;  %v5888_v58 = vpop.f32.mrb[19].mxu0 }
0x1123   :  { %v7052_v59 = vmul.f32 0.5, %v2863_v17 }
0x1125   :  { %3248 = vrot.lane.b32.xlu1 %v7052_v59, %s6398_s30  ;;  %5914 = vmatmul.mubr.msk.f32.vlgmr.msra.gmra.mrb[34].mxu1 %vm393_vm2, %v7052_v59 }
0x1126   :  { %5918 = vmatprep.mubr.msk.f32.mxu1 %vm6396_vm0, %v6397_v2 }
0x1127   :  { %v6251_v60 = vpop.eup %6250 }
0x1128   :  { %v2777_v61 = vadd.f32 1.0, %v6251_v60 }
0x1129   :  { %3492 = vrot.lane.b32.xlu1 %v7052_v59, %s6399_s5 }
0x112a   :  { %6252 = vrcp.f32 %v2777_v61 }
0x112d   :  { %3737 = vrot.lane.b32.xlu1 %v7040_v29, %s6400_s25 }
0x1134   :  { %v6253_v18 = vpop.eup %6252 }
0x1135   :  { %v2780_v62 = vmul.f32 %v6253_v18, %v6943_v55  ;;  %v3005_v55 = vpop.f32.mrb[20].mxu0 }
0x1136   :  { %v7070_v15 = vadd.f32 %v6677_v40, %v3005_v55 }
0x1137   :  { %v2786_v0 = vmul.f32 %v2784_v63, %v2780_v62 }
0x1138   :  { %5917 = vmatpush3.msra.mxu1 %v7070_v15 }
0x1139   :  { %v2787_v3 = vadd.f32 %v2786_v0, %v6612_v16  ;;  %v5910_v16 = vpop.f32.mrb[21].mxu0  ;;  %5926 = vmatprep.subr.mxu1 %v6397_v2 }
0x113b   :  { %2788 = vst.msk [vmem:[#allocation9] sm:$0xff] %vm156_vm1, %v2787_v3 }
0x1197   :  { %v3249_v40 = vpop.permute.xlu1 %3248 }
0x119b   :  { %v3493_v32 = vpop.permute.xlu1 %3492 }
0x119f   :  { %v3738_v54 = vpop.permute.xlu1 %3737 }
0x11f8   :  { %v3082_v4 = vpop.f32.mrb[34].mxu1 }
0x11f9   :  { %v5915_v8 = vpop.f32.mrb[35].mxu1  ;;  %v3086_v9 = vsel %vm470_vm3, %v3082_v4, -inf }
0x11fa   :  { %3087 = vmax.xlane.f32.xlu0 %v3086_v9 }
0x1287   :  { %v3088_v20 = vpop.xlane.xlu0 %3087 }
0x1288   :  { %v3089_v11 = vsub.f32 %v3082_v4, %v3088_v20 }
0x128a   :  { %v3090_v12 = vmul.f32 1.442695, %v3089_v11 }
0x128c   :  { %6254 = vpow2.f32 %v3090_v12 }
0x1296   :  { %v6255_v19 = vpop.eup %6254 }
0x1297   :  { %v3092_v22 = vsel %vm470_vm3, %v6255_v19, 0.0 }
0x1298   :  { %3093 = vadd.xlane.f32.xlu0 %v3092_v22 }
0x12ae   :  { %3250 = vrot.lane.b32.xlu0 %v7040_v29, %s6398_s30 }
0x12b2   :  { %3494 = vrot.lane.b32.xlu0 %v7040_v29, %s6399_s5 }
0x1325   :  { %v3094_v23 = vpop.xlane.xlu0 %3093 }
0x1326   :  { %6256 = vrcp.f32 %v3094_v23 }
0x1329   :  { %v3251_v6 = vpop.permute.xlu0 %3250 }
0x132d   :  { %v3495_v30 = vpop.permute.xlu0 %3494 }
0x1330   :  { %v6257_v26 = vpop.eup %6256 }
0x1331   :  { %v3096_v27 = vmul.f32 %v6257_v26, %v6255_v19 }
0x1333   :  { %5919 = vmatmul.mubr.msk.f32.vlgmr.msra.gmra.mrb[36].mxu1 %vm470_vm3, %v3096_v27 }
0x1334   :  { %5927 = vmatpush3.xpose.msk.msra.mxu1 %vm393_vm2, %v3251_v6  ;;  %5928 = vmatprep.mubr.msk.f32.mxu1 %vm6396_vm0, %v6397_v2 }
0x1335   :  { %5941 = vmatprep.subr.mxu1 %v6397_v2 }
0x1337   :  { %5929 = vmatmul.mubr.msk.f32.vlgmr.msra.gmra.mrb[38].mxu1 %vm393_vm2, %v3249_v40 }
0x1338   :  { %5942 = vmatpush3.xpose.msk.msra.mxu1 %vm393_vm2, %v3495_v30  ;;  %5943 = vmatprep.mubr.msk.f32.mxu1 %vm6396_vm0, %v6397_v2 }
0x1339   :  { %5946 = vmatprep.subr.mxu1 %v6397_v2 }
0x133b   :  { %5944 = vmatmul.mubr.msk.f32.vlgmr.msra.gmra.mrb[40].mxu1 %vm393_vm2, %v3493_v32 }
0x133c   :  { %5948 = vmatprep.mubr.msk.f32.mxu1 %vm6396_vm0, %v6397_v2 }
0x1406   :  { %v3166_v34 = vpop.f32.mrb[36].mxu1 }
0x1407   :  { %v5920_v25 = vpop.f32.mrb[37].mxu1  ;;  %5924 = vmatmul.mubr.msk.f32.vlgmr.msra.gmra.mrb[22].mxu0 %vm393_vm2, %v3166_v34 }
0x1408   :  { %5933 = vmatprep.mubr.msk.f32.mxu0 %vm6396_vm0, %v6397_v2 }
0x140a   :  { %v3322_v37 = vpop.f32.mrb[38].mxu1 }
0x140b   :  { %v5930_v38 = vpop.f32.mrb[39].mxu1  ;;  %v3326_v20 = vsel %vm470_vm3, %v3322_v37, -inf }
0x140e   :  { %v3566_v41 = vpop.f32.mrb[40].mxu1 }
0x140f   :  { %v5945_v43 = vpop.f32.mrb[41].mxu1  ;;  %v3570_v46 = vsel %vm470_vm3, %v3566_v41, -inf }
0x1410   :  { %3571 = vmax.xlane.f32.xlu0 %v3570_v46 }
0x1426   :  { %3581 = vrot.lane.b32.xlu0 %v7070_v15, %s6399_s5 }
0x142a   :  { %3735 = vrot.lane.b32.xlu0 %v7052_v59, %s6400_s25 }
0x142e   :  { %3978 = vrot.lane.b32.xlu0 %v7052_v59, %s6401_s3 }
0x1432   :  { %4067 = vrot.lane.b32.xlu0 %v7070_v15, %s6401_s3 }
0x149d   :  { %v3572_v10 = vpop.xlane.xlu0 %3571 }
0x149e   :  { %v3573_v14 = vsub.f32 %v3566_v41, %v3572_v10 }
0x14a0   :  { %v3574_v48 = vmul.f32 1.442695, %v3573_v14 }
0x14a1   :  { %v3582_v49 = vpop.permute.xlu0 %3581 }
0x14a2   :  { %6258 = vpow2.f32 %v3574_v48  ;;  %5947 = vmatpush3.msra.mxu1 %v3582_v49 }
0x14a3   :  { %5956 = vmatprep.subr.mxu1 %v6397_v2 }
0x14a5   :  { %v3736_v57 = vpop.permute.xlu0 %3735 }
0x14a9   :  { %v3979_v60 = vpop.permute.xlu0 %3978 }
0x14ac   :  { %v6259_v50 = vpop.eup %6258 }
0x14ad   :  { %v3576_v52 = vsel %vm470_vm3, %v6259_v50, 0.0  ;;  %v4068_v18 = vpop.permute.xlu0 %4067 }
0x14ae   :  { %3577 = vadd.xlane.f32.xlu1 %v3576_v52 }
0x14bf   :  { %3980 = vrot.lane.b32.xlu1 %v7040_v29, %s6401_s3 }
0x153b   :  { %v3578_v56 = vpop.xlane.xlu1 %3577 }
0x153c   :  { %6260 = vrcp.f32 %v3578_v56 }
0x153f   :  { %v3981_v61 = vpop.permute.xlu1 %3980 }
0x1546   :  { %v6261_v17 = vpop.eup %6260 }
0x1547   :  { %v3580_v58 = vmul.f32 %v6261_v17, %v6259_v50  ;;  %v5470_v17 = vld [vmem:[%s7322_s8 + $0x8] sm:$0xf] }
0x1549   :  { %5949 = vmatmul.mubr.msk.f32.vlgmr.msra.gmra.mrb[42].mxu1 %vm470_vm3, %v3580_v58 }
0x154a   :  { %5957 = vmatpush3.xpose.msk.msra.mxu1 %vm393_vm2, %v3738_v54  ;;  %5958 = vmatprep.mubr.msk.f32.mxu1 %vm6396_vm0, %v6397_v2  ;;  %v5464_v54 = vld [vmem:[%s7322_s8 + $0x4] sm:$0xf] }
0x154b   :  { %5971 = vmatprep.subr.mxu1 %v6397_v2 }
0x154d   :  { %5959 = vmatmul.mubr.msk.f32.vlgmr.msra.gmra.mrb[44].mxu1 %vm393_vm2, %v3736_v57 }
0x154e   :  { %5972 = vmatpush3.xpose.msk.msra.mxu1 %vm393_vm2, %v3981_v61  ;;  %5973 = vmatprep.mubr.msk.f32.mxu1 %vm6396_vm0, %v6397_v2 }
0x154f   :  { %5976 = vmatprep.subr.mxu1 %v6397_v2 }
0x1551   :  { %5974 = vmatmul.mubr.msk.f32.vlgmr.msra.gmra.mrb[46].mxu1 %vm393_vm2, %v3979_v60 }
0x1552   :  { %5977 = vmatpush3.msra.mxu1 %v4068_v18  ;;  %5978 = vmatprep.mubr.msk.f32.mxu1 %vm6396_vm0, %v6397_v2 }
0x1553   :  { %5986 = vmatprep.subr.mxu1 %v6397_v2 }
0x161c   :  { %v7126_v62 = vpop.f32.mrb[42].mxu1 }
0x161d   :  { %v5950_v63 = vpop.f32.mrb[43].mxu1 }
0x1620   :  { %v3809_v0 = vpop.f32.mrb[44].mxu1 }
0x1621   :  { %v5960_v3 = vpop.f32.mrb[45].mxu1  ;;  %v3813_v40 = vsel %vm470_vm3, %v3809_v0, -inf }
0x1624   :  { %v4052_v4 = vpop.f32.mrb[46].mxu1 }
0x1625   :  { %v5975_v8 = vpop.f32.mrb[47].mxu1  ;;  %v4056_v9 = vsel %vm470_vm3, %v4052_v4, -inf }
0x1626   :  { %4057 = vmax.xlane.f32.xlu1 %v4056_v9 }
0x162a   :  { %3327 = vmax.xlane.f32.xlu1 %v3326_v20 }
0x163b   :  { %4223 = vrot.lane.b32.xlu1 %v7040_v29, %s6402_s29 }
0x163f   :  { %4466 = vrot.lane.b32.xlu1 %v7040_v29, %s6403_s22 }
0x16b3   :  { %v4058_v11 = vpop.xlane.xlu1 %4057 }
0x16b4   :  { %v4059_v12 = vsub.f32 %v4052_v4, %v4058_v11 }
0x16b6   :  { %v4060_v19 = vmul.f32 1.442695, %v4059_v12 }
0x16b7   :  { %v3328_v22 = vpop.xlane.xlu1 %3327 }
0x16b8   :  { %6262 = vpow2.f32 %v4060_v19  ;;  %v3329_v55 = vsub.f32 %v3322_v37, %v3328_v22 }
0x16ba   :  { %v3330_v16 = vmul.f32 1.442695, %v3329_v55 }
0x16bb   :  { %v4224_v30 = vpop.permute.xlu1 %4223 }
0x16bc   :  { %6264 = vpow2.f32 %v3330_v16 }
0x16bf   :  { %v4467_v32 = vpop.permute.xlu1 %4466 }
0x16c2   :  { %v6263_v23 = vpop.eup %6262 }
0x16c3   :  { %v4062_v26 = vsel %vm470_vm3, %v6263_v23, 0.0 }
0x16c4   :  { %4063 = vadd.xlane.f32.xlu0 %v4062_v26 }
0x16c6   :  { %v6265_v27 = vpop.eup %6264 }
0x16c7   :  { %v3332_v6 = vsel %vm470_vm3, %v6265_v27, 0.0 }
0x16c8   :  { %3333 = vadd.xlane.f32.xlu1 %v3332_v6 }
0x16da   :  { %4221 = vrot.lane.b32.xlu0 %v7052_v59, %s6402_s29 }
0x16de   :  { %4464 = vrot.lane.b32.xlu0 %v7052_v59, %s6403_s22 }
0x16e2   :  { %3338 = vrot.lane.b32.xlu0 %v7070_v15, %s6398_s30 }
0x1701   :  { %3814 = vmax.xlane.f32.xlu0 %v3813_v40  ;;  %v5476_v40 = vld [vmem:[%s7322_s8 + $0xc] sm:$0xf] }
0x1751   :  { %v4064_v33 = vpop.xlane.xlu0 %4063 }
0x1752   :  { %6266 = vrcp.f32 %v4064_v33 }
0x1755   :  { %v4222_v34 = vpop.permute.xlu0 %4221  ;;  %v3334_v25 = vpop.xlane.xlu1 %3333 }
0x1756   :  { %6268 = vrcp.f32 %v3334_v25  ;;  %v5482_v25 = vld [vmem:[%s7322_s8 + $0x10] sm:$0xf] }
0x1759   :  { %v4465_v37 = vpop.permute.xlu0 %4464 }
0x175c   :  { %v6267_v38 = vpop.eup %6266 }
0x175d   :  { %v4066_v41 = vmul.f32 %v6267_v38, %v6263_v23  ;;  %v3339_v43 = vpop.permute.xlu0 %3338 }
0x175e   :  { %5932 = vmatpush3.msra.mxu0 %v3339_v43 }
0x175f   :  { %5979 = vmatmul.mubr.msk.f32.vlgmr.msra.gmra.mrb[48].mxu1 %vm470_vm3, %v4066_v41  ;;  %5936 = vmatprep.subr.mxu0 %v6397_v2 }
0x1760   :  { %v6269_v46 = vpop.eup %6268  ;;  %5987 = vmatpush3.xpose.msk.msra.mxu1 %vm393_vm2, %v4224_v30  ;;  %5988 = vmatprep.mubr.msk.f32.mxu1 %vm6396_vm0, %v6397_v2 }
0x1761   :  { %v3336_v10 = vmul.f32 %v6269_v46, %v6265_v27  ;;  %6001 = vmatprep.subr.mxu1 %v6397_v2  ;;  %v5488_v46 = vld [vmem:[%s7322_s8 + $0x14] sm:$0xf] }
0x1763   :  { %5934 = vmatmul.mubr.msk.f32.vlgmr.msra.gmra.mrb[24].mxu0 %vm470_vm3, %v3336_v10  ;;  %5989 = vmatmul.mubr.msk.f32.vlgmr.msra.gmra.mrb[50].mxu1 %vm393_vm2, %v4222_v34 }
0x1764   :  { %6002 = vmatpush3.xpose.msk.msra.mxu1 %vm393_vm2, %v4467_v32  ;;  %6003 = vmatprep.mubr.msk.f32.mxu1 %vm6396_vm0, %v6397_v2 }
0x1765   :  { %5938 = vmatprep.mubr.msk.f32.mxu0 %vm6396_vm0, %v6397_v2  ;;  %6006 = vmatprep.subr.mxu1 %v6397_v2 }
0x1766   :  { %5937 = vmatpush3.msk.msra.mxu0 %vm559_vm4, %v5464_v54 }
0x1767   :  { %6004 = vmatmul.mubr.msk.f32.vlgmr.msra.gmra.mrb[52].mxu1 %vm393_vm2, %v4465_v37  ;;  %5951 = vmatprep.subr.mxu0 %v6397_v2 }
0x1768   :  { %6008 = vmatprep.mubr.msk.f32.mxu1 %vm6396_vm0, %v6397_v2 }
0x178e   :  { %v3815_v14 = vpop.xlane.xlu0 %3814 }
0x178f   :  { %v3816_v48 = vsub.f32 %v3809_v0, %v3815_v14 }
0x1791   :  { %v3817_v49 = vmul.f32 1.442695, %v3816_v48 }
0x1793   :  { %6270 = vpow2.f32 %v3817_v49 }
0x179d   :  { %v6271_v50 = vpop.eup %6270 }
0x179e   :  { %v3819_v52 = vsel %vm470_vm3, %v6271_v50, 0.0 }
0x179f   :  { %3820 = vadd.xlane.f32.xlu0 %v3819_v52  ;;  %v5494_v52 = vld [vmem:[%s7322_s8 + $0x18] sm:$0xf] }
0x182c   :  { %v3821_v8 = vpop.xlane.xlu0 %3820 }
0x182d   :  { %6272 = vrcp.f32 %v3821_v8 }
0x1832   :  { %v7166_v56 = vpop.f32.mrb[48].mxu1 }
0x1833   :  { %v5980_v57 = vpop.f32.mrb[49].mxu1 }
0x1836   :  { %v3410_v58 = vpop.f32.mrb[24].mxu0  ;;  %v4295_v60 = vpop.f32.mrb[50].mxu1 }
0x1837   :  { %v5935_v61 = vpop.f32.mrb[25].mxu0  ;;  %5939 = vmatmul.mubr.msk.f32.vlgmr.msra.gmra.mrb[22].mxu0 %vm393_vm2, %v3410_v58  ;;  %v5990_v18 = vpop.f32.mrb[51].mxu1  ;;  %v4299_v4 = vsel %vm470_vm3, %v4295_v60, -inf }
0x1838   :  { %5952 = vmatpush3.msk.msra.mxu0 %vm559_vm4, %v5470_v17  ;;  %5953 = vmatprep.mubr.msk.f32.mxu0 %vm6396_vm0, %v6397_v2  ;;  %v6273_v20 = vpop.eup %6272 }
0x1839   :  { %5961 = vmatprep.subr.mxu0 %v6397_v2  ;;  %v3823_v12 = vmul.f32 %v6273_v20, %v6271_v50 }
0x183a   :  { %v4538_v63 = vpop.f32.mrb[52].mxu1 }
0x183b   :  { %v6005_v0 = vpop.f32.mrb[53].mxu1  ;;  %v4542_v3 = vsel %vm470_vm3, %v4538_v63, -inf }
0x183c   :  { %4543 = vmax.xlane.f32.xlu1 %v4542_v3 }
0x183f   :  { %5954 = vmatmul.mubr.msk.f32.vlgmr.msra.gmra.mrb[22].mxu0 %vm393_vm2, %v7126_v62 }
0x1840   :  { %5963 = vmatprep.mubr.msk.f32.mxu0 %vm6396_vm0, %v6397_v2 }
0x184d   :  { %3824 = vrot.lane.b32.xlu1 %v7070_v15, %s6400_s25 }
0x1851   :  { %4709 = vrot.lane.b32.xlu1 %v7040_v29, %s6404_s1 }
0x1855   :  { %4707 = vrot.lane.b32.xlu1 %v7052_v59, %s6404_s1 }
0x1879   :  { %4300 = vmax.xlane.f32.xlu1 %v4299_v4  ;;  %v5500_v4 = vld [vmem:[%s7322_s8 + $0x1c] sm:$0xf] }
0x18c9   :  { %v4544_v9 = vpop.xlane.xlu1 %4543 }
0x18ca   :  { %v4545_v62 = vsub.f32 %v4538_v63, %v4544_v9 }
0x18cc   :  { %v4546_v11 = vmul.f32 1.442695, %v4545_v62 }
0x18cd   :  { %v3825_v19 = vpop.permute.xlu1 %3824 }
0x18ce   :  { %6274 = vpow2.f32 %v4546_v11  ;;  %5962 = vmatpush3.msra.mxu0 %v3825_v19 }
0x18cf   :  { %5964 = vmatmul.mubr.msk.f32.vlgmr.msra.gmra.mrb[26].mxu0 %vm470_vm3, %v3823_v12  ;;  %5966 = vmatprep.subr.mxu0 %v6397_v2 }
0x18d0   :  { %5968 = vmatprep.mubr.msk.f32.mxu0 %vm6396_vm0, %v6397_v2  ;;  %5967 = vmatpush3.msk.msra.mxu0 %vm559_vm4, %v5476_v40 }
0x18d1   :  { %v4710_v22 = vpop.permute.xlu1 %4709  ;;  %5981 = vmatprep.subr.mxu0 %v6397_v2 }
0x18d5   :  { %v4708_v55 = vpop.permute.xlu1 %4707 }
0x18d8   :  { %v6275_v29 = vpop.eup %6274 }
0x18d9   :  { %v4548_v59 = vsel %vm470_vm3, %v6275_v29, 0.0 }
0x18da   :  { %4549 = vadd.xlane.f32.xlu0 %v4548_v59 }
0x18f0   :  { %4553 = vrot.lane.b32.xlu0 %v7070_v15, %s6403_s22 }
0x1906   :  { %v4301_v16 = vpop.xlane.xlu1 %4300 }
0x1907   :  { %v4302_v23 = vsub.f32 %v4295_v60, %v4301_v16 }
0x1909   :  { %v4303_v26 = vmul.f32 1.442695, %v4302_v23 }
0x190b   :  { %6276 = vpow2.f32 %v4303_v26 }
0x1915   :  { %v6277_v27 = vpop.eup %6276 }
0x1916   :  { %v4305_v6 = vsel %vm470_vm3, %v6277_v27, 0.0 }
0x1917   :  { %4306 = vadd.xlane.f32.xlu0 %v4305_v6 }
0x192d   :  { %4310 = vrot.lane.b32.xlu0 %v7070_v15, %s6402_s29 }
0x1967   :  { %v4550_v30 = vpop.xlane.xlu0 %4549 }
0x1968   :  { %6278 = vrcp.f32 %v4550_v30 }
0x196b   :  { %v4554_v32 = vpop.permute.xlu0 %4553 }
0x196c   :  { %6007 = vmatpush3.msra.mxu1 %v4554_v32 }
0x196d   :  { %6016 = vmatprep.subr.mxu1 %v6397_v2 }
0x1972   :  { %v6279_v33 = vpop.eup %6278 }
0x1973   :  { %v4552_v34 = vmul.f32 %v6279_v33, %v6275_v29 }
0x1975   :  { %6009 = vmatmul.mubr.msk.f32.vlgmr.msra.gmra.mrb[54].mxu1 %vm470_vm3, %v4552_v34 }
0x1976   :  { %6017 = vmatpush3.xpose.msk.msra.mxu1 %vm393_vm2, %v4710_v22  ;;  %6018 = vmatprep.mubr.msk.f32.mxu1 %vm6396_vm0, %v6397_v2  ;;  %v4972_v22 = vsel %vm156_vm1, %v7025_v47, 0.0 }
0x1977   :  { %6138 = vmatprep.subr.bf16.mxu1 %v6395_v1 }
0x1979   :  { %6019 = vmatmul.mubr.msk.f32.vlgmr.msra.gmra.mrb[56].mxu1 %vm393_vm2, %v4708_v55 }
0x197a   :  { %6140 = vmatpush3.bf16.msra.mxu1 %v6897_v35  ;;  %6039 = vmatprep.mubr.msk.f32.mxu1 %vm6396_vm0, %v6397_v2 }
0x197b   :  { %6141 = vmatprep.subr.bf16.mxu1 %v6395_v1 }
0x197e   :  { %6143 = vmatpush3.bf16.msra.mxu1 %v6917_v44 }
0x197f   :  { %6150 = vmatprep.subr.bf16.mxu1 %v6395_v1 }
0x19a2   :  { %v3896_v37 = vpop.f32.mrb[26].mxu0 }
0x19a3   :  { %v5965_v38 = vpop.f32.mrb[27].mxu0  ;;  %5969 = vmatmul.mubr.msk.f32.vlgmr.msra.gmra.mrb[22].mxu0 %vm393_vm2, %v3896_v37 }
0x19a4   :  { %v4307_v41 = vpop.xlane.xlu0 %4306  ;;  %5982 = vmatpush3.msk.msra.mxu0 %vm559_vm4, %v5482_v25  ;;  %5983 = vmatprep.mubr.msk.f32.mxu0 %vm6396_vm0, %v6397_v2 }
0x19a5   :  { %6280 = vrcp.f32 %v4307_v41  ;;  %5991 = vmatprep.subr.mxu0 %v6397_v2 }
0x19a8   :  { %v4311_v35 = vpop.permute.xlu0 %4310 }
0x19ab   :  { %5984 = vmatmul.mubr.msk.f32.vlgmr.msra.gmra.mrb[22].mxu0 %vm393_vm2, %v7166_v56 }
0x19ac   :  { %5992 = vmatpush3.msra.mxu0 %v4311_v35  ;;  %5993 = vmatprep.mubr.msk.f32.mxu0 %vm6396_vm0, %v6397_v2 }
0x19ad   :  { %5996 = vmatprep.subr.mxu0 %v6397_v2 }
0x19af   :  { %v6281_v44 = vpop.eup %6280 }
0x19b0   :  { %v4309_v43 = vmul.f32 %v6281_v44, %v6277_v27 }
0x19b2   :  { %5994 = vmatmul.mubr.msk.f32.vlgmr.msra.gmra.mrb[28].mxu0 %vm470_vm3, %v4309_v43 }
0x19b3   :  { %5998 = vmatprep.mubr.msk.f32.mxu0 %vm6396_vm0, %v6397_v2  ;;  %5997 = vmatpush3.msk.msra.mxu0 %vm559_vm4, %v5488_v46 }
0x19b4   :  { %6011 = vmatprep.subr.mxu0 %v6397_v2 }
0x1a48   :  { %v4625_v10 = vpop.f32.mrb[54].mxu1 }
0x1a49   :  { %v6010_v14 = vpop.f32.mrb[55].mxu1 }
0x1a4c   :  { %v4781_v48 = vpop.f32.mrb[56].mxu1 }
0x1a4d   :  { %v6020_v49 = vpop.f32.mrb[57].mxu1  ;;  %v4785_v50 = vsel %vm470_vm3, %v4781_v48, -inf }
0x1a4e   :  { %4786 = vmax.xlane.f32.xlu1 %v4785_v50 }
0x1a85   :  { %v4382_v54 = vpop.f32.mrb[28].mxu0 }
0x1a86   :  { %v5995_v56 = vpop.f32.mrb[29].mxu0  ;;  %5999 = vmatmul.mubr.msk.f32.vlgmr.msra.gmra.mrb[22].mxu0 %vm393_vm2, %v4382_v54 }
0x1a87   :  { %6012 = vmatpush3.msk.msra.mxu0 %vm559_vm4, %v5494_v52  ;;  %6013 = vmatprep.mubr.msk.f32.mxu0 %vm6396_vm0, %v6397_v2 }
0x1a88   :  { %6021 = vmatprep.subr.mxu0 %v6397_v2 }
0x1a8e   :  { %6014 = vmatmul.mubr.msk.f32.vlgmr.msra.gmra.mrb[22].mxu0 %vm393_vm2, %v4625_v10 }
0x1a8f   :  { %6023 = vmatprep.mubr.msk.f32.mxu0 %vm6396_vm0, %v6397_v2 }
0x1adb   :  { %v4787_v57 = vpop.xlane.xlu1 %4786 }
0x1adc   :  { %v4788_v17 = vsub.f32 %v4781_v48, %v4787_v57 }
0x1ade   :  { %v4789_v58 = vmul.f32 1.442695, %v4788_v17 }
0x1ae0   :  { %6282 = vpow2.f32 %v4789_v58 }
0x1aea   :  { %v6283_v60 = vpop.eup %6282 }
0x1aeb   :  { %v4791_v61 = vsel %vm470_vm3, %v6283_v60, 0.0 }
0x1aec   :  { %4792 = vadd.xlane.f32.xlu1 %v4791_v61 }
0x1afd   :  { %4796 = vrot.lane.b32.xlu1 %v7070_v15, %s6404_s1  ;;  %s6405_s1 = smov [#allocation9]  }
0x1afe   :  { %s5375_s26 = sshll.u32 %s6405_s1, 4  ;;  %s5376_s26 = int_to_ptr.vmem [resolvable:$true] %s5375_s26 }
0x1aff   :  { %s6362_s12 = scalar_lea.vmem %s5376_s26, 256  ;;  %p6367_p11 = scmp.lt.s32.totalorder %s5376_s26, %s5376_s26 }
0x1b00   :  { %p6363_p10 = scmp.ne.s32.totalorder %s5376_s26, %s6362_s12  ;;  %p6368_p12 = scmp.lt.s32.totalorder %s6362_s12, %s6362_s12 }
0x1b02   :  { %p6369_p13 = por %p6368_p12, %p6367_p11 }
0x1b04   :  { %p6370_p0 = pnand %p6369_p13, %p6363_p10 }
0x1b79   :  { %v4793_v18 = vpop.xlane.xlu1 %4792 }
0x1b7a   :  { %6284 = vrcp.f32 %v4793_v18 }
0x1b7d   :  { %v4797_v63 = vpop.permute.xlu1 %4796 }
0x1b7e   :  { %6022 = vmatpush3.msra.mxu0 %v4797_v63 }
0x1b7f   :  { %6026 = vmatprep.subr.mxu0 %v6397_v2 }
0x1b84   :  { %v6285_v0 = vpop.eup %6284 }
0x1b85   :  { %v4795_v3 = vmul.f32 %v6285_v0, %v6283_v60 }
0x1b87   :  { %6024 = vmatmul.mubr.msk.f32.vlgmr.msra.gmra.mrb[30].mxu0 %vm470_vm3, %v4795_v3 }
0x1b88   :  { %6027 = vmatpush3.msk.msra.mxu0 %vm559_vm4, %v5500_v4  ;;  %6028 = vmatprep.mubr.msk.f32.mxu0 %vm6396_vm0, %v6397_v2 }
0x1b89   :  { %6144 = vmatprep.subr.bf16.mxu0 %v6395_v1 }
0x1c5a   :  { %v4868_v15 = vpop.f32.mrb[30].mxu0 }
0x1c5b   :  { %v6025_v8 = vpop.f32.mrb[31].mxu0  ;;  %6029 = vmatmul.mubr.msk.f32.vlgmr.msra.gmra.mrb[22].mxu0 %vm393_vm2, %v4868_v15 }
0x1c5c   :  { %6146 = vmatpush3.bf16.msra.mxu0 %v6908_v39  ;;  %6050 = vmatprep.mubr.msk.f32.mxu0 %vm6396_vm0, %v6397_v2 }
0x1c5d   :  { %6147 = vmatprep.subr.bf16.mxu0 %v6395_v1 }
0x1c60   :  { %6149 = vmatpush3.bf16.msra.mxu0 %v6921_v45  ;;  %v4973_v45 = vrot.slane %v4972_v22, 4 }
0x1c61   :  { %6159 = vmatprep.subr.bf16.mxu0 %v6395_v1 }
0x1c62   :  { %v4974_v55 = vadd.f32 %v4973_v45, %v4972_v22 }
0x1c64   :  { %v4975_v16 = vrot.slane %v4974_v55, 2 }
0x1c66   :  { %v4976_v23 = vadd.f32 %v4975_v16, %v4974_v55 }
0x1c68   :  { %v4977_v26 = vrot.slane %v4976_v23, 1 }
0x1d2e   :  { %v4945_v9 = vpop.f32.mrb[22].mxu0 }
0x1d2f   :  { %v6163_v20 = vadd.f32 %v6881_v7, %v4945_v9  ;;  %v6030_v62 = vpop.f32.mrb[23].mxu0  ;;  %v4978_v7 = vadd.f32 %v4977_v26, %v4976_v23 }
0x1d31   :  { %v4950_v11 = vsel %vm156_vm1, %v6163_v20, 0.0  ;;  %v4979_v27 = vmul.f32 0.125, %v4978_v7 }
0x1d32   :  { %4951 = vadd.xlane.f32.xlu0 %v4950_v11 }
0x1d33   :  { %6040 = vmatmul.mubr.msk.f32.vlgmr.msra.gmra.mrb[58].mxu1 %vm156_vm1, %v4979_v27 }
0x1d34   :  { %6152 = vmatpush3.bf16.msra.mxu1 %v6956_v42  ;;  %6057 = vmatprep.mubr.msk.f32.mxu1 %vm6396_vm0, %v6397_v2 }
0x1d35   :  { %6153 = vmatprep.subr.bf16.mxu1 %v6395_v1 }
0x1dbf   :  { %v4952_v12 = vpop.xlane.xlu0 %4951 }
0x1dc0   :  { %v4953_v19 = vmul.f32 0.03125, %v4952_v12 }
0x1dc2   :  { %v4954_v29 = vsub.f32 %v6163_v20, %v4953_v19 }
0x1dc4   :  { %v4955_v39 = vmul.f32 %v4954_v29, %v4954_v29 }
0x1dc6   :  { %v4956_v59 = vsel %vm156_vm1, %v4955_v39, 0.0 }
0x1dc7   :  { %4957 = vadd.xlane.f32.xlu1 %v4956_v59 }
0x1e06   :  { %v5049_v46 = vpop.f32.mrb[58].mxu1 }
0x1e07   :  { %v6041_v10 = vpop.f32.mrb[59].mxu1 }
0x1e54   :  { %v4958_v6 = vpop.xlane.xlu1 %4957 }
0x1e55   :  { %v4959_v40 = vmul.f32 0.03125, %v4958_v6 }
0x1e57   :  { %v4960_v30 = vadd.f32 1e-05, %v4959_v40 }
0x1e59   :  { %6286 = vrsqrt.f32 %v4960_v30 }
0x1e63   :  { %v6287_v32 = vpop.eup %6286 }
0x1e64   :  { %v4962_v33 = vmul.f32 %v6287_v32, %v4954_v29 }
0x1e66   :  { %v4963_v34 = vmul.f32 %v6934_v51, %v4962_v33 }
0x1e68   :  { %v4964_v25 = vadd.f32 %v6939_v53, %v4963_v34 }
0x1e6a   :  { %v4965_v37 = vsel %vm156_vm1, %v4964_v25, -inf }
0x1e6b   :  { %v4966_v38 = vrot.slane %v4965_v37, 4 }
0x1e6d   :  { %v4967_v41 = vmax.f32 %v4965_v37, %v4966_v38 }
0x1e6f   :  { %v4968_v42 = vrot.slane %v4967_v41, 2 }
0x1e71   :  { %v4969_v35 = vmax.f32 %v4967_v41, %v4968_v42 }
0x1e73   :  { %v4970_v44 = vrot.slane %v4969_v35, 1 }
0x1e75   :  { %v4971_v43 = vmax.f32 %v4969_v35, %v4970_v44 }
0x1e77   :  { %6051 = vmatmul.mubr.msk.f32.vlgmr.msra.gmra.mrb[32].mxu0 %vm156_vm1, %v4971_v43 }
0x1e78   :  { %6161 = vmatpush3.bf16.msra.mxu0 %v7003_v28  ;;  %6075 = vmatprep.mubr.msk.f32.mxu0 %vm6396_vm0, %v6397_v2 }
0x1f4a   :  { %v5122_v51 = vpop.f32.mrb[32].mxu0 }
0x1f4b   :  { %v5123_v14 = vadd.f32 %v5122_v51, %v5049_v46  ;;  %v6052_v53 = vpop.f32.mrb[33].mxu0 }
0x1f4d   :  { %v5126_v48 = vadd.f32 %v5123_v14, %v6963_v5 }
0x1f4f   :  { %v5127_v49 = vmax.f32 %v5126_v48, 0.0 }
0x1f51   :  { %6058 = vmatmul.mubr.msk.f32.vlgmr.msra.gmra.mrb[60].mxu1 %vm2535_vm5, %v5127_v49 }
0x1f52   :  { %6155 = vmatpush3.bf16.msra.mxu1 %v6972_v21  ;;  %6068 = vmatprep.mubr.msk.f32.mxu1 %vm6396_vm0, %v6397_v2 }
0x1f53   :  { %6156 = vmatprep.subr.bf16.mxu1 %v6395_v1 }
0x1f56   :  { %6158 = vmatpush3.bf16.msra.mxu1 %v6982_v24 }
0x1f59   :  { %6069 = vmatmul.mubr.msk.f32.vlgmr.msra.gmra.mrb[62].mxu1 %vm156_vm1, %v4964_v25 }
0x2024   :  { %v5197_v28 = vpop.f32.mrb[60].mxu1 }
0x2025   :  { %v5198_v50 = vadd.f32 %v5197_v28, %v7010_v13  ;;  %v6059_v52 = vpop.f32.mrb[61].mxu1 }
0x2027   :  { %v5506_v54 = vmul.f32 -1.442695, %v5198_v50 }
0x2029   :  { %6288 = vpow2.f32 %v5506_v54 }
0x202c   :  { %v5276_v5 = vpop.f32.mrb[62].mxu1 }
0x202d   :  { %v5277_v56 = vadd.f32 %v7016_v36, %v5276_v5  ;;  %v6070_v57 = vpop.f32.mrb[63].mxu1 }
0x202f   :  { %v5280_v21 = vmax.f32 %v5277_v56, 0.0 }
0x2031   :  { %6076 = vmatmul.mubr.msk.f32.vlgmr.msra.gmra.mrb[34].mxu0 %vm2535_vm5, %v5280_v21 }
0x2033   :  { %v6289_v2 = vpop.eup %6288 }
0x2034   :  { %v5204_v17 = vadd.f32 1.0, %v6289_v2 }
0x2036   :  { %6290 = vrcp.f32 %v5204_v17 }
0x2040   :  { %v6291_v1 = vpop.eup %6290 }
0x2041   :  { %v5361_v24 = vsub.f32 1.0, %v6291_v1 }
0x2043   :  { %6194 = vpush %v5361_v24 }
0x2074   :  { %s6195_s8 = spop %6194 }
0x2075   :  { %v5364_v3 = vstv %s6195_s8 }
0x2104   :  { %v5350_v58 = vpop.f32.mrb[34].mxu0 }
0x2105   :  { %v5351_v60 = vadd.f32 %v7048_v31, %v5350_v58  ;;  %v6077_v13 = vpop.f32.mrb[35].mxu0 }
0x2107   :  { %v5509_v61 = vmul.f32 -1.442695, %v5351_v60 }
0x2109   :  { %6292 = vpow2.f32 %v5509_v61 }
0x2113   :  { %v6293_v18 = vpop.eup %6292 }
0x2114   :  { %v5357_v63 = vadd.f32 1.0, %v6293_v18 }
0x2116   :  { %6294 = vrcp.f32 %v5357_v63 }
0x2120   :  { %v6295_v36 = vpop.eup %6294 }
0x2121   :  { %v5360_v0 = vmul.f32 %v6295_v36, %v4964_v25 }
0x2123   :  { %v5366_v4 = vmul.f32 %v5364_v3, %v5360_v0 }
0x2125   :  { %v5367_v15 = vadd.f32 %v5366_v4, %v7025_v47 }
0x2127   :  { %5369 = vst.msk [vmem:[#allocation9 + $0x8] sm:$0xff] %vm156_vm1, %v5367_v15 }
0x2128   :  { %6373 = shalt.err (!%p6370_p0)
}
0x2129   :  { %s7355_s16 = sld [smem:[#allocation19_spill]] }
0x212f   :  { %s6374_s23 = scalar_lea.hbm %s7355_s16, 256 }
0x2130   :  { %p6375_p1 = scmp.ne.s32.totalorder %s7355_s16, %s6374_s23  ;;  %p6378_p2 = scmp.lt.u32.totalorder %s6374_s23, %s7355_s16 }
0x2132   :  { %p6380_p3 = pnand %p6378_p2, %p6375_p1 }
0x2134   :  { %6383 = shalt.err (!%p6380_p3)
}
0x2135   :  { %5381 = dma.vmem_to_hbm [thread:$0]  %s5376_s26, 256, %s7355_s16, [#allocation5], %s6392_s24, %s6392_s24, %s6393_s2  }
0x2136   :  { %6388 = dma.done.wait [#allocation5], 256  }
0x2137   :  { %6389 = vsyncadd [#allocation5], 4294967040 }
0x2138   :  { %5385 = vsyncpa [#allocation4], 1 }
0x2139   :  { %5386 = vsyncpa [#allocation7], 1 }
0x213a   :  { %5387 = vsyncpa [#allocation5], 1 }

</bundles_post_ra>
